<compile_context>
chip_gen: v5e
topology: v5e:2x2
jax: 0.10.0
libtpu: 0.0.40
codegen_flags: <defaults>
</compile_context>

<pallas_src>
import functools

import jax
import jax.numpy as jnp
from jax import lax
from jax.experimental import pallas as pl
from jax.experimental.pallas import tpu as pltpu

LEAKY_SLOPE = 0.2
DROP_RATE = 0.3                      # F.dropout(x, 0.3), training=True (always on)
_KEEP_PROB = 1.0 - DROP_RATE
_KEEP_THRESH = int(_KEEP_PROB * (1 << 23))     # compare on 23 random bits


def _leaky_relu(x):
    # single vmax instead of compare+select (slope < 1 so this is exact)
    return jnp.maximum(x, LEAKY_SLOPE * x)


def _dropout(x, seed_u32, salt, row_off):
    """Inverted dropout using an in-kernel counter-hash PRNG (no pltpu.prng_*)."""
    shape = x.shape
    r = lax.broadcasted_iota(jnp.int32, shape, 0) + row_off    # global row id
    c = lax.broadcasted_iota(jnp.int32, shape, 1)
    ctr = (r * jnp.int32(shape[1]) + c).astype(jnp.uint32)     # unique counter
    h = ctr * jnp.uint32(2654435761)
    h = h + seed_u32 + jnp.uint32((salt * 0x9E3779B9) & 0xFFFFFFFF)
    # murmur3-style finalizer (wraparound uint32 arithmetic, logical shifts)
    h = h ^ (h >> jnp.uint32(16))
    h = h * jnp.uint32(0x85EBCA6B)
    h = h ^ (h >> jnp.uint32(13))
    h = h * jnp.uint32(0xC2B2AE35)
    h = h ^ (h >> jnp.uint32(16))
    bits = (h >> jnp.uint32(9)).astype(jnp.int32)              # 23 positive bits
    keep = bits < jnp.int32(_KEEP_THRESH)                      # integer compare
    return jnp.where(keep, x * (1.0 / _KEEP_PROB), 0.0)


def _disc_fc_kernel(block_b,
                    seed_ref,                                   # scalar prefetch (SMEM)
                    x_ref,
                    w1_ref, b1_ref, w2_ref, b2_ref,
                    w3_ref, b3_ref, w4_ref, b4_ref,
                    out_ref):
    seed_u32 = seed_ref[0].astype(jnp.uint32)
    row_off = pl.program_id(0) * block_b                        # global row offset

    x = x_ref[...]                                              # [TB, D] f32

    # fc1 -> leaky_relu -> dropout   (bf16 into the MXU, f32 accumulate)
    h = jnp.dot(x.astype(jnp.bfloat16), w1_ref[...],
                preferred_element_type=jnp.float32) + b1_ref[...]
    h = _dropout(_leaky_relu(h), seed_u32, 1, row_off)

    # fc2 -> leaky_relu -> dropout
    h = jnp.dot(h.astype(jnp.bfloat16), w2_ref[...],
                preferred_element_type=jnp.float32) + b2_ref[...]
    h = _dropout(_leaky_relu(h), seed_u32, 2, row_off)

    # fc3 -> leaky_relu -> dropout
    h = jnp.dot(h.astype(jnp.bfloat16), w3_ref[...],
                preferred_element_type=jnp.float32) + b3_ref[...]
    h = _dropout(_leaky_relu(h), seed_u32, 3, row_off)

    # fc4 (out_features == 1): VPU multiply + lane reduction, skip the MXU.
    w4_row = w4_ref[...].astype(jnp.float32)                    # [1, 256]
    logits = jnp.sum(h * w4_row, axis=-1, keepdims=True) + b4_ref[...]
    out_ref[...] = (1.0 / (1.0 + jnp.exp(-logits))).astype(out_ref.dtype)


def _pick_block_b(batch, max_block_b):
    """Largest power-of-two batch tile >=8 dividing `batch` (else whole batch)."""
    tb = 8
    while tb * 2 <= min(max_block_b, batch) and batch % (tb * 2) == 0:
        tb *= 2
    return tb if batch % tb == 0 else batch


def discriminator_fc_forward(x, params, seed, *, max_block_b=256):
    """x: [B, d_input_dim] f32. params: dict of w1..w4 / b1..b4 (f32, [in,out])."""
    B, D = x.shape
    tb = _pick_block_b(B, max_block_b)
    num_tiles = B // tb

    # Stream weights in bf16 (the dominant HBM traffic); biases stay f32.
    w1 = params["w1"].astype(jnp.bfloat16)
    w2 = params["w2"].astype(jnp.bfloat16)
    w3 = params["w3"].astype(jnp.bfloat16)
    w4 = params["w4"].astype(jnp.bfloat16).reshape(1, -1)       # [1, 256] row
    b1, b2, b3, b4 = params["b1"], params["b2"], params["b3"], params["b4"]

    seed_arr = jnp.asarray([seed], dtype=jnp.int32)             # explicit per-step seed

    def tiled_spec(shape):          # x / out: tiled over the batch grid axis
        return pl.BlockSpec(shape, lambda i, seed: (i, 0))

    def resident_spec(shape):       # weights/biases: constant block -> loaded once
        return pl.BlockSpec(shape, lambda i, seed: (0, 0))

    grid_spec = pltpu.PrefetchScalarGridSpec(
        num_scalar_prefetch=1,
        grid=(num_tiles,),
        in_specs=[
            tiled_spec((tb, D)),
            resident_spec(w1.shape), resident_spec(b1.shape),
            resident_spec(w2.shape), resident_spec(b2.shape),
            resident_spec(w3.shape), resident_spec(b3.shape),
            resident_spec(w4.shape), resident_spec(b4.shape),
        ],
        out_specs=tiled_spec((tb, 1)),
    )

    flops = 2 * B * (D * 1024 + 1024 * 512 + 512 * 256 + 256)
    bytes_accessed = (
        sum(int(w.size) * 2 for w in (w1, w2, w3, w4))          # bf16 weights
        + sum(int(b.size) * 4 for b in (b1, b2, b3, b4))        # f32 biases
        + int(x.size) * 4 + B * 4)
    cost = pl.CostEstimate(flops=flops, transcendentals=int(B),
                           bytes_accessed=int(bytes_accessed))

    kernel = functools.partial(_disc_fc_kernel, tb)

    return pl.pallas_call(
        kernel,
        out_shape=jax.ShapeDtypeStruct((B, 1), jnp.float32),
        grid_spec=grid_spec,
        compiler_params=pltpu.CompilerParams(
            dimension_semantics=("parallel",),                  # v7x: split batch across TCs
        ),
        cost_estimate=cost,
    )(seed_arr, x, w1, b1, w2, b2, w3, b3, w4, b4)


def init_params(key, d_input_dim):
    """nn.Linear default init: U(-1/sqrt(fan_in), 1/sqrt(fan_in)); stored as [in, out]."""
    dims = [d_input_dim, 1024, 512, 256, 1]
    params = {}
    for li in range(4):
        fan_in, fan_out = dims[li], dims[li + 1]
        key, kw, kb = jax.random.split(key, 3)
        bound = 1.0 / jnp.sqrt(jnp.float32(fan_in))
        params[f"w{li+1}"] = jax.random.uniform(
            kw, (fan_in, fan_out), jnp.float32, -bound, bound)
        params[f"b{li+1}"] = jax.random.uniform(
            kb, (1, fan_out), jnp.float32, -bound, bound)
    return params


if __name__ == "__main__":
    key = jax.random.PRNGKey(0)
    k_param, k_x = jax.random.split(key)

    B = 32
    D_INPUT_DIM = 128

    params = init_params(k_param, D_INPUT_DIM)
    x = jax.random.normal(k_x, (B, D_INPUT_DIM), dtype=jnp.float32)

    # max_block_b=16 -> grid=(2,): exercises the batch-tiled / weight-resident path.
    out = discriminator_fc_forward(x, params, seed=42, max_block_b=16)
    out = jax.block_until_ready(out)

    assert out.shape == (B, 1)
    assert bool(jnp.all(jnp.isfinite(out)))
    assert bool(jnp.all((out >= 0.0) & (out <= 1.0)))
    print("KERNEL_OK")
</pallas_src>

<mosaic_0001>
module attributes {stable_mosaic.version = 11 : i64} {
  func.func @_disc_fc_kernel(%arg0: i32, %arg1: memref<1xi32, #tpu.memory_space<smem>>, %arg2: memref<16x128xf32, #tpu.memory_space<vmem>>, %arg3: memref<128x1024xbf16, #tpu.memory_space<vmem>>, %arg4: memref<1x1024xf32, #tpu.memory_space<vmem>>, %arg5: memref<1024x512xbf16, #tpu.memory_space<vmem>>, %arg6: memref<1x512xf32, #tpu.memory_space<vmem>>, %arg7: memref<512x256xbf16, #tpu.memory_space<vmem>>, %arg8: memref<1x256xf32, #tpu.memory_space<vmem>>, %arg9: memref<1x256xbf16, #tpu.memory_space<vmem>>, %arg10: memref<1x1xf32, #tpu.memory_space<vmem>>, %arg11: memref<16x1xf32, #tpu.memory_space<vmem>>) attributes {dimension_semantics = [#tpu.dimension_semantics<parallel>], iteration_bounds = array<i64: 2>, scalar_prefetch = 1 : i64, scratch_operands = 0 : i64, tpu.core_type = #tpu.core_type<tc>, window_params = [{transform_indices = @transform_0, window_bounds = array<i64: 16, 128>}, {pipeline_mode = #tpu.pipeline_mode<synchronous>, transform_indices = @transform_1, window_bounds = array<i64: 128, 1024>}, {pipeline_mode = #tpu.pipeline_mode<synchronous>, transform_indices = @transform_2, window_bounds = array<i64: 1, 1024>}, {pipeline_mode = #tpu.pipeline_mode<synchronous>, transform_indices = @transform_3, window_bounds = array<i64: 1024, 512>}, {pipeline_mode = #tpu.pipeline_mode<synchronous>, transform_indices = @transform_4, window_bounds = array<i64: 1, 512>}, {pipeline_mode = #tpu.pipeline_mode<synchronous>, transform_indices = @transform_5, window_bounds = array<i64: 512, 256>}, {pipeline_mode = #tpu.pipeline_mode<synchronous>, transform_indices = @transform_6, window_bounds = array<i64: 1, 256>}, {pipeline_mode = #tpu.pipeline_mode<synchronous>, transform_indices = @transform_7, window_bounds = array<i64: 1, 256>}, {pipeline_mode = #tpu.pipeline_mode<synchronous>, transform_indices = @transform_8, window_bounds = array<i64: 1, 1>}, {transform_indices = @transform_9, window_bounds = array<i64: 16, 1>}]} {
    %c0 = arith.constant 0 : index
    %0 = memref.load %arg1[%c0] : memref<1xi32, #tpu.memory_space<smem>>
    %c16_i32 = arith.constant 16 : i32
    %1 = arith.muli %arg0, %c16_i32 : i32
    %c0_0 = arith.constant 0 : index
    %c0_1 = arith.constant 0 : index
    %2 = vector.load %arg2[%c0_0, %c0_1] : memref<16x128xf32, #tpu.memory_space<vmem>>, vector<16x128xf32>
    %3 = arith.truncf %2 : vector<16x128xf32> to vector<16x128xbf16>
    %c0_2 = arith.constant 0 : index
    %c0_3 = arith.constant 0 : index
    %4 = vector.load %arg3[%c0_2, %c0_3] : memref<128x1024xbf16, #tpu.memory_space<vmem>>, vector<128x1024xbf16>
    %cst = arith.constant dense<0.000000e+00> : vector<16x1024xf32>
    %5 = tpu.matmul %3, %4, %cst {dimension_numbers = #tpu.dot_dimension_numbers<[1], [0], [0], [1], [0, 0, 1, 1], [], []>} : vector<16x128xbf16>, vector<128x1024xbf16>, vector<16x1024xf32> -> vector<16x1024xf32>
    %c0_4 = arith.constant 0 : index
    %c0_5 = arith.constant 0 : index
    %6 = vector.load %arg4[%c0_4, %c0_5] : memref<1x1024xf32, #tpu.memory_space<vmem>>, vector<1x1024xf32>
    %7 = vector.broadcast %6 : vector<1x1024xf32> to vector<16x1024xf32>
    %8 = arith.addf %5, %7 : vector<16x1024xf32>
    %cst_6 = arith.constant 2.000000e-01 : f32
    %9 = vector.broadcast %cst_6 : f32 to vector<16x1024xf32>
    %10 = arith.mulf %9, %8 : vector<16x1024xf32>
    %11 = arith.maximumf %8, %10 : vector<16x1024xf32>
    %12 = tpu.iota {dimensions = array<i32: 0>} : vector<16x1024xi32>
    %13 = vector.broadcast %1 : i32 to vector<16x1024xi32>
    %14 = arith.addi %12, %13 : vector<16x1024xi32>
    %15 = tpu.iota {dimensions = array<i32: 1>} : vector<16x1024xi32>
    %c1024_i32 = arith.constant 1024 : i32
    %16 = vector.broadcast %c1024_i32 : i32 to vector<16x1024xi32>
    %17 = arith.muli %14, %16 : vector<16x1024xi32>
    %18 = arith.addi %17, %15 : vector<16x1024xi32>
    %c-1640531535_i32 = arith.constant -1640531535 : i32
    %19 = vector.broadcast %c-1640531535_i32 : i32 to vector<16x1024xi32>
    %20 = arith.muli %18, %19 : vector<16x1024xi32>
    %21 = vector.broadcast %0 : i32 to vector<16x1024xi32>
    %22 = arith.addi %20, %21 : vector<16x1024xi32>
    %c-1640531527_i32 = arith.constant -1640531527 : i32
    %23 = vector.broadcast %c-1640531527_i32 : i32 to vector<16x1024xi32>
    %24 = arith.addi %22, %23 : vector<16x1024xi32>
    %c16_i32_7 = arith.constant 16 : i32
    %25 = vector.broadcast %c16_i32_7 : i32 to vector<16x1024xi32>
    %26 = arith.shrui %24, %25 : vector<16x1024xi32>
    %27 = arith.xori %24, %26 : vector<16x1024xi32>
    %c-2048144789_i32 = arith.constant -2048144789 : i32
    %28 = vector.broadcast %c-2048144789_i32 : i32 to vector<16x1024xi32>
    %29 = arith.muli %27, %28 : vector<16x1024xi32>
    %c13_i32 = arith.constant 13 : i32
    %30 = vector.broadcast %c13_i32 : i32 to vector<16x1024xi32>
    %31 = arith.shrui %29, %30 : vector<16x1024xi32>
    %32 = arith.xori %29, %31 : vector<16x1024xi32>
    %c-1028477387_i32 = arith.constant -1028477387 : i32
    %33 = vector.broadcast %c-1028477387_i32 : i32 to vector<16x1024xi32>
    %34 = arith.muli %32, %33 : vector<16x1024xi32>
    %c16_i32_8 = arith.constant 16 : i32
    %35 = vector.broadcast %c16_i32_8 : i32 to vector<16x1024xi32>
    %36 = arith.shrui %34, %35 : vector<16x1024xi32>
    %37 = arith.xori %34, %36 : vector<16x1024xi32>
    %c9_i32 = arith.constant 9 : i32
    %38 = vector.broadcast %c9_i32 : i32 to vector<16x1024xi32>
    %39 = arith.shrui %37, %38 : vector<16x1024xi32>
    %c5872025_i32 = arith.constant 5872025 : i32
    %40 = vector.broadcast %c5872025_i32 : i32 to vector<16x1024xi32>
    %41 = arith.cmpi slt, %39, %40 : vector<16x1024xi32>
    %cst_9 = arith.constant 1.42857146 : f32
    %42 = vector.broadcast %cst_9 : f32 to vector<16x1024xf32>
    %43 = arith.mulf %11, %42 : vector<16x1024xf32>
    %cst_10 = arith.constant 0.000000e+00 : f32
    %44 = vector.broadcast %cst_10 : f32 to vector<16x1024xf32>
    %45 = arith.select %41, %43, %44 : vector<16x1024xi1>, vector<16x1024xf32>
    %46 = arith.truncf %45 : vector<16x1024xf32> to vector<16x1024xbf16>
    %c0_11 = arith.constant 0 : index
    %c0_12 = arith.constant 0 : index
    %47 = vector.load %arg5[%c0_11, %c0_12] : memref<1024x512xbf16, #tpu.memory_space<vmem>>, vector<1024x512xbf16>
    %cst_13 = arith.constant dense<0.000000e+00> : vector<16x512xf32>
    %48 = tpu.matmul %46, %47, %cst_13 {dimension_numbers = #tpu.dot_dimension_numbers<[1], [0], [0], [1], [0, 0, 1, 1], [], []>} : vector<16x1024xbf16>, vector<1024x512xbf16>, vector<16x512xf32> -> vector<16x512xf32>
    %c0_14 = arith.constant 0 : index
    %c0_15 = arith.constant 0 : index
    %49 = vector.load %arg6[%c0_14, %c0_15] : memref<1x512xf32, #tpu.memory_space<vmem>>, vector<1x512xf32>
    %50 = vector.broadcast %49 : vector<1x512xf32> to vector<16x512xf32>
    %51 = arith.addf %48, %50 : vector<16x512xf32>
    %cst_16 = arith.constant 2.000000e-01 : f32
    %52 = vector.broadcast %cst_16 : f32 to vector<16x512xf32>
    %53 = arith.mulf %52, %51 : vector<16x512xf32>
    %54 = arith.maximumf %51, %53 : vector<16x512xf32>
    %55 = tpu.iota {dimensions = array<i32: 0>} : vector<16x512xi32>
    %56 = vector.broadcast %1 : i32 to vector<16x512xi32>
    %57 = arith.addi %55, %56 : vector<16x512xi32>
    %58 = tpu.iota {dimensions = array<i32: 1>} : vector<16x512xi32>
    %c512_i32 = arith.constant 512 : i32
    %59 = vector.broadcast %c512_i32 : i32 to vector<16x512xi32>
    %60 = arith.muli %57, %59 : vector<16x512xi32>
    %61 = arith.addi %60, %58 : vector<16x512xi32>
    %c-1640531535_i32_17 = arith.constant -1640531535 : i32
    %62 = vector.broadcast %c-1640531535_i32_17 : i32 to vector<16x512xi32>
    %63 = arith.muli %61, %62 : vector<16x512xi32>
    %64 = vector.broadcast %0 : i32 to vector<16x512xi32>
    %65 = arith.addi %63, %64 : vector<16x512xi32>
    %c1013904242_i32 = arith.constant 1013904242 : i32
    %66 = vector.broadcast %c1013904242_i32 : i32 to vector<16x512xi32>
    %67 = arith.addi %65, %66 : vector<16x512xi32>
    %c16_i32_18 = arith.constant 16 : i32
    %68 = vector.broadcast %c16_i32_18 : i32 to vector<16x512xi32>
    %69 = arith.shrui %67, %68 : vector<16x512xi32>
    %70 = arith.xori %67, %69 : vector<16x512xi32>
    %c-2048144789_i32_19 = arith.constant -2048144789 : i32
    %71 = vector.broadcast %c-2048144789_i32_19 : i32 to vector<16x512xi32>
    %72 = arith.muli %70, %71 : vector<16x512xi32>
    %c13_i32_20 = arith.constant 13 : i32
    %73 = vector.broadcast %c13_i32_20 : i32 to vector<16x512xi32>
    %74 = arith.shrui %72, %73 : vector<16x512xi32>
    %75 = arith.xori %72, %74 : vector<16x512xi32>
    %c-1028477387_i32_21 = arith.constant -1028477387 : i32
    %76 = vector.broadcast %c-1028477387_i32_21 : i32 to vector<16x512xi32>
    %77 = arith.muli %75, %76 : vector<16x512xi32>
    %c16_i32_22 = arith.constant 16 : i32
    %78 = vector.broadcast %c16_i32_22 : i32 to vector<16x512xi32>
    %79 = arith.shrui %77, %78 : vector<16x512xi32>
    %80 = arith.xori %77, %79 : vector<16x512xi32>
    %c9_i32_23 = arith.constant 9 : i32
    %81 = vector.broadcast %c9_i32_23 : i32 to vector<16x512xi32>
    %82 = arith.shrui %80, %81 : vector<16x512xi32>
    %c5872025_i32_24 = arith.constant 5872025 : i32
    %83 = vector.broadcast %c5872025_i32_24 : i32 to vector<16x512xi32>
    %84 = arith.cmpi slt, %82, %83 : vector<16x512xi32>
    %cst_25 = arith.constant 1.42857146 : f32
    %85 = vector.broadcast %cst_25 : f32 to vector<16x512xf32>
    %86 = arith.mulf %54, %85 : vector<16x512xf32>
    %cst_26 = arith.constant 0.000000e+00 : f32
    %87 = vector.broadcast %cst_26 : f32 to vector<16x512xf32>
    %88 = arith.select %84, %86, %87 : vector<16x512xi1>, vector<16x512xf32>
    %89 = arith.truncf %88 : vector<16x512xf32> to vector<16x512xbf16>
    %c0_27 = arith.constant 0 : index
    %c0_28 = arith.constant 0 : index
    %90 = vector.load %arg7[%c0_27, %c0_28] : memref<512x256xbf16, #tpu.memory_space<vmem>>, vector<512x256xbf16>
    %cst_29 = arith.constant dense<0.000000e+00> : vector<16x256xf32>
    %91 = tpu.matmul %89, %90, %cst_29 {dimension_numbers = #tpu.dot_dimension_numbers<[1], [0], [0], [1], [0, 0, 1, 1], [], []>} : vector<16x512xbf16>, vector<512x256xbf16>, vector<16x256xf32> -> vector<16x256xf32>
    %c0_30 = arith.constant 0 : index
    %c0_31 = arith.constant 0 : index
    %92 = vector.load %arg8[%c0_30, %c0_31] : memref<1x256xf32, #tpu.memory_space<vmem>>, vector<1x256xf32>
    %93 = vector.broadcast %92 : vector<1x256xf32> to vector<16x256xf32>
    %94 = arith.addf %91, %93 : vector<16x256xf32>
    %cst_32 = arith.constant 2.000000e-01 : f32
    %95 = vector.broadcast %cst_32 : f32 to vector<16x256xf32>
    %96 = arith.mulf %95, %94 : vector<16x256xf32>
    %97 = arith.maximumf %94, %96 : vector<16x256xf32>
    %98 = tpu.iota {dimensions = array<i32: 0>} : vector<16x256xi32>
    %99 = vector.broadcast %1 : i32 to vector<16x256xi32>
    %100 = arith.addi %98, %99 : vector<16x256xi32>
    %101 = tpu.iota {dimensions = array<i32: 1>} : vector<16x256xi32>
    %c256_i32 = arith.constant 256 : i32
    %102 = vector.broadcast %c256_i32 : i32 to vector<16x256xi32>
    %103 = arith.muli %100, %102 : vector<16x256xi32>
    %104 = arith.addi %103, %101 : vector<16x256xi32>
    %c-1640531535_i32_33 = arith.constant -1640531535 : i32
    %105 = vector.broadcast %c-1640531535_i32_33 : i32 to vector<16x256xi32>
    %106 = arith.muli %104, %105 : vector<16x256xi32>
    %107 = vector.broadcast %0 : i32 to vector<16x256xi32>
    %108 = arith.addi %106, %107 : vector<16x256xi32>
    %c-626627285_i32 = arith.constant -626627285 : i32
    %109 = vector.broadcast %c-626627285_i32 : i32 to vector<16x256xi32>
    %110 = arith.addi %108, %109 : vector<16x256xi32>
    %c16_i32_34 = arith.constant 16 : i32
    %111 = vector.broadcast %c16_i32_34 : i32 to vector<16x256xi32>
    %112 = arith.shrui %110, %111 : vector<16x256xi32>
    %113 = arith.xori %110, %112 : vector<16x256xi32>
    %c-2048144789_i32_35 = arith.constant -2048144789 : i32
    %114 = vector.broadcast %c-2048144789_i32_35 : i32 to vector<16x256xi32>
    %115 = arith.muli %113, %114 : vector<16x256xi32>
    %c13_i32_36 = arith.constant 13 : i32
    %116 = vector.broadcast %c13_i32_36 : i32 to vector<16x256xi32>
    %117 = arith.shrui %115, %116 : vector<16x256xi32>
    %118 = arith.xori %115, %117 : vector<16x256xi32>
    %c-1028477387_i32_37 = arith.constant -1028477387 : i32
    %119 = vector.broadcast %c-1028477387_i32_37 : i32 to vector<16x256xi32>
    %120 = arith.muli %118, %119 : vector<16x256xi32>
    %c16_i32_38 = arith.constant 16 : i32
    %121 = vector.broadcast %c16_i32_38 : i32 to vector<16x256xi32>
    %122 = arith.shrui %120, %121 : vector<16x256xi32>
    %123 = arith.xori %120, %122 : vector<16x256xi32>
    %c9_i32_39 = arith.constant 9 : i32
    %124 = vector.broadcast %c9_i32_39 : i32 to vector<16x256xi32>
    %125 = arith.shrui %123, %124 : vector<16x256xi32>
    %c5872025_i32_40 = arith.constant 5872025 : i32
    %126 = vector.broadcast %c5872025_i32_40 : i32 to vector<16x256xi32>
    %127 = arith.cmpi slt, %125, %126 : vector<16x256xi32>
    %cst_41 = arith.constant 1.42857146 : f32
    %128 = vector.broadcast %cst_41 : f32 to vector<16x256xf32>
    %129 = arith.mulf %97, %128 : vector<16x256xf32>
    %cst_42 = arith.constant 0.000000e+00 : f32
    %130 = vector.broadcast %cst_42 : f32 to vector<16x256xf32>
    %131 = arith.select %127, %129, %130 : vector<16x256xi1>, vector<16x256xf32>
    %c0_43 = arith.constant 0 : index
    %c0_44 = arith.constant 0 : index
    %132 = vector.load %arg9[%c0_43, %c0_44] : memref<1x256xbf16, #tpu.memory_space<vmem>>, vector<1x256xbf16>
    %133 = arith.extf %132 : vector<1x256xbf16> to vector<1x256xf32>
    %134 = vector.broadcast %133 : vector<1x256xf32> to vector<16x256xf32>
    %135 = arith.mulf %131, %134 : vector<16x256xf32>
    %cst_45 = arith.constant dense<0.000000e+00> : vector<16xf32>
    %136 = vector.multi_reduction <add>, %135, %cst_45 [1] : vector<16x256xf32> to vector<16xf32>
    %137 = vector.shape_cast %136 : vector<16xf32> to vector<16x1xf32>
    %c0_46 = arith.constant 0 : index
    %c0_47 = arith.constant 0 : index
    %138 = vector.load %arg10[%c0_46, %c0_47] : memref<1x1xf32, #tpu.memory_space<vmem>>, vector<1x1xf32>
    %139 = vector.broadcast %138 : vector<1x1xf32> to vector<16x1xf32>
    %140 = arith.addf %137, %139 : vector<16x1xf32>
    %cst_48 = arith.constant 0.000000e+00 : f32
    %141 = vector.broadcast %cst_48 : f32 to vector<16x1xf32>
    %142 = arith.subf %141, %140 : vector<16x1xf32>
    %143 = math.exp %142 : vector<16x1xf32>
    %cst_49 = arith.constant 1.000000e+00 : f32
    %144 = vector.broadcast %cst_49 : f32 to vector<16x1xf32>
    %145 = arith.addf %144, %143 : vector<16x1xf32>
    %cst_50 = arith.constant 1.000000e+00 : f32
    %146 = vector.broadcast %cst_50 : f32 to vector<16x1xf32>
    %147 = arith.divf %146, %145 : vector<16x1xf32>
    %c0_51 = arith.constant 0 : index
    %c0_52 = arith.constant 0 : index
    %148 = vector.load %arg11[%c0_51, %c0_52] : memref<16x1xf32, #tpu.memory_space<vmem>>, vector<16x1xf32>
    tpu.vector_store %arg11[%c0_51, %c0_52], %147 {strides = array<i32>} : memref<16x1xf32, #tpu.memory_space<vmem>>, vector<16x1xf32>,
    return
  }
  func.func @transform_0(%arg0: i32, %arg1: memref<1xi32, #tpu.memory_space<smem>>) -> (i32, i32) {
    %c0_i32 = arith.constant 0 : i32
    %c0_i32_0 = arith.constant 0 : i32
    return %arg0, %c0_i32 : i32, i32
  }
  func.func @transform_1(%arg0: i32, %arg1: memref<1xi32, #tpu.memory_space<smem>>) -> (i32, i32) {
    %c0_i32 = arith.constant 0 : i32
    %c0_i32_0 = arith.constant 0 : i32
    %c0_i32_1 = arith.constant 0 : i32
    return %c0_i32, %c0_i32_0 : i32, i32
  }
  func.func @transform_2(%arg0: i32, %arg1: memref<1xi32, #tpu.memory_space<smem>>) -> (i32, i32) {
    %c0_i32 = arith.constant 0 : i32
    %c0_i32_0 = arith.constant 0 : i32
    %c0_i32_1 = arith.constant 0 : i32
    return %c0_i32, %c0_i32_0 : i32, i32
  }
  func.func @transform_3(%arg0: i32, %arg1: memref<1xi32, #tpu.memory_space<smem>>) -> (i32, i32) {
    %c0_i32 = arith.constant 0 : i32
    %c0_i32_0 = arith.constant 0 : i32
    %c0_i32_1 = arith.constant 0 : i32
    return %c0_i32, %c0_i32_0 : i32, i32
  }
  func.func @transform_4(%arg0: i32, %arg1: memref<1xi32, #tpu.memory_space<smem>>) -> (i32, i32) {
    %c0_i32 = arith.constant 0 : i32
    %c0_i32_0 = arith.constant 0 : i32
    %c0_i32_1 = arith.constant 0 : i32
    return %c0_i32, %c0_i32_0 : i32, i32
  }
  func.func @transform_5(%arg0: i32, %arg1: memref<1xi32, #tpu.memory_space<smem>>) -> (i32, i32) {
    %c0_i32 = arith.constant 0 : i32
    %c0_i32_0 = arith.constant 0 : i32
    %c0_i32_1 = arith.constant 0 : i32
    return %c0_i32, %c0_i32_0 : i32, i32
  }
  func.func @transform_6(%arg0: i32, %arg1: memref<1xi32, #tpu.memory_space<smem>>) -> (i32, i32) {
    %c0_i32 = arith.constant 0 : i32
    %c0_i32_0 = arith.constant 0 : i32
    %c0_i32_1 = arith.constant 0 : i32
    return %c0_i32, %c0_i32_0 : i32, i32
  }
  func.func @transform_7(%arg0: i32, %arg1: memref<1xi32, #tpu.memory_space<smem>>) -> (i32, i32) {
    %c0_i32 = arith.constant 0 : i32
    %c0_i32_0 = arith.constant 0 : i32
    %c0_i32_1 = arith.constant 0 : i32
    return %c0_i32, %c0_i32_0 : i32, i32
  }
  func.func @transform_8(%arg0: i32, %arg1: memref<1xi32, #tpu.memory_space<smem>>) -> (i32, i32) {
    %c0_i32 = arith.constant 0 : i32
    %c0_i32_0 = arith.constant 0 : i32
    %c0_i32_1 = arith.constant 0 : i32
    return %c0_i32, %c0_i32_0 : i32, i32
  }
  func.func @transform_9(%arg0: i32, %arg1: memref<1xi32, #tpu.memory_space<smem>>) -> (i32, i32) {
    %c0_i32 = arith.constant 0 : i32
    %c0_i32_0 = arith.constant 0 : i32
    return %arg0, %c0_i32 : i32, i32
  }
}

</mosaic_0001>

<bundles_post_ra>
// kernel: tpu_custom_call.1
= control target key start
LH: loop header
LB: loop body
LE: loop exit
PB: predicated region body
PF: predicated region fallthrough
CT: control target
= control target key end

     0   :  { %s7392_s0 = inlined_call_operand.<no memory space> [shape: s32[1], index: 0, kind: input, shape index: {}]   ;;  %s7393_s1 = inlined_call_operand.hbm [shape: f32[32,128], index: 1, kind: input, shape index: {}]   ;;  %s7394_s2 = inlined_call_operand.hbm [shape: bf16[128,1024], index: 2, kind: input, shape index: {}]   ;;  %s7395_s3 = inlined_call_operand.hbm [shape: f32[1,1024], index: 3, kind: input, shape index: {}]   ;;  %s7396_s4 = inlined_call_operand.hbm [shape: bf16[1024,512], index: 4, kind: input, shape index: {}]   ;;  %s7397_s5 = inlined_call_operand.vmem [shape: f32[1,512], index: 5, kind: input, shape index: {}]   ;;  %s7398_s6 = inlined_call_operand.hbm [shape: bf16[512,256], index: 6, kind: input, shape index: {}]   ;;  %s7399_s7 = inlined_call_operand.vmem [shape: f32[1,256], index: 7, kind: input, shape index: {}]   ;;  %s7400_s8 = inlined_call_operand.vmem [shape: bf16[1,256], index: 8, kind: input, shape index: {}]   ;;  %s7401_s9 = inlined_call_operand.<no memory space> [shape: f32[1,1], index: 9, kind: input, shape index: {}]   ;;  %s7402_s10 = inlined_call_operand.vmem [shape: f32[32,1], index: 10, kind: output, shape index: {}]  }
   0x1   :  { %15 = sst [smem:[#allocation3]] %s7392_s0  ;;  %v16_v0 = vstv %s7401_s9 }
   0x2   :  { %17 = vst [vmem:[#allocation4] sm:$0x1] %v16_v0 }
   0x3   :  { %18 = vsyncpa [#allocation6], 0 }
   0x4   :  { %20 = vsyncpa [#allocation6 + $0x1], 0 }
   0x5   :  { %21 = vsyncpa [#allocation8], 0 }
   0x6   :  { %22 = vsyncpa [#allocation11], 0  ;;  %s6573_s17 = smov 0   ;;  %s6575_s18 = smov 0  }
   0x7   :  { %s6577_s19 = smov 0   ;;  %s6579_s20 = smov 0  }
   0x8 LB: > { %s6592_s0 = sadd.s32 4294967295, %s6500_s20   ;;  %p48_p0 = scmp.ne.s32.totalorder %s6492_s18, %s6488_s17  ;;  %s6500_s20 = sphi %s6579_s20, %s7459_s20   ;;  %s6496_s19 = sphi %s6577_s19, %s7458_s19   ;;  %s6492_s18 = sphi %s6575_s18, %s7457_s18   ;;  %s6488_s17 = sphi %s6573_s17, %s7456_s17  }
   0x9   : > { %p49_p1 = scmp.eq.s32.totalorder %s6592_s0, 0  ;;  %p4151_p2 = scmp.ge.s32.totalorder %s6500_s20, 1 }
   0xa   : > { %p253_p3 = scmp.lt.s32.totalorder %s6500_s20, 3  ;;  %s264_s23 = sshll.u32 %s7394_s2, 4  ;;  %s265_s23 = int_to_ptr.hbm [resolvable:$true] %s264_s23 }
   0xb   : > { %p6600_p4 = por %p49_p1, %p48_p0  ;;  %s6502_s25 = smov [#allocation7]  }
   0xc   : > { %p6607_p5 = pnand %p4151_p2, %p253_p3  ;;  %s266_s26 = sshll.u32 %s6502_s25, 4  ;;  %s267_s26 = int_to_ptr.vmem [resolvable:$true] %s266_s26 }
   0xd   : > { %s290_s30 = sshll.u32 %s7396_s4, 4  ;;  %s6503_s11 = smov 512   ;;  %s291_s30 = int_to_ptr.hbm [resolvable:$true] %s290_s30 }
   0xe   : > { %p6230_p6 = pneg %p6607_p5  ;;  %s6504_s12 = smov 32  }
   0xf   : > { %s6505_s13 = smov [#allocation10]   ;;  %s6506_s15 = smov 256  }
  0x10   : > { %p6615_p7 = pnand %p6230_p6, %p49_p1  ;;  %s292_s14 = sshll.u32 %s6505_s13, 4  ;;  %s293_s14 = int_to_ptr.vmem [resolvable:$true] %s292_s14 }
  0x11   : > { %s6507_s16 = smov 16   ;;  %s279_s22 = sshll.u32 %s7395_s3, 4  ;;  %s280_s22 = int_to_ptr.hbm [resolvable:$true] %s279_s22 }
  0x12   : > { %6233 = dma.hbm_to_vmem [thread:$0]  (!%p6615_p7), %s265_s23, 8192, %s267_s26, [#allocation8], %s6503_s11, %s6503_s11, %s6504_s12  }
  0x13   : > { %6239 = dma.hbm_to_vmem [thread:$0]  (!%p6615_p7), %s291_s30, 32768, %s293_s14, [#allocation11], %s6506_s15, %s6506_s15, %s6507_s16  }
  0x14   : > { %s6508_s25 = smov [#allocation9]   ;;  %s307_s29 = sshll.u32 %s7398_s6, 4  ;;  %s308_s29 = int_to_ptr.hbm [resolvable:$true] %s307_s29 }
  0x15   : > { %s281_s23 = sshll.u32 %s6508_s25, 4  ;;  %s6509_s30 = smov [#allocation12]   ;;  %s282_s23 = int_to_ptr.vmem [resolvable:$true] %s281_s23 }
  0x16   : > { %6236 = dma.hbm_to_vmem [thread:$0]  (!%p6615_p7), %s280_s22, 128, %s282_s23, [#allocation8]  }
  0x17   : > { %s309_s11 = sshll.u32 %s6509_s30, 4  ;;  %s7403_s12 = smov 128   ;;  %s310_s11 = int_to_ptr.vmem [resolvable:$true] %s309_s11 }
  0x18   : > { %s6511_s13 = smov 8   ;;  %s6640_s14 = sadd.s32 1, %s6500_s20  }
  0x19   : > { %6242 = dma.hbm_to_vmem [thread:$0]  (!%p6615_p7), %s308_s29, 8192, %s310_s11, [#allocation11], %s7403_s12, %s7403_s12, %s6511_s13  }
  0x1a   : > { %s32_s15 = ssub.s32 %s6500_s20, %s6640_s14  ;;  %s35_s16 = sadd.s32 1, %s6496_s19 }
  0x1b   : > { %p33_p8 = scmp.eq.s32.totalorder %s32_s15, 0  ;;  %p42_p9 = scmp.ne.s32.totalorder %s6496_s19, %s6492_s18 }
  0x1c   : > { %p43_p10 = scmp.eq.s32.totalorder %s6500_s20, 0  ;;  %s332_s21 = sand.u32 1, %s6496_s19  }
  0x1d   : > { %s6649_s17 = scalar_select %p33_p8, %s6496_s19, %s35_s16  }
  0x1e   : > { %p44_p11 = por %p43_p10, %p42_p9  ;;  %s5827_s22 = sshll.u32 %s6500_s20, 4 }
  0x1f   : > { %p6251_p12 = scmp.lt.s32.totalorder %s6500_s20, 2  ;;  %s4157_s25 = sshll.u32 %s332_s21, 4 }
  0x20   : > { %s341_s26 = scalar_lea.hbm %s7393_s1, %s5827_s22  ;;  %s336_s29 = scalar_lea.vmem [#allocation5], %s4157_s25 }
  0x21   : > { %s342_s28 = sshll.u32 %s341_s26, 4  ;;  %s344_s30 = sshll.u32 %s336_s29, 4  ;;  %s343_s28 = int_to_ptr.hbm [resolvable:$true] %s342_s28  ;;  %s345_s30 = int_to_ptr.vmem [resolvable:$true] %s344_s30 }
  0x22   : > { %p6657_p13 = pnand %p6251_p12, %p44_p11  ;;  %s333_s15 = scalar_lea.sflag [#allocation6], %s332_s21 }
  0x23   : > { %s6428_s16 = sshra.s32 %s343_s28, 4  ;;  %s6435_s25 = scalar_lea.hbm %s7393_s1, 32  ;;  %s6429_s16 = int_to_ptr.hbm [resolvable:$true] %s6428_s16 }
  0x24   : > { %s6430_s12 = scalar_lea.hbm %s6429_s16, 16  ;;  %p6432_p2 = pneg %p6657_p13 }
  0x25   : > { %p6431_p0 = scmp.ne.s32.totalorder %s6429_s16, %s6430_s12  ;;  %p6436_p7 = scmp.lt.s32.totalorder %s6429_s16, %s7393_s1 }
  0x26   : > { %p6437_p8 = scmp.lt.s32.totalorder %s6435_s25, %s6430_s12 }
  0x27   : > { %p6433_p3 = pnand %p6432_p2, %p6431_p0 }
  0x28   : > { %p6438_p9 = por %p6437_p8, %p6436_p7 }
  0x29   : > { %p6434_p6 = pneg %p6433_p3 }
  0x2b   : > { %p6439_p10 = pnand %p6438_p9, %p6434_p6 }
  0x2d   : > { %6442 = shalt.err (!%p6439_p10)
}
  0x2e   : > { %s7408_s21 = smov 128   ;;  %356 = sbr.rel (%p6607_p5) target bundleno = 927 (0x39f), region = 56 }
  0x2f   : > { %6246 = dma.hbm_to_vmem [thread:$0]  (!%p6657_p13), %s343_s28, 256, %s345_s30, %s333_s15, %s7408_s21, %s7408_s21, %s6511_s13  }
  0x30   : > { %s358_s26 = sand.u32 (!%p6607_p5), 1, %s6492_s18  }
  0x31   : > { %s6677_s29 = sshll.u32 (!%p6607_p5), %s358_s26, 4  ;;  %s359_s16 = scalar_lea.sflag (!%p6607_p5), [#allocation6], %s358_s26 }
  0x32   : > { %s362_s12 = scalar_lea.vmem (!%p6607_p5), [#allocation5], %s6677_s29 }
  0x33   : > { %6475 = dma.done.wait (%p6600_p4), %s359_s16, 256  }
  0x34   : > { %6477 = vsyncadd (%p6600_p4), %s359_s16, 4294967040 }
  0x35   : > { %6479 = dma.done.wait (%p49_p1), [#allocation8], 8320  }
  0x36   : > { %6481 = vsyncadd (%p49_p1), [#allocation8], 4294958976 }
  0x37   : > { %6483 = dma.done.wait (%p49_p1), [#allocation11], 40960  }
  0x38   : > { %6485 = vsyncadd (%p49_p1), [#allocation11], 4294926336  ;;  %v4395_v1 = vld [vmem:[#allocation7 + $0x1c0] sm:$0xf]  ;;  %v5884_v3 = vld [vmem:[#allocation7 + $0x1c4] sm:$0xf] }
  0x39   : > { %v5888_v2 = vld [vmem:[#allocation7 + $0x1dc] sm:$0xf0]  ;;  %v4397_v5 = vld [vmem:[#allocation7 + $0x1e0] sm:$0xf0]  ;;  %v4403_v6 = vld [vmem:[#allocation7 + $0x1c8] sm:$0xf] }
  0x3a   : > { %v4396_v4 = vor.u32 %v5888_v2, %v4395_v1  ;;  %v5889_v7 = vld [vmem:[#allocation7 + $0x1e4] sm:$0xf0]  ;;  %v4400_v8 = vor.u32 %v5884_v3, %v4397_v5  ;;  %v5885_v10 = vld [vmem:[#allocation7 + $0x1cc] sm:$0xf]  ;;  %v4363_v12 = vld [vmem:[#allocation7 + $0x180] sm:$0xf] }
  0x3b   : > { %v4404_v9 = vor.u32 %v5889_v7, %v4403_v6  ;;  %v4405_v11 = vld [vmem:[#allocation7 + $0x1e8] sm:$0xf0]  ;;  %v5880_v14 = vld [vmem:[#allocation7 + $0x19c] sm:$0xf0]  ;;  %v5876_v15 = vld [vmem:[#allocation7 + $0x184] sm:$0xf] }
  0x3c   : > { %832 = vmatpush.bf16.msra.mxu0 %v4396_v4  ;;  %v4408_v13 = vor.u32 %v5885_v10, %v4405_v11  ;;  %v4365_v16 = vld [vmem:[#allocation7 + $0x1a0] sm:$0xf0]  ;;  %846 = vmatpush.bf16.msra.mxu1 %v4400_v8  ;;  %v4364_v17 = vor.u32 %v5880_v14, %v4363_v12  ;;  %v4371_v19 = vld [vmem:[#allocation7 + $0x188] sm:$0xf]  ;;  %v5877_v21 = vld [vmem:[#allocation7 + $0x18c] sm:$0xf] }
  0x3d   : > { %860 = vmatpush.bf16.msra.mxu2 %v4404_v9  ;;  %v4368_v18 = vor.u32 %v5876_v15, %v4365_v16  ;;  %v5881_v20 = vld [vmem:[#allocation7 + $0x1a4] sm:$0xf0]  ;;  %v4373_v23 = vld [vmem:[#allocation7 + $0x1a8] sm:$0xf0]  ;;  %v4331_v24 = vld [vmem:[#allocation7 + $0x140] sm:$0xf] }
  0x3e   : > { %874 = vmatpush.bf16.msra.mxu3 %v4408_v13  ;;  %v4372_v22 = vor.u32 %v5881_v20, %v4371_v19  ;;  %v5872_v25 = vld [vmem:[#allocation7 + $0x15c] sm:$0xf0]  ;;  %v4376_v26 = vor.u32 %v5877_v21, %v4373_v23  ;;  %v5868_v27 = vld [vmem:[#allocation7 + $0x144] sm:$0xf]  ;;  %v4339_v29 = vld [vmem:[#allocation7 + $0x148] sm:$0xf] }
  0x3f   : > { %v4333_v28 = vld [vmem:[#allocation7 + $0x160] sm:$0xf0]  ;;  %v4332_v30 = vor.u32 %v5872_v25, %v4331_v24  ;;  %v5873_v31 = vld [vmem:[#allocation7 + $0x164] sm:$0xf0]  ;;  %v5869_v32 = vld [vmem:[#allocation7 + $0x14c] sm:$0xf] }
  0x40   : > { %833 = vmatpush.bf16.msra.mxu0 %v4364_v17  ;;  %v4341_v33 = vld [vmem:[#allocation7 + $0x168] sm:$0xf0]  ;;  %847 = vmatpush.bf16.msra.mxu1 %v4368_v18  ;;  %v4336_v34 = vor.u32 %v5868_v27, %v4333_v28  ;;  %v4340_v35 = vor.u32 %v5873_v31, %v4339_v29  ;;  %v4299_v36 = vld [vmem:[#allocation7 + $0x100] sm:$0xf]  ;;  %v5860_v38 = vld [vmem:[#allocation7 + $0x104] sm:$0xf] }
  0x41   : > { %861 = vmatpush.bf16.msra.mxu2 %v4372_v22  ;;  %v5864_v37 = vld [vmem:[#allocation7 + $0x11c] sm:$0xf0]  ;;  %v4344_v39 = vor.u32 %v5869_v32, %v4341_v33  ;;  %v4301_v40 = vld [vmem:[#allocation7 + $0x120] sm:$0xf0]  ;;  %v4307_v41 = vld [vmem:[#allocation7 + $0x108] sm:$0xf] }
  0x42   : > { %875 = vmatpush.bf16.msra.mxu3 %v4376_v26  ;;  %v5865_v42 = vld [vmem:[#allocation7 + $0x124] sm:$0xf0]  ;;  %v5861_v43 = vld [vmem:[#allocation7 + $0x10c] sm:$0xf]  ;;  %v4300_v45 = vor.u32 %v5864_v37, %v4299_v36  ;;  %v4304_v46 = vor.u32 %v5860_v38, %v4301_v40  ;;  %v4267_v48 = vld [vmem:[#allocation7 + $0xc0] sm:$0xf] }
  0x43   : > { %v4309_v44 = vld [vmem:[#allocation7 + $0x128] sm:$0xf0]  ;;  %v4308_v47 = vor.u32 %v5865_v42, %v4307_v41  ;;  %v5856_v49 = vld [vmem:[#allocation7 + $0xdc] sm:$0xf0]  ;;  %v5852_v50 = vld [vmem:[#allocation7 + $0xc4] sm:$0xf] }
  0x44   : > { %834 = vmatpush.bf16.msra.mxu0 %v4332_v30  ;;  %848 = vmatpush.bf16.msra.mxu1 %v4336_v34  ;;  %v4312_v51 = vor.u32 %v5861_v43, %v4309_v44  ;;  %v4269_v52 = vld [vmem:[#allocation7 + $0xe0] sm:$0xf0]  ;;  %v4275_v53 = vld [vmem:[#allocation7 + $0xc8] sm:$0xf]  ;;  %v5853_v55 = vld [vmem:[#allocation7 + $0xcc] sm:$0xf]  ;;  %v4268_v57 = vor.u32 %v5856_v49, %v4267_v48 }
  0x45   : > { %862 = vmatpush.bf16.msra.mxu2 %v4340_v35  ;;  %v5857_v54 = vld [vmem:[#allocation7 + $0xe4] sm:$0xf0]  ;;  %v4277_v56 = vld [vmem:[#allocation7 + $0xe8] sm:$0xf0]  ;;  %v4272_v58 = vor.u32 %v5852_v50, %v4269_v52  ;;  %v4235_v60 = vld [vmem:[#allocation7 + $0x80] sm:$0xf] }
  0x46   : > { %876 = vmatpush.bf16.msra.mxu3 %v4344_v39  ;;  %v4276_v59 = vor.u32 %v5857_v54, %v4275_v53  ;;  %v5848_v61 = vld [vmem:[#allocation7 + $0x9c] sm:$0xf0]  ;;  %v5844_v62 = vld [vmem:[#allocation7 + $0x84] sm:$0xf]  ;;  %v4280_v63 = vor.u32 %v5853_v55, %v4277_v56  ;;  %v4243_v1 = vld [vmem:[#allocation7 + $0x88] sm:$0xf] }
  0x47   : > { %v4237_v0 = vld [vmem:[#allocation7 + $0xa0] sm:$0xf0]  ;;  %v5849_v2 = vld [vmem:[#allocation7 + $0xa4] sm:$0xf0]  ;;  %v5845_v3 = vld [vmem:[#allocation7 + $0x8c] sm:$0xf]  ;;  %v4236_v5 = vor.u32 %v5848_v61, %v4235_v60 }
  0x48   : > { %835 = vmatpush.bf16.msra.mxu0 %v4300_v45  ;;  %849 = vmatpush.bf16.msra.mxu1 %v4304_v46  ;;  %v4245_v4 = vld [vmem:[#allocation7 + $0xa8] sm:$0xf0]  ;;  %v4240_v6 = vor.u32 %v5844_v62, %v4237_v0  ;;  %v4244_v7 = vor.u32 %v5849_v2, %v4243_v1  ;;  %v4203_v8 = vld [vmem:[#allocation7 + $0x40] sm:$0xf]  ;;  %v5836_v10 = vld [vmem:[#allocation7 + $0x44] sm:$0xf] }
  0x49   : > { %863 = vmatpush.bf16.msra.mxu2 %v4308_v47  ;;  %v5840_v9 = vld [vmem:[#allocation7 + $0x5c] sm:$0xf0]  ;;  %v4248_v11 = vor.u32 %v5845_v3, %v4245_v4  ;;  %v4205_v12 = vld [vmem:[#allocation7 + $0x60] sm:$0xf0]  ;;  %v4211_v13 = vld [vmem:[#allocation7 + $0x48] sm:$0xf] }
  0x4a   : > { %877 = vmatpush.bf16.msra.mxu3 %v4312_v51  ;;  %v5841_v14 = vld [vmem:[#allocation7 + $0x64] sm:$0xf0]  ;;  %v5837_v15 = vld [vmem:[#allocation7 + $0x4c] sm:$0xf]  ;;  %v4204_v17 = vor.u32 %v5840_v9, %v4203_v8  ;;  %v4171_v18 = vld [vmem:[#allocation7] sm:$0xf]  ;;  %v4208_v21 = vor.u32 %v5836_v10, %v4205_v12 }
  0x4b   : > { %v4213_v16 = vld [vmem:[#allocation7 + $0x68] sm:$0xf0]  ;;  %v5832_v19 = vld [vmem:[#allocation7 + $0x1c] sm:$0xf0]  ;;  %v5828_v20 = vld [vmem:[#allocation7 + $0x4] sm:$0xf]  ;;  %v4212_v22 = vor.u32 %v5841_v14, %v4211_v13 }
  0x4c   : > { %836 = vmatpush.bf16.msra.mxu0 %v4268_v57  ;;  %850 = vmatpush.bf16.msra.mxu1 %v4272_v58  ;;  %v4173_v23 = vld [vmem:[#allocation7 + $0x20] sm:$0xf0]  ;;  %v4179_v24 = vld [vmem:[#allocation7 + $0x8] sm:$0xf]  ;;  %v4216_v26 = vor.u32 %v5837_v15, %v4213_v16  ;;  %v5829_v27 = vld [vmem:[#allocation7 + $0xc] sm:$0xf]  ;;  %v4172_v33 = vor.u32 %v5832_v19, %v4171_v18 }
  0x4d   : > { %864 = vmatpush.bf16.msra.mxu2 %v4276_v59  ;;  %v5833_v25 = vld [vmem:[#allocation7 + $0x24] sm:$0xf0]  ;;  %v4181_v28 = vld [vmem:[#allocation7 + $0x28] sm:$0xf0]  ;;  %v4411_v29 = vld [vmem:[#allocation7 + $0x1d0] sm:$0xf]  ;;  %v4176_v37 = vor.u32 %v5828_v20, %v4173_v23 }
  0x4e   : > { %878 = vmatpush.bf16.msra.mxu3 %v4280_v63  ;;  %v5890_v30 = vld [vmem:[#allocation7 + $0x1ec] sm:$0xf0]  ;;  %v5886_v31 = vld [vmem:[#allocation7 + $0x1d4] sm:$0xf]  ;;  %v4419_v34 = vld [vmem:[#allocation7 + $0x1d8] sm:$0xf]  ;;  %v4180_v38 = vor.u32 %v5833_v25, %v4179_v24  ;;  %v4184_v42 = vor.u32 %v5829_v27, %v4181_v28 }
  0x4f   : > { %v4413_v32 = vld [vmem:[#allocation7 + $0x1f0] sm:$0xf0]  ;;  %v5891_v35 = vld [vmem:[#allocation7 + $0x1f4] sm:$0xf0]  ;;  %v5887_v36 = vld [vmem:[#allocation7 + $0x1dc] sm:$0xf]  ;;  %v4412_v43 = vor.u32 %v5890_v30, %v4411_v29 }
  0x50   : > { %837 = vmatpush.bf16.msra.mxu0 %v4236_v5  ;;  %851 = vmatpush.bf16.msra.mxu1 %v4240_v6  ;;  %v4421_v39 = vld [vmem:[#allocation7 + $0x1f8] sm:$0xf0]  ;;  %v427_v40 = vld [vmem:[%s362_s12] sm:$0xff]  ;;  %v4416_v44 = vor.u32 %v5886_v31, %v4413_v32  ;;  %v4420_v45 = vor.u32 %v5891_v35, %v4419_v34  ;;  %v4387_v52 = vld [vmem:[#allocation7 + $0x198] sm:$0xf]  ;;  %s4168_s9 = sshll.u32 %s6592_s0, 4 }
  0x51   : > { %865 = vmatpush.bf16.msra.mxu2 %v4244_v7  ;;  %v428_v41 = vld [vmem:[%s362_s12 + $0x8] sm:$0xff]  ;;  %v4379_v46 = vld [vmem:[#allocation7 + $0x190] sm:$0xf]  ;;  %v5878_v48 = vld [vmem:[#allocation7 + $0x194] sm:$0xf]  ;;  %v4424_v49 = vor.u32 %v5887_v36, %v4421_v39  ;;  %s425_s24 = sld [smem:[#allocation3]] }
  0x52   : > { %879 = vmatpush.bf16.msra.mxu3 %v4248_v11  ;;  %v5882_v47 = vld [vmem:[#allocation7 + $0x1ac] sm:$0xf0]  ;;  %v6696_v50 = vpack.c.bf16 %v428_v41, %v427_v40  ;;  %v4381_v51 = vld [vmem:[#allocation7 + $0x1b0] sm:$0xf0]  ;;  %v5883_v53 = vld [vmem:[#allocation7 + $0x1b4] sm:$0xf0] }
  0x53   : > { %v5879_v54 = vld [vmem:[#allocation7 + $0x19c] sm:$0xf]  ;;  %v4380_v56 = vor.u32 %v5882_v47, %v4379_v46  ;;  %v4384_v57 = vor.u32 %v5878_v48, %v4381_v51  ;;  %v4388_v58 = vor.u32 %v5883_v53, %v4387_v52  ;;  %v4347_v59 = vld [vmem:[#allocation7 + $0x150] sm:$0xf]  ;;  %v5870_v61 = vld [vmem:[#allocation7 + $0x154] sm:$0xf] }
  0x54   : > { %838 = vmatpush.bf16.msra.mxu0 %v4204_v17  ;;  %852 = vmatpush.bf16.msra.mxu1 %v4208_v21  ;;  %v4389_v55 = vld [vmem:[#allocation7 + $0x1b8] sm:$0xf0]  ;;  %v5874_v60 = vld [vmem:[#allocation7 + $0x16c] sm:$0xf0]  ;;  %v4349_v63 = vld [vmem:[#allocation7 + $0x170] sm:$0xf0] }
  0x55   : > { %866 = vmatpush.bf16.msra.mxu2 %v4212_v22  ;;  %v4392_v62 = vor.u32 %v5879_v54, %v4389_v55  ;;  %v4355_v0 = vld [vmem:[#allocation7 + $0x158] sm:$0xf]  ;;  %v5871_v2 = vld [vmem:[#allocation7 + $0x15c] sm:$0xf]  ;;  %v4348_v4 = vor.u32 %v5874_v60, %v4347_v59  ;;  %v4352_v5 = vor.u32 %v5870_v61, %v4349_v63  ;;  %v4315_v7 = vld [vmem:[#allocation7 + $0x110] sm:$0xf] }
  0x56   : > { %880 = vmatpush.bf16.msra.mxu3 %v4216_v26  ;;  %v5875_v1 = vld [vmem:[#allocation7 + $0x174] sm:$0xf0]  ;;  %v4357_v3 = vld [vmem:[#allocation7 + $0x178] sm:$0xf0]  ;;  %v5866_v8 = vld [vmem:[#allocation7 + $0x12c] sm:$0xf0] }
  0x57   : > { %v4356_v6 = vor.u32 %v5875_v1, %v4355_v0  ;;  %v5862_v9 = vld [vmem:[#allocation7 + $0x114] sm:$0xf]  ;;  %v4360_v10 = vor.u32 %v5871_v2, %v4357_v3  ;;  %v4323_v12 = vld [vmem:[#allocation7 + $0x118] sm:$0xf]  ;;  %v5863_v14 = vld [vmem:[#allocation7 + $0x11c] sm:$0xf]  ;;  %v4316_v16 = vor.u32 %v5866_v8, %v4315_v7 }
  0x58   : > { %839 = vmatpush.bf16.msra.mxu0 %v4172_v33  ;;  %853 = vmatpush.bf16.msra.mxu1 %v4176_v37  ;;  %v4317_v11 = vld [vmem:[#allocation7 + $0x130] sm:$0xf0]  ;;  %v5867_v13 = vld [vmem:[#allocation7 + $0x134] sm:$0xf0]  ;;  %v4325_v15 = vld [vmem:[#allocation7 + $0x138] sm:$0xf0] }
  0x59   : > { %867 = vmatpush.bf16.msra.mxu2 %v4180_v38  ;;  %v4320_v17 = vor.u32 %v5862_v9, %v4317_v11  ;;  %v4324_v18 = vor.u32 %v5867_v13, %v4323_v12  ;;  %v4283_v19 = vld [vmem:[#allocation7 + $0xd0] sm:$0xf]  ;;  %v5854_v21 = vld [vmem:[#allocation7 + $0xd4] sm:$0xf]  ;;  %v4328_v22 = vor.u32 %v5863_v14, %v4325_v15  ;;  %v4291_v24 = vld [vmem:[#allocation7 + $0xd8] sm:$0xf] }
  0x5a   : > { %881 = vmatpush.bf16.msra.mxu3 %v4184_v42  ;;  %v5858_v20 = vld [vmem:[#allocation7 + $0xec] sm:$0xf0]  ;;  %v4285_v23 = vld [vmem:[#allocation7 + $0xf0] sm:$0xf0]  ;;  %v5859_v25 = vld [vmem:[#allocation7 + $0xf4] sm:$0xf0] }
  0x5b   : > { %840 = vmatmul.bf16.vlgmr.msra.gmra.mxu0 %v6696_v50  ;;  %854 = vmatmul.bf16.vlgmr.msra.gmra.mxu1 %v6696_v50  ;;  %v5855_v26 = vld [vmem:[#allocation7 + $0xdc] sm:$0xf]  ;;  %v4284_v28 = vor.u32 %v5858_v20, %v4283_v19  ;;  %v4288_v29 = vor.u32 %v5854_v21, %v4285_v23  ;;  %v4292_v30 = vor.u32 %v5859_v25, %v4291_v24  ;;  %v4251_v31 = vld [vmem:[#allocation7 + $0x90] sm:$0xf]  ;;  %v5846_v33 = vld [vmem:[#allocation7 + $0x94] sm:$0xf] }
  0x5c   : > { %888 = vmatpush.bf16.msrb.mxu0 %v4412_v43  ;;  %902 = vmatpush.bf16.msrb.mxu1 %v4416_v44  ;;  %v4293_v27 = vld [vmem:[#allocation7 + $0xf8] sm:$0xf0]  ;;  %v5850_v32 = vld [vmem:[#allocation7 + $0xac] sm:$0xf0]  ;;  %v4253_v35 = vld [vmem:[#allocation7 + $0xb0] sm:$0xf0] }
  0x5d   : > { %916 = vmatpush.bf16.msrb.mxu2 %v4420_v45  ;;  %882 = vmatmul.bf16.vlgmr.msra.gmra.mxu3 %v6696_v50  ;;  %v4296_v34 = vor.u32 %v5855_v26, %v4293_v27  ;;  %v4259_v36 = vld [vmem:[#allocation7 + $0x98] sm:$0xf]  ;;  %v5847_v38 = vld [vmem:[#allocation7 + $0x9c] sm:$0xf]  ;;  %v4252_v40 = vor.u32 %v5850_v32, %v4251_v31  ;;  %v4256_v41 = vor.u32 %v5846_v33, %v4253_v35  ;;  %v4219_v43 = vld [vmem:[#allocation7 + $0x50] sm:$0xf] }
  0x5e   : > { %930 = vmatpush.bf16.msrb.mxu3 %v4424_v49  ;;  %868 = vmatmul.bf16.vlgmr.msra.gmra.mxu2 %v6696_v50  ;;  %v5851_v37 = vld [vmem:[#allocation7 + $0xb4] sm:$0xf0]  ;;  %v4261_v39 = vld [vmem:[#allocation7 + $0xb8] sm:$0xf0]  ;;  %v5842_v44 = vld [vmem:[#allocation7 + $0x6c] sm:$0xf0] }
  0x5f   : > { %v4260_v42 = vor.u32 %v5851_v37, %v4259_v36  ;;  %v5838_v45 = vld [vmem:[#allocation7 + $0x54] sm:$0xf]  ;;  %v4264_v46 = vor.u32 %v5847_v38, %v4261_v39  ;;  %v4227_v48 = vld [vmem:[#allocation7 + $0x58] sm:$0xf]  ;;  %v5839_v51 = vld [vmem:[#allocation7 + $0x5c] sm:$0xf]  ;;  %v4220_v53 = vor.u32 %v5842_v44, %v4219_v43 }
  0x60   : > { %889 = vmatpush.bf16.msrb.mxu0 %v4380_v56  ;;  %903 = vmatpush.bf16.msrb.mxu1 %v4384_v57  ;;  %v4221_v47 = vld [vmem:[#allocation7 + $0x70] sm:$0xf0]  ;;  %v5843_v49 = vld [vmem:[#allocation7 + $0x74] sm:$0xf0]  ;;  %v4229_v52 = vld [vmem:[#allocation7 + $0x78] sm:$0xf0] }
  0x61   : > { %917 = vmatpush.bf16.msrb.mxu2 %v4388_v58  ;;  %v4187_v54 = vld [vmem:[#allocation7 + $0x10] sm:$0xf]  ;;  %v4224_v55 = vor.u32 %v5838_v45, %v4221_v47  ;;  %v4228_v56 = vor.u32 %v5843_v49, %v4227_v48  ;;  %v5830_v58 = vld [vmem:[#allocation7 + $0x14] sm:$0xf]  ;;  %v4232_v60 = vor.u32 %v5839_v51, %v4229_v52  ;;  %v4195_v61 = vld [vmem:[#allocation7 + $0x18] sm:$0xf] }
  0x62   : > { %931 = vmatpush.bf16.msrb.mxu3 %v4392_v62  ;;  %v5834_v57 = vld [vmem:[#allocation7 + $0x2c] sm:$0xf0]  ;;  %v4189_v59 = vld [vmem:[#allocation7 + $0x30] sm:$0xf0]  ;;  %v5835_v62 = vld [vmem:[#allocation7 + $0x34] sm:$0xf0] }
  0x63   : > { %v5831_v63 = vld [vmem:[#allocation7 + $0x1c] sm:$0xf]  ;;  %v4539_v1 = vld [vmem:[#allocation10 + $0xe0] sm:$0xf]  ;;  %v5922_v2 = vld [vmem:[#allocation10 + $0xec] sm:$0xf0]  ;;  %v4188_v3 = vor.u32 %v5834_v57, %v4187_v54  ;;  %v4196_v7 = vor.u32 %v5835_v62, %v4195_v61 }
  0x64   : > { %890 = vmatpush.bf16.msrb.mxu0 %v4348_v4  ;;  %904 = vmatpush.bf16.msrb.mxu1 %v4352_v5  ;;  %v4197_v0 = vld [vmem:[#allocation7 + $0x38] sm:$0xf0]  ;;  %v4667_v4 = vld [vmem:[#allocation10 + $0x1e0] sm:$0xf]  ;;  %v5954_v5 = vld [vmem:[#allocation10 + $0x1ec] sm:$0xf0]  ;;  %v4540_v9 = vor.u32 %v5922_v2, %v4539_v1 }
  0x65   : > { %918 = vmatpush.bf16.msrb.mxu2 %v4356_v6  ;;  %v4192_v6 = vor.u32 %v5830_v58, %v4189_v59  ;;  %v4200_v8 = vor.u32 %v5831_v63, %v4197_v0  ;;  %v4795_v11 = vld [vmem:[#allocation10 + $0x2e0] sm:$0xf]  ;;  %v5986_v12 = vld [vmem:[#allocation10 + $0x2ec] sm:$0xf0]  ;;  %v4668_v13 = vor.u32 %v5954_v5, %v4667_v4  ;;  %s4166_s27 = sshll.u32 %s6592_s0, 1 }
  0x66   : > { %932 = vmatpush.bf16.msrb.mxu3 %v4360_v10  ;;  %v4523_v10 = vld [vmem:[#allocation10 + $0xc0] sm:$0xf]  ;;  %v5918_v14 = vld [vmem:[#allocation10 + $0xcc] sm:$0xf0]  ;;  %v4796_v19 = vor.u32 %v5986_v12, %v4795_v11  ;;  %p420_p1 = scmp.lt.s32.totalorder %s4166_s27, 3 }
  0x67   : > { %v4923_v15 = vld [vmem:[#allocation10 + $0x3e0] sm:$0xf]  ;;  %v4524_v20 = vor.u32 %v5918_v14, %v4523_v10  ;;  %v5982_v24 = vld [vmem:[#allocation10 + $0x2cc] sm:$0xf0] }
  0x68   : > { %891 = vmatpush.bf16.msrb.mxu0 %v4316_v16  ;;  %905 = vmatpush.bf16.msrb.mxu1 %v4320_v17  ;;  %v6018_v16 = vld [vmem:[#allocation10 + $0x3ec] sm:$0xf0]  ;;  %v4651_v17 = vld [vmem:[#allocation10 + $0x1c0] sm:$0xf]  ;;  %s7461_s27 = smov (!%p420_p1, %s4166_s27), 3 }
  0x69   : > { %919 = vmatpush.bf16.msrb.mxu2 %v4324_v18  ;;  %v5950_v18 = vld [vmem:[#allocation10 + $0x1cc] sm:$0xf0]  ;;  %v4924_v21 = vor.u32 %v6018_v16, %v4923_v15  ;;  %v4779_v23 = vld [vmem:[#allocation10 + $0x2c0] sm:$0xf]  ;;  %s4167_s23 = sshll.u32 %s7461_s27, 3 }
  0x6a   : > { %933 = vmatpush.bf16.msrb.mxu3 %v4328_v22  ;;  %v4507_v22 = vld [vmem:[#allocation10 + $0xa0] sm:$0xf]  ;;  %v4652_v25 = vor.u32 %v5950_v18, %v4651_v17  ;;  %v5914_v26 = vld [vmem:[#allocation10 + $0xac] sm:$0xf0]  ;;  %v4780_v31 = vor.u32 %v5982_v24, %v4779_v23  ;;  %s423_s0 = scalar_lea.vmem %s7402_s10, %s4167_s23 }
  0x6b   : > { %v4907_v27 = vld [vmem:[#allocation10 + $0x3c0] sm:$0xf]  ;;  %v4508_v32 = vor.u32 %v5914_v26, %v4507_v22  ;;  %v5978_v36 = vld [vmem:[#allocation10 + $0x2ac] sm:$0xf0] }
  0x6c   : > { %892 = vmatpush.bf16.msrb.mxu0 %v4284_v28  ;;  %906 = vmatpush.bf16.msrb.mxu1 %v4288_v29  ;;  %v6014_v28 = vld [vmem:[#allocation10 + $0x3cc] sm:$0xf0]  ;;  %v4635_v29 = vld [vmem:[#allocation10 + $0x1a0] sm:$0xf] }
  0x6d   : > { %920 = vmatpush.bf16.msrb.mxu2 %v4292_v30  ;;  %v5946_v30 = vld [vmem:[#allocation10 + $0x1ac] sm:$0xf0]  ;;  %v4908_v33 = vor.u32 %v6014_v28, %v4907_v27  ;;  %v4763_v35 = vld [vmem:[#allocation10 + $0x2a0] sm:$0xf] }
  0x6e   : > { %934 = vmatpush.bf16.msrb.mxu3 %v4296_v34  ;;  %v4491_v34 = vld [vmem:[#allocation10 + $0x80] sm:$0xf]  ;;  %v4636_v37 = vor.u32 %v5946_v30, %v4635_v29  ;;  %v5910_v38 = vld [vmem:[#allocation10 + $0x8c] sm:$0xf0]  ;;  %v4764_v43 = vor.u32 %v5978_v36, %v4763_v35 }
  0x6f   : > { %v4891_v39 = vld [vmem:[#allocation10 + $0x3a0] sm:$0xf]  ;;  %v5974_v47 = vld [vmem:[#allocation10 + $0x28c] sm:$0xf0] }
  0x70   : > { %893 = vmatpush.bf16.msrb.mxu0 %v4252_v40  ;;  %907 = vmatpush.bf16.msrb.mxu1 %v4256_v41  ;;  %v6010_v40 = vld [vmem:[#allocation10 + $0x3ac] sm:$0xf0]  ;;  %v4619_v41 = vld [vmem:[#allocation10 + $0x180] sm:$0xf] }
  0x71   : > { %921 = vmatpush.bf16.msrb.mxu2 %v4260_v42  ;;  %v5942_v42 = vld [vmem:[#allocation10 + $0x18c] sm:$0xf0]  ;;  %v4892_v44 = vor.u32 %v6010_v40, %v4891_v39  ;;  %v4475_v45 = vld [vmem:[#allocation10 + $0x60] sm:$0xf] }
  0x72   : > { %935 = vmatpush.bf16.msrb.mxu3 %v4264_v46  ;;  %v4747_v46 = vld [vmem:[#allocation10 + $0x280] sm:$0xf]  ;;  %v4620_v48 = vor.u32 %v5942_v42, %v4619_v41  ;;  %v5906_v49 = vld [vmem:[#allocation10 + $0x6c] sm:$0xf0] }
  0x73   : > { %v4875_v51 = vld [vmem:[#allocation10 + $0x380] sm:$0xf]  ;;  %v6006_v52 = vld [vmem:[#allocation10 + $0x38c] sm:$0xf0] }
  0x74   : > { %894 = vmatpush.bf16.msrb.mxu0 %v4220_v53  ;;  %908 = vmatpush.bf16.msrb.mxu1 %v4224_v55  ;;  %v4603_v53 = vld [vmem:[#allocation10 + $0x160] sm:$0xf]  ;;  %v5938_v54 = vld [vmem:[#allocation10 + $0x16c] sm:$0xf0]  ;;  %v4748_v55 = vor.u32 %v5974_v47, %v4747_v46  ;;  %v4876_v57 = vor.u32 %v6006_v52, %v4875_v51 }
  0x75   : > { %922 = vmatpush.bf16.msrb.mxu2 %v4228_v56  ;;  %v4476_v56 = vor.u32 %v5906_v49, %v4475_v45  ;;  %v4459_v58 = vld [vmem:[#allocation10 + $0x40] sm:$0xf]  ;;  %v4604_v61 = vor.u32 %v5938_v54, %v4603_v53  ;;  %v5902_v62 = vld [vmem:[#allocation10 + $0x4c] sm:$0xf0] }
  0x76   : > { %936 = vmatpush.bf16.msrb.mxu3 %v4232_v60  ;;  %v4731_v59 = vld [vmem:[#allocation10 + $0x260] sm:$0xf]  ;;  %v5970_v60 = vld [vmem:[#allocation10 + $0x26c] sm:$0xf0]  ;;  %v4460_v4 = vor.u32 %v5902_v62, %v4459_v58 }
  0x77   : > { %v4859_v63 = vld [vmem:[#allocation10 + $0x360] sm:$0xf]  ;;  %v6002_v0 = vld [vmem:[#allocation10 + $0x36c] sm:$0xf0] }
  0x78   : > { %895 = vmatpush.bf16.msrb.mxu0 %v4188_v3  ;;  %909 = vmatpush.bf16.msrb.mxu1 %v4192_v6  ;;  %v4587_v1 = vld [vmem:[#allocation10 + $0x140] sm:$0xf]  ;;  %v5934_v2 = vld [vmem:[#allocation10 + $0x14c] sm:$0xf0]  ;;  %v4732_v3 = vor.u32 %v5970_v60, %v4731_v59  ;;  %v4860_v5 = vor.u32 %v6002_v0, %v4859_v63  ;;  %v979_v0 = vstv %s4168_s9 }
  0x79   : > { %923 = vmatpush.bf16.msrb.mxu2 %v4196_v7  ;;  %v4443_v6 = vld [vmem:[#allocation10 + $0x20] sm:$0xf]  ;;  %v5898_v10 = vld [vmem:[#allocation10 + $0x2c] sm:$0xf0] }
  0x7a   : > { %937 = vmatpush.bf16.msrb.mxu3 %v4200_v8  ;;  %v4715_v7 = vld [vmem:[#allocation10 + $0x240] sm:$0xf]  ;;  %v5966_v8 = vld [vmem:[#allocation10 + $0x24c] sm:$0xf0]  ;;  %v4444_v17 = vor.u32 %v5898_v10, %v4443_v6 }
  0x7b   : > { %896 = vmatmul.bf16.vlgmr.msrb.gmra.mxu0 %v6696_v50  ;;  %910 = vmatmul.bf16.vlgmr.msrb.gmra.mxu1 %v6696_v50  ;;  %v4843_v11 = vld [vmem:[#allocation10 + $0x340] sm:$0xf]  ;;  %v5998_v12 = vld [vmem:[#allocation10 + $0x34c] sm:$0xf0]  ;;  %v4716_v15 = vor.u32 %v5966_v8, %v4715_v7 }
  0x7c   : > { %2804 = vmatpush.bf16.msra.mxu0 %v4540_v9  ;;  %2818 = vmatpush.bf16.msra.mxu1 %v4668_v13  ;;  %v4588_v9 = vor.u32 %v5934_v2, %v4587_v1  ;;  %v4571_v13 = vld [vmem:[#allocation10 + $0x120] sm:$0xf]  ;;  %v5930_v14 = vld [vmem:[#allocation10 + $0x12c] sm:$0xf0]  ;;  %v4844_v18 = vor.u32 %v5998_v12, %v4843_v11 }
  0x7d   : > { %924 = vmatmul.bf16.vlgmr.msrb.gmra.mxu2 %v6696_v50  ;;  %938 = vmatmul.bf16.vlgmr.msrb.gmra.mxu3 %v6696_v50  ;;  %v4492_v50 = vor.u32 %v5910_v38, %v4491_v34  ;;  %v4427_v16 = vld [vmem:[#allocation10] sm:$0xf]  ;;  %v4572_v22 = vor.u32 %v5930_v14, %v4571_v13  ;;  %v5926_v26 = vld [vmem:[#allocation10 + $0x10c] sm:$0xf0]  ;;  %v6730_v13 = vstv %s425_s24 }
  0x7e   : > { %2832 = vmatpush.bf16.msra.mxu2 %v4796_v19  ;;  %2846 = vmatpush.bf16.msra.mxu3 %v4924_v21  ;;  %v5894_v19 = vld [vmem:[#allocation10 + $0xc] sm:$0xf0]  ;;  %v4555_v23 = vld [vmem:[#allocation10 + $0x100] sm:$0xf] }
  0x7f   : > { %v5962_v21 = vld [vmem:[#allocation10 + $0x22c] sm:$0xf0]  ;;  %v4827_v24 = vld [vmem:[#allocation10 + $0x320] sm:$0xf]  ;;  %v4556_v38 = vor.u32 %v5926_v26, %v4555_v23 }
  0x80   : > { %2805 = vmatpush.bf16.msra.mxu0 %v4524_v20  ;;  %2819 = vmatpush.bf16.msra.mxu1 %v4652_v25  ;;  %v4699_v20 = vld [vmem:[#allocation10 + $0x220] sm:$0xf]  ;;  %v5994_v25 = vld [vmem:[#allocation10 + $0x32c] sm:$0xf0] }
  0x81   : > { %v5051_v27 = vld [vmem:[#allocation10 + $0x4e0] sm:$0xf]  ;;  %v6050_v28 = vld [vmem:[#allocation10 + $0x4ec] sm:$0xf0] }
  0x82   : > { %2833 = vmatpush.bf16.msra.mxu2 %v4780_v31  ;;  %2847 = vmatpush.bf16.msra.mxu3 %v4908_v33  ;;  %v5179_v29 = vld [vmem:[#allocation10 + $0x5e0] sm:$0xf]  ;;  %v6082_v30 = vld [vmem:[#allocation10 + $0x5ec] sm:$0xf0]  ;;  %v4700_v31 = vor.u32 %v5962_v21, %v4699_v20  ;;  %v4828_v33 = vor.u32 %v5994_v25, %v4827_v24  ;;  %v5052_v39 = vor.u32 %v6050_v28, %v5051_v27 }
  0x83   : > { %v5035_v34 = vld [vmem:[#allocation10 + $0x4c0] sm:$0xf]  ;;  %v5958_v36 = vld [vmem:[#allocation10 + $0x20c] sm:$0xf0] }
  0x84   : > { %2806 = vmatpush.bf16.msra.mxu0 %v4508_v32  ;;  %2820 = vmatpush.bf16.msra.mxu1 %v4636_v37  ;;  %v4428_v32 = vor.u32 %v5894_v19, %v4427_v16  ;;  %v4683_v35 = vld [vmem:[#allocation10 + $0x200] sm:$0xf]  ;;  %v5990_v40 = vld [vmem:[#allocation10 + $0x30c] sm:$0xf0] }
  0x85   : > { %v4811_v37 = vld [vmem:[#allocation10 + $0x300] sm:$0xf]  ;;  %v6114_v42 = vld [vmem:[#allocation10 + $0x6ec] sm:$0xf0] }
  0x86   : > { %2834 = vmatpush.bf16.msra.mxu2 %v4764_v43  ;;  %2848 = vmatpush.bf16.msra.mxu3 %v4892_v44  ;;  %v5307_v41 = vld [vmem:[#allocation10 + $0x6e0] sm:$0xf]  ;;  %v5180_v43 = vor.u32 %v6082_v30, %v5179_v29  ;;  %v6146_v45 = vld [vmem:[#allocation10 + $0x7ec] sm:$0xf0]  ;;  %v4812_v49 = vor.u32 %v5990_v40, %v4811_v37 }
  0x87   : > { %v5435_v44 = vld [vmem:[#allocation10 + $0x7e0] sm:$0xf]  ;;  %v6078_v47 = vld [vmem:[#allocation10 + $0x5cc] sm:$0xf0]  ;;  %v5308_v51 = vor.u32 %v6114_v42, %v5307_v41 }
  0x88   : > { %2807 = vmatpush.bf16.msra.mxu0 %v4492_v50  ;;  %2821 = vmatpush.bf16.msra.mxu1 %v4620_v48  ;;  %v6046_v50 = vld [vmem:[#allocation10 + $0x4cc] sm:$0xf0]  ;;  %v5163_v46 = vld [vmem:[#allocation10 + $0x5c0] sm:$0xf]  ;;  %v4684_v48 = vor.u32 %v5958_v36, %v4683_v35  ;;  %v5436_v53 = vor.u32 %v6146_v45, %v5435_v44 }
  0x89   : > { %v5036_v52 = vor.u32 %v6046_v50, %v5035_v34  ;;  %v5164_v54 = vor.u32 %v6078_v47, %v5163_v46  ;;  %v6074_v58 = vld [vmem:[#allocation10 + $0x5ac] sm:$0xf0]  ;;  %v5419_v20 = vld [vmem:[#allocation10 + $0x7c0] sm:$0xf] }
  0x8a   : > { %2835 = vmatpush.bf16.msra.mxu2 %v4748_v55  ;;  %2849 = vmatpush.bf16.msra.mxu3 %v4876_v57  ;;  %v5019_v55 = vld [vmem:[#allocation10 + $0x4a0] sm:$0xf]  ;;  %v6110_v19 = vld [vmem:[#allocation10 + $0x6cc] sm:$0xf0] }
  0x8b   : > { %v5147_v57 = vld [vmem:[#allocation10 + $0x5a0] sm:$0xf]  ;;  %v6038_v27 = vld [vmem:[#allocation10 + $0x48c] sm:$0xf0] }
  0x8c   : > { %2808 = vmatpush.bf16.msra.mxu0 %v4476_v56  ;;  %2822 = vmatpush.bf16.msra.mxu1 %v4604_v61  ;;  %v6042_v56 = vld [vmem:[#allocation10 + $0x4ac] sm:$0xf0]  ;;  %v5148_v60 = vor.u32 %v6074_v58, %v5147_v57  ;;  %v976_v61 = vlaneseq  ;;  %v5003_v26 = vld [vmem:[#allocation10 + $0x480] sm:$0xf] }
  0x8d   : > { %v5020_v59 = vor.u32 %v6042_v56, %v5019_v55  ;;  %v5131_v28 = vld [vmem:[#allocation10 + $0x580] sm:$0xf]  ;;  %v5004_v30 = vor.u32 %v6038_v27, %v5003_v26  ;;  %v6106_v37 = vld [vmem:[#allocation10 + $0x6ac] sm:$0xf0] }
  0x8e   : > { %2836 = vmatpush.bf16.msra.mxu2 %v4732_v3  ;;  %2850 = vmatpush.bf16.msra.mxu3 %v4860_v5  ;;  %v977_v62 = vshrl.u32 %v976_v61, 7  ;;  %v6711_v3 = vand.u32 127, %v976_v61  ;;  %v5275_v36 = vld [vmem:[#allocation10 + $0x6a0] sm:$0xf]  ;;  %v6138_v40 = vld [vmem:[#allocation10 + $0x7ac] sm:$0xf0] }
  0x8f   : > { %v4987_v50 = vld [vmem:[#allocation10 + $0x460] sm:$0xf]  ;;  %v6034_v44 = vld [vmem:[#allocation10 + $0x46c] sm:$0xf0] }
  0x90   : > { %2809 = vmatpush.bf16.msra.mxu0 %v4460_v4  ;;  %2823 = vmatpush.bf16.msra.mxu1 %v4588_v9  ;;  %v978_v63 = vadd.s32 8, %v977_v62  ;;  %v6707_v1 = vadd.s32 %v979_v0, %v977_v62  ;;  %v6720_v6 = vadd.s32 128, %v6711_v3  ;;  %v5115_v45 = vld [vmem:[#allocation10 + $0x560] sm:$0xf]  ;;  %v4988_v46 = vor.u32 %v6034_v44, %v4987_v50  ;;  %v6066_v47 = vld [vmem:[#allocation10 + $0x56c] sm:$0xf0] }
  0x91   : > { %v6102_v55 = vld [vmem:[#allocation10 + $0x68c] sm:$0xf0]  ;;  %v5387_v56 = vld [vmem:[#allocation10 + $0x780] sm:$0xf]  ;;  %v6737_v50 = vadd.s32 256, %v6711_v3 }
  0x92   : > { %2837 = vmatpush.bf16.msra.mxu2 %v4716_v15  ;;  %2851 = vmatpush.bf16.msra.mxu3 %v4844_v18  ;;  %v6709_v2 = vadd.s32 %v979_v0, %v978_v63  ;;  %v6714_v4 = vmul.u32 1024, %v6707_v1  ;;  %v5291_v18 = vld [vmem:[#allocation10 + $0x6c0] sm:$0xf]  ;;  %v6134_v57 = vld [vmem:[#allocation10 + $0x78c] sm:$0xf0] }
  0x93   : > { %v5292_v21 = vor.u32 %v6110_v19, %v5291_v18  ;;  %v6030_v61 = vld [vmem:[#allocation10 + $0x44c] sm:$0xf0]  ;;  %v5099_v62 = vld [vmem:[#allocation10 + $0x540] sm:$0xf] }
  0x94   : > { %2810 = vmatpush.bf16.msra.mxu0 %v4444_v17  ;;  %2824 = vmatpush.bf16.msra.mxu1 %v4572_v22  ;;  %v6717_v5 = vmul.u32 1024, %v6709_v2  ;;  %v993_v7 = vadd.s32 %v6714_v4, %v6711_v3  ;;  %v994_v9 = vadd.s32 %v6714_v4, %v6720_v6  ;;  %v6142_v22 = vld [vmem:[#allocation10 + $0x7cc] sm:$0xf0]  ;;  %v4955_v19 = vld [vmem:[#allocation10 + $0x420] sm:$0xf] }
  0x95   : > { %v5420_v25 = vor.u32 %v6142_v22, %v5419_v20  ;;  %v6062_v0 = vld [vmem:[#allocation10 + $0x54c] sm:$0xf0]  ;;  %v5227_v27 = vld [vmem:[#allocation10 + $0x640] sm:$0xf] }
  0x96   : > { %2838 = vmatpush.bf16.msra.mxu2 %v4700_v31  ;;  %2852 = vmatpush.bf16.msra.mxu3 %v4828_v33  ;;  %v1001_v8 = vadd.s32 %v6717_v5, %v6711_v3  ;;  %v1002_v10 = vadd.s32 %v6717_v5, %v6720_v6  ;;  %v1009_v11 = vmul.u32 2654435761, %v993_v7  ;;  %v1010_v16 = vmul.u32 2654435761, %v994_v9  ;;  %v6070_v31 = vld [vmem:[#allocation10 + $0x58c] sm:$0xf0] }
  0x97   : > { %v5132_v35 = vor.u32 %v6070_v31, %v5131_v28  ;;  %v5243_v9 = vld [vmem:[#allocation10 + $0x660] sm:$0xf]  ;;  %v6026_v20 = vld [vmem:[#allocation10 + $0x42c] sm:$0xf0] }
  0x98   : > { %2811 = vmatpush.bf16.msra.mxu0 %v4428_v32  ;;  %2825 = vmatpush.bf16.msra.mxu1 %v4556_v38  ;;  %v1017_v12 = vmul.u32 2654435761, %v1001_v8  ;;  %v1026_v14 = vadd.s32 %v6730_v13, %v1009_v11  ;;  %v1018_v17 = vmul.u32 2654435761, %v1002_v10  ;;  %v1027_v29 = vadd.s32 %v6730_v13, %v1010_v16  ;;  %v5403_v38 = vld [vmem:[#allocation10 + $0x7a0] sm:$0xf] }
  0x99   : > { %v5100_v8 = vor.u32 %v6062_v0, %v5099_v62  ;;  %v6098_v10 = vld [vmem:[#allocation10 + $0x66c] sm:$0xf0]  ;;  %v5371_v11 = vld [vmem:[#allocation10 + $0x760] sm:$0xf] }
  0x9a   : > { %2839 = vmatpush.bf16.msra.mxu2 %v4684_v48  ;;  %2853 = vmatpush.bf16.msra.mxu3 %v4812_v49  ;;  %v1034_v15 = vadd.s32 %v6730_v13, %v1017_v12  ;;  %v1042_v23 = vadd.s32 2654435769, %v1026_v14  ;;  %v1035_v34 = vadd.s32 %v6730_v13, %v1018_v17  ;;  %v1043_v48 = vadd.s32 2654435769, %v1027_v29  ;;  %v6130_v14 = vld [vmem:[#allocation10 + $0x76c] sm:$0xf0] }
  0x9b   : > { %v5244_v12 = vor.u32 %v6098_v10, %v5243_v9  ;;  %v5372_v18 = vor.u32 %v6130_v14, %v5371_v11  ;;  %v6094_v28 = vld [vmem:[#allocation10 + $0x64c] sm:$0xf0]  ;;  %v5355_v29 = vld [vmem:[#allocation10 + $0x740] sm:$0xf]  ;;  %v6750_v9 = vld [vmem:[#allocation9] sm:$0xff] }
  0x9c   : > { %2860 = vmatpush.bf16.msrb.mxu0 %v5052_v39  ;;  %2874 = vmatpush.bf16.msrb.mxu1 %v5180_v43  ;;  %v1050_v24 = vadd.s32 2654435769, %v1034_v15  ;;  %v1058_v32 = vshrl.u32 %v1042_v23, 16  ;;  %v5276_v39 = vor.u32 %v6106_v37, %v5275_v36  ;;  %v5404_v43 = vor.u32 %v6138_v40, %v5403_v38  ;;  %v6126_v31 = vld [vmem:[#allocation10 + $0x74c] sm:$0xf0] }
  0x9d   : > { %v1051_v49 = vadd.s32 2654435769, %v1035_v34  ;;  %v1059_v7 = vshrl.u32 %v1043_v48, 16  ;;  %v4939_v36 = vld [vmem:[#allocation10 + $0x400] sm:$0xf] }
  0x9e   : > { %2888 = vmatpush.bf16.msrb.mxu2 %v5308_v51  ;;  %2902 = vmatpush.bf16.msrb.mxu3 %v5436_v53  ;;  %v1066_v33 = vshrl.u32 %v1050_v24, 16  ;;  %v1074_v41 = vxor.u32 %v1058_v32, %v1042_v23  ;;  %v5116_v51 = vor.u32 %v6066_v47, %v5115_v45  ;;  %v4956_v23 = vor.u32 %v6026_v20, %v4955_v19  ;;  %v6022_v37 = vld [vmem:[#allocation10 + $0x40c] sm:$0xf0]  ;;  %v5067_v38 = vld [vmem:[#allocation10 + $0x500] sm:$0xf] }
  0x9f   : > { %v1067_v17 = vshrl.u32 %v1051_v49, 16  ;;  %v1075_v22 = vxor.u32 %v1059_v7, %v1043_v48  ;;  %v6054_v40 = vld [vmem:[#allocation10 + $0x50c] sm:$0xf0]  ;;  %v6740_v47 = vadd.s32 384, %v6711_v3  ;;  %v5195_v7 = vld [vmem:[#allocation10 + $0x600] sm:$0xf] }
  0xa0   : > { %2861 = vmatpush.bf16.msrb.mxu0 %v5036_v52  ;;  %2875 = vmatpush.bf16.msrb.mxu1 %v5164_v54  ;;  %v1082_v42 = vxor.u32 %v1066_v33, %v1050_v24  ;;  %v5259_v52 = vld [vmem:[#allocation10 + $0x680] sm:$0xf]  ;;  %v1090_v53 = vmul.u32 2246822507, %v1074_v41  ;;  %v6058_v24 = vld [vmem:[#allocation10 + $0x52c] sm:$0xf0] }
  0xa1   : > { %v5260_v58 = vor.u32 %v6102_v55, %v5259_v52  ;;  %v1091_v34 = vmul.u32 2246822507, %v1075_v22  ;;  %v5339_v52 = vld [vmem:[#allocation10 + $0x720] sm:$0xf]  ;;  %v6122_v55 = vld [vmem:[#allocation10 + $0x72c] sm:$0xf0]  ;;  %v996_v62 = vadd.s32 %v6714_v4, %v6740_v47 }
  0xa2   : > { %2889 = vmatpush.bf16.msrb.mxu2 %v5292_v21  ;;  %2903 = vmatpush.bf16.msrb.mxu3 %v5420_v25  ;;  %v1098_v54 = vmul.u32 2246822507, %v1082_v42  ;;  %v1106_v15 = vshrl.u32 %v1090_v53, 13  ;;  %v5083_v21 = vld [vmem:[#allocation10 + $0x520] sm:$0xf]  ;;  %v1083_v25 = vxor.u32 %v1067_v17, %v1051_v49  ;;  %v5068_v42 = vor.u32 %v6054_v40, %v5067_v38 }
  0xa3   : > { %v5084_v26 = vor.u32 %v6058_v24, %v5083_v21  ;;  %v5211_v49 = vld [vmem:[#allocation10 + $0x620] sm:$0xf]  ;;  %v6118_v14 = vld [vmem:[#allocation10 + $0x70c] sm:$0xf0]  ;;  %v1012_v20 = vmul.u32 2654435761, %v996_v62 }
  0xa4   : > { %2862 = vmatpush.bf16.msrb.mxu0 %v5020_v59  ;;  %2876 = vmatpush.bf16.msrb.mxu1 %v5148_v60  ;;  %v5388_v59 = vor.u32 %v6134_v57, %v5387_v56  ;;  %v4971_v60 = vld [vmem:[#allocation10 + $0x440] sm:$0xf]  ;;  %v1114_v16 = vshrl.u32 %v1098_v54, 13  ;;  %v1122_v32 = vxor.u32 %v1106_v15, %v1090_v53  ;;  %v1099_v41 = vmul.u32 2246822507, %v1083_v25 }
  0xa5   : > { %v4972_v63 = vor.u32 %v6030_v61, %v4971_v60  ;;  %v5340_v57 = vor.u32 %v6122_v55, %v5339_v52  ;;  %v496_v22 = vperm.slane %v6750_v9, 0 }
  0xa6   : > { %2890 = vmatpush.bf16.msrb.mxu2 %v5276_v39  ;;  %2904 = vmatpush.bf16.msrb.mxu3 %v5404_v43  ;;  %v1130_v33 = vxor.u32 %v1114_v16, %v1098_v54  ;;  %v4940_v39 = vor.u32 %v6022_v37, %v4939_v36  ;;  %v1107_v43 = vshrl.u32 %v1091_v34, 13  ;;  %v1138_v44 = vmul.u32 3266489909, %v1122_v32 }
  0xa8   : > { %2863 = vmatpush.bf16.msrb.mxu0 %v5004_v30  ;;  %2877 = vmatpush.bf16.msrb.mxu1 %v5132_v35  ;;  %v5228_v30 = vor.u32 %v6094_v28, %v5227_v27  ;;  %v5356_v35 = vor.u32 %v6126_v31, %v5355_v29  ;;  %v1146_v45 = vmul.u32 3266489909, %v1130_v33  ;;  %v1123_v48 = vxor.u32 %v1107_v43, %v1091_v34 }
  0xa9   : > { %v1154_v60 = vshrl.u32 %v1138_v44, 16  ;;  %v1029_v28 = vadd.s32 %v6730_v13, %v1012_v20 }
  0xaa   : > { %2891 = vmatpush.bf16.msrb.mxu2 %v5260_v58  ;;  %2905 = vmatpush.bf16.msrb.mxu3 %v5388_v59  ;;  %v1139_v56 = vmul.u32 3266489909, %v1123_v48  ;;  %v995_v58 = vadd.s32 %v6714_v4, %v6737_v50  ;;  %v1003_v59 = vadd.s32 %v6717_v5, %v6737_v50  ;;  %v1162_v0 = vshrl.u32 %v1146_v45, 16 }
  0xab   : > { %v1170_v19 = vxor.u32 %v1154_v60, %v1138_v44 }
  0xac   : > { %2864 = vmatpush.bf16.msrb.mxu0 %v4988_v46  ;;  %2878 = vmatpush.bf16.msrb.mxu1 %v5116_v51  ;;  %v1115_v46 = vshrl.u32 %v1099_v41, 13  ;;  %v6090_v51 = vld [vmem:[#allocation10 + $0x62c] sm:$0xf0]  ;;  %v1155_v10 = vshrl.u32 %v1139_v56, 16  ;;  %v1011_v17 = vmul.u32 2654435761, %v995_v58 }
  0xad   : > { %v5212_v54 = vor.u32 %v6090_v51, %v5211_v49  ;;  %v1186_v34 = vshrl.u32 %v1170_v19, 9  ;;  %v6783_v19 = vld [vmem:[#allocation10 + $0xf0] sm:$0xf0] }
  0xae   : > { %2892 = vmatpush.bf16.msrb.mxu2 %v5244_v12  ;;  %2906 = vmatpush.bf16.msrb.mxu3 %v5372_v18  ;;  %v1131_v53 = vxor.u32 %v1115_v46, %v1099_v41  ;;  %v5323_v12 = vld [vmem:[#allocation10 + $0x700] sm:$0xf]  ;;  %v1019_v18 = vmul.u32 2654435761, %v1003_v59  ;;  %v1028_v24 = vadd.s32 %v6730_v13, %v1011_v17  ;;  %v1171_v27 = vxor.u32 %v1155_v10, %v1139_v56  ;;  %v6829_v10 = vld [vmem:[#allocation10 + $0xa4] sm:$0xf] }
  0xaf   : > { %v5324_v16 = vor.u32 %v6118_v14, %v5323_v12  ;;  %vm6759_vm0 = vcmp.lt.s32.totalorder %v1186_v34, 5872025 }
  0xb0   : > { %2865 = vmatpush.bf16.msrb.mxu0 %v4972_v63  ;;  %2879 = vmatpush.bf16.msrb.mxu1 %v5100_v8  ;;  %v1147_v61 = vmul.u32 3266489909, %v1131_v53  ;;  %v1004_v63 = vadd.s32 %v6717_v5, %v6740_v47  ;;  %v6086_v8 = vld [vmem:[#allocation10 + $0x60c] sm:$0xf0]  ;;  %v1036_v25 = vadd.s32 %v6730_v13, %v1019_v18  ;;  %v1044_v31 = vadd.s32 2654435769, %v1028_v24 }
  0xb1   : > { %v5196_v11 = vor.u32 %v6086_v8, %v5195_v7  ;;  %v1187_v43 = vshrl.u32 %v1171_v27, 9  ;;  %v498_v53 = vperm.slane %v6750_v9, 2  ;;  %v6781_v18 = vld [vmem:[#allocation10 + $0xe4] sm:$0xf]  ;;  %v6827_v8 = vld [vmem:[#allocation10 + $0x3f0] sm:$0xf0] }
  0xb2   : > { %2893 = vmatpush.bf16.msrb.mxu2 %v5228_v30  ;;  %2907 = vmatpush.bf16.msrb.mxu3 %v5356_v35  ;;  %v1163_v15 = vshrl.u32 %v1147_v61, 16  ;;  %v1020_v21 = vmul.u32 2654435761, %v1004_v63  ;;  %v1052_v32 = vadd.s32 2654435769, %v1036_v25  ;;  %v1060_v40 = vshrl.u32 %v1044_v31, 16 }
  0xb3   : > { %v1045_v35 = vadd.s32 2654435769, %v1029_v28  ;;  %vm6771_vm2 = vcmp.lt.s32.totalorder %v1187_v43, 5872025  ;;  %v6785_v27 = vld [vmem:[#allocation10 + $0x1e4] sm:$0xf] }
  0xb4   : > { %2866 = vmatpush.bf16.msrb.mxu0 %v4956_v23  ;;  %2880 = vmatpush.bf16.msrb.mxu1 %v5084_v26  ;;  %v1178_v23 = vxor.u32 %v1162_v0, %v1146_v45  ;;  %v497_v26 = vperm.slane %v6750_v9, 1  ;;  %v1037_v29 = vadd.s32 %v6730_v13, %v1020_v21  ;;  %v1179_v30 = vxor.u32 %v1163_v15, %v1147_v61  ;;  %v6787_v28 = vld [vmem:[#allocation10 + $0x1f0] sm:$0xf0] }
  0xb5   : > { %v1068_v41 = vshrl.u32 %v1052_v32, 16  ;;  %v1061_v44 = vshrl.u32 %v1045_v35, 16  ;;  %v1076_v49 = vxor.u32 %v1060_v40, %v1044_v31  ;;  %v499_v61 = vperm.slane %v6750_v9, 3 }
  0xb6   : > { %2894 = vmatpush.bf16.msrb.mxu2 %v5212_v54  ;;  %2908 = vmatpush.bf16.msrb.mxu3 %v5340_v57  ;;  %v1053_v36 = vadd.s32 2654435769, %v1037_v29  ;;  %v1195_v48 = vshrl.u32 %v1179_v30, 9  ;;  %v6769_v0 = vadd.s32 512, %v6711_v3 }
  0xb7   : > { %v1084_v51 = vxor.u32 %v1068_v41, %v1052_v32  ;;  %v1077_v54 = vxor.u32 %v1061_v44, %v1045_v35  ;;  %v1092_v59 = vmul.u32 2246822507, %v1076_v49 }
  0xb8   : > { %2867 = vmatpush.bf16.msrb.mxu0 %v4940_v39  ;;  %2881 = vmatpush.bf16.msrb.mxu1 %v5068_v42  ;;  %v1194_v39 = vshrl.u32 %v1178_v23, 9  ;;  %v1069_v45 = vshrl.u32 %v1053_v36, 16  ;;  %vm6775_vm3 = vcmp.lt.s32.totalorder %v1195_v48, 5872025 }
  0xb9   : > { %v1100_v60 = vmul.u32 2246822507, %v1084_v51  ;;  %v1093_v62 = vmul.u32 2246822507, %v1077_v54  ;;  %vm6815_vm5 = vmpackc.low %vm6775_vm3, %vm6771_vm2 }
  0xba   : > { %2895 = vmatpush.bf16.msrb.mxu2 %v5196_v11  ;;  %2909 = vmatpush.bf16.msrb.mxu3 %v5324_v16  ;;  %v1085_v55 = vxor.u32 %v1069_v45, %v1053_v36  ;;  %vm6763_vm1 = vcmp.lt.s32.totalorder %v1194_v39, 5872025  ;;  %v1108_v11 = vshrl.u32 %v1092_v59, 13  ;;  %v4672_v39 = vor.u32 %v6785_v27, %v6787_v28 }
  0xbb   : > { %v1116_v12 = vshrl.u32 %v1100_v60, 13  ;;  %v1109_v20 = vshrl.u32 %v1093_v62, 13  ;;  %vm6805_vm4 = vmpackc.low %vm6763_vm1, %vm6759_vm0 }
  0xbc   : > { %v1101_v63 = vmul.u32 2246822507, %v1085_v55  ;;  %v1124_v29 = vxor.u32 %v1108_v11, %v1092_v59  ;;  %v5916_v55 = vld [vmem:[#allocation10 + $0xc4] sm:$0xf] }
  0xbd   : > { %v1132_v30 = vxor.u32 %v1116_v12, %v1100_v60  ;;  %v5948_v12 = vld [vmem:[#allocation10 + $0x1c4] sm:$0xf] }
  0xbe   : > { %v1117_v21 = vshrl.u32 %v1101_v63, 13 }
  0xbf   : > { %v1148_v40 = vmul.u32 3266489909, %v1132_v30  ;;  %v4509_v30 = vld [vmem:[#allocation10 + $0xb0] sm:$0xf0] }
  0xc0   : > { %v1133_v34 = vxor.u32 %v1117_v21, %v1101_v63 }
  0xc1   : > { %v1164_v48 = vshrl.u32 %v1148_v40, 16 }
  0xd8   : > { %v841_v33 = vpop.f32.mrf.mxu0  ;;  %v855_v38 = vpop.f32.mrf.mxu1 }
  0xd9   : > { %v842_v37 = vadd.f32 %v841_v33, %v496_v22  ;;  %v856_v42 = vadd.f32 %v855_v38, %v497_v26  ;;  %v1125_v33 = vxor.u32 %v1109_v20, %v1093_v62  ;;  %v6821_v20 = vld [vmem:[#allocation10 + $0x2f0] sm:$0xf0] }
  0xdb   : > { %v944_v46 = vmul.f32 0.2, %v842_v37  ;;  %v945_v52 = vmul.f32 0.2, %v856_v42  ;;  %v1141_v41 = vmul.u32 3266489909, %v1125_v33 }
  0xdd   : > { %v960_v56 = vmax.f32 %v842_v37, %v944_v46  ;;  %v961_v14 = vmax.f32 %v856_v42, %v945_v52  ;;  %v4544_v37 = vor.u32 %v6781_v18, %v6783_v19  ;;  %v1157_v49 = vshrl.u32 %v1141_v41, 16  ;;  %v6819_v19 = vld [vmem:[#allocation10 + $0x2e4] sm:$0xf] }
  0xdf   : > { %v1218_v23 = vmul.f32 1.4285715, %v960_v56  ;;  %v1219_v42 = vmul.f32 1.4285715, %v961_v14  ;;  %v4525_v56 = vld [vmem:[#allocation10 + $0xd0] sm:$0xf0] }
  0xe0   : > { %v883_v16 = vpop.f32.mrf.mxu3  ;;  %v843_v17 = vpop.f32.mrf.mxu0  ;;  %v4653_v14 = vld [vmem:[#allocation10 + $0x1d0] sm:$0xf0] }
  0xe1   : > { %v869_v7 = vpop.f32.mrf.mxu2  ;;  %v844_v24 = vadd.f32 %v843_v17, %v496_v22  ;;  %v857_v25 = vpop.f32.mrf.mxu1  ;;  %v6789_v31 = vadd.f32 %v883_v16, %v499_v61  ;;  %v1140_v22 = vmul.u32 3266489909, %v1124_v29  ;;  %v1173_v16 = vxor.u32 %v1157_v49, %v1141_v41  ;;  %v6948_v41 = vld [vmem:[#allocation10 + $0x144] sm:$0xf] }
  0xe2   : > { %v6779_v15 = vadd.f32 %v869_v7, %v498_v53  ;;  %v858_v32 = vadd.f32 %v857_v25, %v497_v26  ;;  %v1149_v26 = vmul.u32 3266489909, %v1133_v34  ;;  %v4528_v34 = vor.u32 %v5916_v55, %v4525_v56  ;;  %v6878_v56 = vld [vmem:[#allocation10 + $0x84] sm:$0xf] }
  0xe3   : > { %v952_v36 = vmul.f32 0.2, %v844_v24  ;;  %v1156_v44 = vshrl.u32 %v1140_v22, 16  ;;  %v947_v45 = vmul.f32 0.2, %v6789_v31  ;;  %v1189_v25 = vshrl.u32 %v1173_v16, 9 }
  0xe4   : > { %v6792_v35 = vmul.f32 0.2, %v6779_v15  ;;  %v953_v38 = vmul.f32 0.2, %v858_v32  ;;  %v1165_v60 = vshrl.u32 %v1149_v26, 16  ;;  %v4512_v55 = vor.u32 %v6829_v10, %v4509_v30 }
  0xe5   : > { %v968_v43 = vmax.f32 %v844_v24, %v952_v36  ;;  %v1172_v59 = vxor.u32 %v1156_v44, %v1140_v22  ;;  %v963_v27 = vmax.f32 %v6789_v31, %v947_v45  ;;  %v5944_v36 = vld [vmem:[#allocation10 + $0x1a4] sm:$0xf]  ;;  %vm6847_vm8 = vcmp.lt.s32.totalorder %v1189_v25, 5872025  ;;  %v6859_v45 = vld [vmem:[#allocation10 + $0x2d0] sm:$0xf0] }
  0xe6   : > { %v969_v46 = vmax.f32 %v858_v32, %v953_v38  ;;  %v962_v51 = vmax.f32 %v6779_v15, %v6792_v35  ;;  %v1180_v15 = vxor.u32 %v1164_v48, %v1148_v40  ;;  %v1181_v58 = vxor.u32 %v1165_v60, %v1149_v26  ;;  %v6857_v26 = vld [vmem:[#allocation10 + $0x2c4] sm:$0xf]  ;;  %v6917_v25 = vld [vmem:[#allocation10 + $0x70] sm:$0xf0] }
  0xe7   : > { %v1226_v52 = vmul.f32 1.4285715, %v968_v43  ;;  %v1188_v57 = vshrl.u32 %v1172_v59, 9  ;;  %v988_v32 = vadd.s32 640, %v6711_v3  ;;  %v4656_v38 = vor.u32 %v5948_v12, %v4653_v14  ;;  %v6880_v59 = vld [vmem:[#allocation10 + $0x90] sm:$0xf0] }
  0xe8   : > { %v1227_v62 = vmul.f32 1.4285715, %v969_v46  ;;  %v885_v7 = vpop.f32.mrf.mxu3  ;;  %v1197_v29 = vshrl.u32 %v1181_v58, 9  ;;  %v4800_v44 = vor.u32 %v6819_v19, %v6821_v20  ;;  %v6863_v46 = vld [vmem:[#allocation10 + $0x3d0] sm:$0xf0]  ;;  %v997_v48 = vadd.s32 %v6714_v4, %v6769_v0 }
  0xe9   : > { %v871_v54 = vpop.f32.mrf.mxu2  ;;  %v6809_v17 = vpack.c.bf16 %v1226_v52, %v1218_v23  ;;  %v886_v18 = vadd.f32 %v885_v7, %v499_v61  ;;  %v1196_v23 = vshrl.u32 %v1180_v15, 9  ;;  %v6825_v61 = vld [vmem:[#allocation10 + $0x3e4] sm:$0xf]  ;;  %vm6839_vm6 = vcmp.lt.s32.totalorder %v1188_v57, 5872025 }
  0xea   : > { %v872_v63 = vadd.f32 %v871_v54, %v498_v53  ;;  %v6823_v21 = vpack.c.bf16 %v1227_v62, %v1219_v42  ;;  %vm6851_vm9 = vcmp.lt.s32.totalorder %v1197_v29, 5872025  ;;  %v1220_v42 = vmul.f32 1.4285715, %v962_v51  ;;  %v6894_v12 = vld [vmem:[#allocation10 + $0x184] sm:$0xf] }
  0xeb   : > { %v955_v28 = vmul.f32 0.2, %v886_v18  ;;  %5451 = vmatmul.msk.bf16.vlgmr.msra.gmra.mxu0 %vm6805_vm4, %v6809_v17  ;;  %vm6843_vm7 = vcmp.lt.s32.totalorder %v1196_v23, 5872025  ;;  %v1221_v49 = vmul.f32 1.4285715, %v963_v27  ;;  %v4928_v54 = vor.u32 %v6825_v61, %v6827_v8  ;;  %vm6888_vm11 = vmpackc.low %vm6851_vm9, %vm6847_vm8 }
  0xec   : > { %v954_v24 = vmul.f32 0.2, %v872_v63  ;;  %5454 = vmatmul.msk.bf16.vlgmr.msra.gmra.mxu1 %vm6815_vm5, %v6823_v21  ;;  %2916 = vmatpush.bf16.msra.mxu0 %v4544_v37  ;;  %v4637_v37 = vld [vmem:[#allocation10 + $0x1b0] sm:$0xf0]  ;;  %vm6871_vm10 = vmpackc.low %vm6843_vm7, %vm6839_vm6  ;;  %v501_v7 = vperm.slane %v6750_v9, 5  ;;  %v1005_v15 = vadd.s32 %v6717_v5, %v6769_v0  ;;  %v998_v20 = vadd.s32 %v6714_v4, %v988_v32 }
  0xed   : > { %v971_v22 = vmax.f32 %v886_v18, %v955_v28  ;;  %2930 = vmatpush.bf16.msra.mxu1 %v4672_v39  ;;  %v6861_v39 = vld [vmem:[#allocation10 + $0x3c4] sm:$0xf]  ;;  %v6896_v14 = vld [vmem:[#allocation10 + $0x190] sm:$0xf0]  ;;  %v4640_v18 = vor.u32 %v5944_v36, %v4637_v37  ;;  %v4784_v61 = vor.u32 %v6857_v26, %v6859_v45  ;;  %v4496_v30 = vor.u32 %v6878_v56, %v6880_v59  ;;  %v6159_v62 = vld [vmem:[#allocation12 + $0x54] sm:$0xf0] }
  0xee   : > { %v970_v33 = vmax.f32 %v872_v63, %v954_v24  ;;  %v500_v63 = vperm.slane %v6750_v9, 4  ;;  %v6902_v57 = vld [vmem:[#allocation10 + $0x2a4] sm:$0xf]  ;;  %v6904_v58 = vld [vmem:[#allocation10 + $0x2b0] sm:$0xf0]  ;;  %v1006_v24 = vadd.s32 %v6717_v5, %v988_v32  ;;  %v4912_v8 = vor.u32 %v6861_v39, %v6863_v46 }
  0xef   : > { %v1229_v52 = vmul.f32 1.4285715, %v971_v22  ;;  %v6906_v19 = vld [vmem:[#allocation10 + $0x3a4] sm:$0xf]  ;;  %v6913_v23 = vld [vmem:[#allocation10 + $0x3b0] sm:$0xf0]  ;;  %v4624_v40 = vor.u32 %v6894_v12, %v6896_v14  ;;  %v4768_v45 = vor.u32 %v6902_v57, %v6904_v58 }
  0xf0   : > { %v1228_v43 = vmul.f32 1.4285715, %v970_v33  ;;  %2917 = vmatpush.bf16.msra.mxu0 %v4528_v34  ;;  %v6915_v0 = vld [vmem:[#allocation10 + $0x64] sm:$0xf]  ;;  %v6928_v27 = vld [vmem:[#allocation10 + $0x170] sm:$0xf0]  ;;  %v4896_v39 = vor.u32 %v6906_v19, %v6913_v23 }
  0xf1   : > { %v6900_v16 = vpack.c.bf16 %v1229_v52, %v1221_v49  ;;  %2931 = vmatpush.bf16.msra.mxu1 %v4656_v38  ;;  %v6926_v10 = vld [vmem:[#allocation10 + $0x164] sm:$0xf]  ;;  %v6932_v29 = vld [vmem:[#allocation10 + $0x290] sm:$0xf0]  ;;  %v502_v32 = vperm.slane %v6750_v9, 6  ;;  %v503_v33 = vperm.slane %v6750_v9, 7  ;;  %v4480_v46 = vor.u32 %v6915_v0, %v6917_v25 }
  0xf2   : > { %v6882_v60 = vpack.c.bf16 %v1228_v43, %v1220_v42  ;;  %v6930_v28 = vld [vmem:[#allocation10 + $0x284] sm:$0xf]  ;;  %v6940_v35 = vld [vmem:[#allocation10 + $0x390] sm:$0xf0]  ;;  %v1013_v22 = vmul.u32 2654435761, %v997_v48  ;;  %v4608_v58 = vor.u32 %v6926_v10, %v6928_v27 }
  0xf3   : > { %5460 = vmatmul.msk.bf16.vlgmr.msra.gmra.mxu3 %vm6888_vm11, %v6900_v16  ;;  %v6938_v34 = vld [vmem:[#allocation10 + $0x384] sm:$0xf]  ;;  %v6944_v36 = vld [vmem:[#allocation10 + $0x50] sm:$0xf0]  ;;  %v1021_v42 = vmul.u32 2654435761, %v1005_v15  ;;  %v4752_v19 = vor.u32 %v6930_v28, %v6932_v29 }
  0xf4   : > { %5457 = vmatmul.msk.bf16.vlgmr.msra.gmra.mxu2 %vm6871_vm10, %v6882_v60  ;;  %2958 = vmatpush.bf16.msra.mxu3 %v4928_v54  ;;  %v6942_v31 = vld [vmem:[#allocation10 + $0x44] sm:$0xf]  ;;  %v6950_v37 = vld [vmem:[#allocation10 + $0x150] sm:$0xf0]  ;;  %v1014_v43 = vmul.u32 2654435761, %v998_v20  ;;  %v1030_v54 = vadd.s32 %v6730_v13, %v1013_v22  ;;  %v4880_v25 = vor.u32 %v6938_v34, %v6940_v35 }
  0xf5   : > { %2944 = vmatpush.bf16.msra.mxu2 %v4800_v44  ;;  %2918 = vmatpush.bf16.msra.mxu0 %v4512_v55  ;;  %v1022_v44 = vmul.u32 2654435761, %v1006_v24  ;;  %v6958_v48 = vld [vmem:[#allocation10 + $0x264] sm:$0xf]  ;;  %v6960_v49 = vld [vmem:[#allocation10 + $0x270] sm:$0xf0]  ;;  %v1038_v14 = vadd.s32 %v6730_v13, %v1021_v42  ;;  %v4592_v28 = vor.u32 %v6948_v41, %v6950_v37 }
  0xf6   : > { %2932 = vmatpush.bf16.msra.mxu1 %v4640_v18  ;;  %v6962_v52 = vld [vmem:[#allocation10 + $0x364] sm:$0xf]  ;;  %v6969_v56 = vld [vmem:[#allocation10 + $0x370] sm:$0xf0]  ;;  %v1031_v15 = vadd.s32 %v6730_v13, %v1014_v43  ;;  %v1046_v0 = vadd.s32 2654435769, %v1030_v54  ;;  %v4736_v29 = vor.u32 %v6958_v48, %v6960_v49 }
  0xf7   : > { %v6971_v59 = vld [vmem:[#allocation10 + $0x24] sm:$0xf]  ;;  %v6973_v12 = vld [vmem:[#allocation10 + $0x30] sm:$0xf0]  ;;  %v1039_v18 = vadd.s32 %v6730_v13, %v1022_v44  ;;  %v1054_v10 = vadd.s32 2654435769, %v1038_v14  ;;  %v4864_v34 = vor.u32 %v6962_v52, %v6969_v56 }
  0xf8   : > { %v897_v38 = vpop.f32.mrf.mxu0  ;;  %v911_v26 = vpop.f32.mrf.mxu1  ;;  %2959 = vmatpush.bf16.msra.mxu3 %v4912_v8  ;;  %v6986_v20 = vld [vmem:[#allocation10 + $0x124] sm:$0xf]  ;;  %v6988_v24 = vld [vmem:[#allocation10 + $0x130] sm:$0xf0]  ;;  %v1047_v27 = vadd.s32 2654435769, %v1031_v15  ;;  %v4448_v41 = vor.u32 %v6971_v59, %v6973_v12 }
  0xf9   : > { %v6967_v55 = vadd.f32 %v897_v38, %v500_v63  ;;  %2945 = vmatpush.bf16.msra.mxu2 %v4784_v61  ;;  %v6980_v57 = vadd.f32 %v911_v26, %v501_v7  ;;  %2919 = vmatpush.bf16.msra.mxu0 %v4496_v30  ;;  %v6990_v23 = vld [vmem:[#allocation10 + $0x244] sm:$0xf]  ;;  %v4464_v61 = vor.u32 %v6942_v31, %v6944_v36  ;;  %v6996_v8 = vld [vmem:[#allocation10 + $0x250] sm:$0xf0]  ;;  %v1062_v22 = vshrl.u32 %v1046_v0, 16 }
  0xfa   : > { %2933 = vmatpush.bf16.msra.mxu1 %v4624_v40  ;;  %v7002_v30 = vld [vmem:[#allocation10 + $0x344] sm:$0xf]  ;;  %v1055_v38 = vadd.s32 2654435769, %v1039_v18  ;;  %v7007_v35 = vld [vmem:[#allocation10 + $0x350] sm:$0xf0]  ;;  %v4576_v26 = vor.u32 %v6986_v20, %v6988_v24 }
  0xfb   : > { %v948_v40 = vmul.f32 0.2, %v6967_v55  ;;  %v1070_v31 = vshrl.u32 %v1054_v10, 16  ;;  %v1063_v36 = vshrl.u32 %v1047_v27, 16  ;;  %v949_v42 = vmul.f32 0.2, %v6980_v57 }
  0xfc   : > { %2960 = vmatpush.bf16.msra.mxu3 %v4896_v39  ;;  %v1078_v37 = vxor.u32 %v1062_v22, %v1046_v0  ;;  %v1071_v43 = vshrl.u32 %v1055_v38, 16  ;;  %v7016_v48 = vld [vmem:[#allocation10 + $0x4] sm:$0xf]  ;;  %v7018_v49 = vld [vmem:[#allocation10 + $0x10] sm:$0xf0]  ;;  %v4848_v59 = vor.u32 %v7002_v30, %v7007_v35 }
  0xfd   : > { %2946 = vmatpush.bf16.msra.mxu2 %v4768_v45  ;;  %2920 = vmatpush.bf16.msra.mxu0 %v4480_v46  ;;  %v4720_v45 = vor.u32 %v6990_v23, %v6996_v8  ;;  %v1086_v52 = vxor.u32 %v1070_v31, %v1054_v10  ;;  %v1079_v39 = vxor.u32 %v1063_v36, %v1047_v27  ;;  %v7024_v12 = vld [vmem:[#allocation10 + $0x104] sm:$0xf]  ;;  %v7026_v14 = vld [vmem:[#allocation10 + $0x110] sm:$0xf0] }
  0xfe   : > { %2934 = vmatpush.bf16.msra.mxu1 %v4608_v58  ;;  %v1094_v15 = vmul.u32 2246822507, %v1078_v37  ;;  %v1087_v18 = vxor.u32 %v1071_v43, %v1055_v38  ;;  %v964_v58 = vmax.f32 %v6967_v55, %v948_v40  ;;  %v965_v0 = vmax.f32 %v6980_v57, %v949_v42  ;;  %v7038_v30 = vld [vmem:[#allocation10 + $0x4f0] sm:$0xf0]  ;;  %v7047_v35 = vld [vmem:[#allocation10 + $0x5e4] sm:$0xf] }
  0xff   : > { %v1102_v24 = vmul.u32 2246822507, %v1086_v52  ;;  %v1095_v23 = vmul.u32 2246822507, %v1079_v39  ;;  %v4432_v10 = vor.u32 %v7016_v48, %v7018_v49  ;;  %v7049_v31 = vld [vmem:[#allocation10 + $0x5f0] sm:$0xf0] }
 0x100   : > { %v899_v44 = vpop.f32.mrf.mxu0  ;;  %v925_v46 = vpop.f32.mrf.mxu2  ;;  %2961 = vmatpush.bf16.msra.mxu3 %v4880_v25  ;;  %v1110_v27 = vshrl.u32 %v1094_v15, 13  ;;  %v1103_v38 = vmul.u32 2246822507, %v1087_v18  ;;  %v4560_v25 = vor.u32 %v7024_v12, %v7026_v14  ;;  %v5960_v36 = vld [vmem:[#allocation10 + $0x224] sm:$0xf] }
 0x101   : > { %v900_v54 = vadd.f32 %v899_v44, %v500_v63  ;;  %v913_v56 = vpop.f32.mrf.mxu1  ;;  %2947 = vmatpush.bf16.msra.mxu2 %v4752_v19  ;;  %v7033_v63 = vld [vmem:[#allocation10 + $0x4e4] sm:$0xf]  ;;  %2921 = vmatpush.bf16.msra.mxu0 %v4464_v61  ;;  %v939_v55 = vpop.f32.mrf.mxu3  ;;  %v1118_v22 = vshrl.u32 %v1102_v24, 13  ;;  %v1111_v40 = vshrl.u32 %v1095_v23, 13  ;;  %v1222_v42 = vmul.f32 1.4285715, %v964_v58 }
 0x102   : > { %v7031_v20 = vadd.f32 %v913_v56, %v501_v7  ;;  %v7042_v7 = vadd.f32 %v925_v46, %v502_v32  ;;  %2935 = vmatpush.bf16.msra.mxu1 %v4592_v28  ;;  %v1126_v61 = vxor.u32 %v1110_v27, %v1094_v15  ;;  %v1119_v43 = vshrl.u32 %v1103_v38, 13  ;;  %v4701_v44 = vld [vmem:[#allocation10 + $0x230] sm:$0xf0]  ;;  %v5992_v46 = vld [vmem:[#allocation10 + $0x324] sm:$0xf] }
 0x103   : > { %v956_v8 = vmul.f32 0.2, %v900_v54  ;;  %v1134_v37 = vxor.u32 %v1118_v22, %v1102_v24  ;;  %v5056_v28 = vor.u32 %v7033_v63, %v7038_v30  ;;  %v1223_v48 = vmul.f32 1.4285715, %v965_v0  ;;  %v4829_v14 = vld [vmem:[#allocation10 + $0x330] sm:$0xf0] }
 0x104   : > { %v957_v19 = vmul.f32 0.2, %v7031_v20  ;;  %v7055_v49 = vadd.f32 %v939_v55, %v503_v33  ;;  %2962 = vmatpush.bf16.msra.mxu3 %v4864_v34  ;;  %v1142_v52 = vmul.u32 3266489909, %v1126_v61  ;;  %v1127_v39 = vxor.u32 %v1111_v40, %v1095_v23  ;;  %v5956_v24 = vld [vmem:[#allocation10 + $0x204] sm:$0xf] }
 0x105   : > { %v972_v57 = vmax.f32 %v900_v54, %v956_v8  ;;  %2948 = vmatpush.bf16.msra.mxu2 %v4736_v29  ;;  %2922 = vmatpush.bf16.msra.mxu0 %v4448_v41  ;;  %v7058_v54 = vmul.f32 0.2, %v7042_v7  ;;  %v1150_v56 = vmul.u32 3266489909, %v1134_v37  ;;  %v1135_v12 = vxor.u32 %v1119_v43, %v1103_v38  ;;  %v4685_v27 = vld [vmem:[#allocation10 + $0x210] sm:$0xf0] }
 0x106   : > { %v973_v29 = vmax.f32 %v7031_v20, %v957_v19  ;;  %2936 = vmatpush.bf16.msra.mxu1 %v4576_v26  ;;  %v1158_v18 = vshrl.u32 %v1142_v52, 16  ;;  %v1143_v58 = vmul.u32 3266489909, %v1127_v39  ;;  %v989_v0 = vadd.s32 768, %v6711_v3  ;;  %v5988_v22 = vld [vmem:[#allocation10 + $0x304] sm:$0xf] }
 0x107   : > { %v1230_v15 = vmul.f32 1.4285715, %v972_v57  ;;  %v1166_v34 = vshrl.u32 %v1150_v56, 16  ;;  %v1151_v41 = vmul.u32 3266489909, %v1135_v12  ;;  %v5184_v23 = vor.u32 %v7047_v35, %v7049_v31 }
 0x108   : > { %v4704_v8 = vor.u32 %v5960_v36, %v4701_v44  ;;  %v951_v20 = vmul.f32 0.2, %v7055_v49  ;;  %2963 = vmatpush.bf16.msra.mxu3 %v4848_v59  ;;  %v1174_v26 = vxor.u32 %v1158_v18, %v1142_v52  ;;  %v1159_v55 = vshrl.u32 %v1143_v58, 16  ;;  %v4813_v40 = vld [vmem:[#allocation10 + $0x310] sm:$0xf0] }
 0x109   : > { %2949 = vmatpush.bf16.msra.mxu2 %v4720_v45  ;;  %2923 = vmatpush.bf16.msra.mxu0 %v4432_v10  ;;  %v4832_v19 = vor.u32 %v5992_v46, %v4829_v14  ;;  %v966_v38 = vmax.f32 %v7042_v7, %v7058_v54  ;;  %v1231_v57 = vmul.f32 1.4285715, %v973_v29  ;;  %v1182_v45 = vxor.u32 %v1166_v34, %v1150_v56  ;;  %v6044_v43 = vld [vmem:[#allocation10 + $0x4c4] sm:$0xf]  ;;  %v5037_v44 = vld [vmem:[#allocation10 + $0x4d0] sm:$0xf0] }
 0x10a   : > { %2937 = vmatpush.bf16.msra.mxu1 %v4560_v25  ;;  %v1167_v61 = vshrl.u32 %v1151_v41, 16  ;;  %v7067_v37 = vpack.c.bf16 %v1230_v15, %v1222_v42  ;;  %v1190_v35 = vshrl.u32 %v1174_v26, 9  ;;  %v1175_v31 = vxor.u32 %v1159_v55, %v1143_v58  ;;  %v6076_v25 = vld [vmem:[#allocation10 + $0x5c4] sm:$0xf]  ;;  %v5165_v15 = vld [vmem:[#allocation10 + $0x5d0] sm:$0xf0] }
 0x10b   : > { %v999_v36 = vadd.s32 %v6714_v4, %v989_v0  ;;  %v1198_v59 = vshrl.u32 %v1182_v45, 9  ;;  %v4688_v52 = vor.u32 %v5956_v24, %v4685_v27  ;;  %v1007_v39 = vadd.s32 %v6717_v5, %v989_v0  ;;  %v5021_v26 = vld [vmem:[#allocation10 + $0x4b0] sm:$0xf0]  ;;  %v6072_v45 = vld [vmem:[#allocation10 + $0x5a4] sm:$0xf] }
 0x10c   : > { %v1183_v10 = vxor.u32 %v1167_v61, %v1151_v41  ;;  %vm1206_vm12 = vcmp.lt.s32.totalorder %v1190_v35, 5872025  ;;  %v1191_v7 = vshrl.u32 %v1175_v31, 9  ;;  %2964 = vmatpush.bf16.msra.mxu3 %v4832_v19  ;;  %v4816_v46 = vor.u32 %v5988_v22, %v4813_v40  ;;  %v6040_v41 = vld [vmem:[#allocation10 + $0x4a4] sm:$0xf] }
 0x10d   : > { %2950 = vmatpush.bf16.msra.mxu2 %v4704_v8  ;;  %v990_v42 = vadd.s32 896, %v6711_v3  ;;  %v7072_v54 = vpack.c.bf16 %v1231_v57, %v1223_v48  ;;  %vm1214_vm13 = vcmp.lt.s32.totalorder %v1198_v59, 5872025  ;;  %v1015_v56 = vmul.u32 2654435761, %v999_v36  ;;  %v927_v8 = vpop.f32.mrf.mxu2 }
 0x10e   : > { %v1199_v29 = vshrl.u32 %v1183_v10, 9  ;;  %v967_v12 = vmax.f32 %v7055_v49, %v951_v20  ;;  %vm7075_vm14 = vmpackc.low %vm1214_vm13, %vm1206_vm12  ;;  %vm1207_vm15 = vcmp.lt.s32.totalorder %v1191_v7, 5872025  ;;  %v1023_v18 = vmul.u32 2654435761, %v1007_v39 }
 0x10f   : > { %v1000_v58 = vadd.s32 %v6714_v4, %v990_v42  ;;  %5463 = vmatmul.msk.bf16.vlgmr.msrb.gmra.mxu0 %vm7075_vm14, %v7067_v37  ;;  %v1032_v48 = vadd.s32 %v6730_v13, %v1015_v56  ;;  %v1008_v24 = vadd.s32 %v6717_v5, %v990_v42  ;;  %v5040_v0 = vor.u32 %v6044_v43, %v5037_v44  ;;  %v5149_v61 = vld [vmem:[#allocation10 + $0x5b0] sm:$0xf0]  ;;  %v6036_v10 = vld [vmem:[#allocation10 + $0x484] sm:$0xf]  ;;  %v6157_v14 = vld [vmem:[#allocation12 + $0x44] sm:$0xf0] }
 0x110   : > { %vm1215_vm0 = vcmp.lt.s32.totalorder %v1199_v29, 5872025  ;;  %2972 = vmatpush.bf16.msrb.mxu0 %v5056_v28  ;;  %2965 = vmatpush.bf16.msra.mxu3 %v4816_v46  ;;  %v1040_v4 = vadd.s32 %v6730_v13, %v1023_v18  ;;  %v5168_v5 = vor.u32 %v6076_v25, %v5165_v15  ;;  %v7096_v55 = vmul.f32 1.4285715, %v966_v38  ;;  %v941_v28 = vpop.f32.mrf.mxu3  ;;  %v6068_v7 = vld [vmem:[#allocation10 + $0x584] sm:$0xf] }
 0x111   : > { %2951 = vmatpush.bf16.msra.mxu2 %v4688_v52  ;;  %vm7085_vm1 = vmpackc.low %vm1215_vm0, %vm1207_vm15  ;;  %v1016_v34 = vmul.u32 2654435761, %v1000_v58  ;;  %v1048_v27 = vadd.s32 2654435769, %v1032_v48  ;;  %v1024_v20 = vmul.u32 2654435761, %v1008_v24  ;;  %v928_v40 = vadd.f32 %v927_v8, %v502_v32 }
 0x112   : > { %5466 = vmatmul.msk.bf16.vlgmr.msrb.gmra.mxu1 %vm7085_vm1, %v7072_v54  ;;  %v7098_v19 = vmul.f32 1.4285715, %v967_v12  ;;  %v1056_v63 = vadd.s32 2654435769, %v1040_v4  ;;  %v5024_v38 = vor.u32 %v6040_v41, %v5021_v26  ;;  %v942_v43 = vadd.f32 %v941_v28, %v503_v33  ;;  %v5133_v42 = vld [vmem:[#allocation10 + $0x590] sm:$0xf0] }
 0x113   : > { %2986 = vmatpush.bf16.msrb.mxu1 %v5184_v23  ;;  %v1033_v30 = vadd.s32 %v6730_v13, %v1016_v34  ;;  %v1064_v22 = vshrl.u32 %v1048_v27, 16  ;;  %v1041_v57 = vadd.s32 %v6730_v13, %v1024_v20  ;;  %v5005_v23 = vld [vmem:[#allocation10 + $0x490] sm:$0xf0]  ;;  %v5152_v39 = vor.u32 %v6072_v45, %v5149_v61  ;;  %v6032_v58 = vld [vmem:[#allocation10 + $0x464] sm:$0xf] }
 0x114   : > { %2973 = vmatpush.bf16.msrb.mxu0 %v5040_v0  ;;  %v1072_v35 = vshrl.u32 %v1056_v63, 16  ;;  %v958_v32 = vmul.f32 0.2, %v928_v40  ;;  %v5008_v12 = vor.u32 %v6036_v10, %v5005_v23  ;;  %v4989_v48 = vld [vmem:[#allocation10 + $0x470] sm:$0xf0]  ;;  %v5136_v0 = vor.u32 %v6068_v7, %v5133_v42 }
 0x115   : > { %v1049_v31 = vadd.s32 2654435769, %v1033_v30  ;;  %v1080_v36 = vxor.u32 %v1064_v22, %v1048_v27  ;;  %v1057_v59 = vadd.s32 2654435769, %v1041_v57  ;;  %v959_v24 = vmul.f32 0.2, %v942_v43 }
 0x116   : > { %v1088_v44 = vxor.u32 %v1072_v35, %v1056_v63  ;;  %v6064_v41 = vld [vmem:[#allocation10 + $0x564] sm:$0xf]  ;;  %v5117_v8 = vld [vmem:[#allocation10 + $0x570] sm:$0xf0]  ;;  %v4992_v26 = vor.u32 %v6032_v58, %v4989_v48  ;;  %v6093_v49 = vld [vmem:[#allocation10 + $0x64c] sm:$0xf] }
 0x117   : > { %2987 = vmatpush.bf16.msrb.mxu1 %v5168_v5  ;;  %v1065_v52 = vshrl.u32 %v1049_v31, 16  ;;  %v1096_v25 = vmul.u32 2246822507, %v1080_v36  ;;  %v1073_v46 = vshrl.u32 %v1057_v59, 16  ;;  %v974_v5 = vmax.f32 %v928_v40, %v958_v32  ;;  %v6028_v63 = vld [vmem:[#allocation10 + $0x444] sm:$0xf] }
 0x118   : > { %v1104_v29 = vmul.u32 2246822507, %v1088_v44  ;;  %2974 = vmatpush.bf16.msrb.mxu0 %v5024_v38  ;;  %v4973_v22 = vld [vmem:[#allocation10 + $0x450] sm:$0xf0]  ;;  %v975_v57 = vmax.f32 %v942_v43, %v959_v24  ;;  %v5120_v35 = vor.u32 %v6064_v41, %v5117_v8  ;;  %v6060_v40 = vld [vmem:[#allocation10 + $0x544] sm:$0xf] }
 0x119   : > { %v1081_v56 = vxor.u32 %v1065_v52, %v1049_v31  ;;  %v1112_v15 = vshrl.u32 %v1096_v25, 13  ;;  %v1089_v18 = vxor.u32 %v1073_v46, %v1057_v59  ;;  %v5101_v36 = vld [vmem:[#allocation10 + $0x550] sm:$0xf0]  ;;  %v1232_v59 = vmul.f32 1.4285715, %v974_v5 }
 0x11a   : > { %v1120_v9 = vshrl.u32 %v1104_v29, 13  ;;  %v6112_v44 = vld [vmem:[#allocation10 + $0x6e4] sm:$0xf]  ;;  %v4976_v52 = vor.u32 %v6028_v63, %v4973_v22  ;;  %v1233_v46 = vmul.f32 1.4285715, %v975_v57 }
 0x11b   : > { %v1097_v33 = vmul.u32 2246822507, %v1081_v56  ;;  %2988 = vmatpush.bf16.msrb.mxu1 %v5152_v39  ;;  %v1128_v4 = vxor.u32 %v1112_v15, %v1096_v25  ;;  %v1105_v34 = vmul.u32 2246822507, %v1089_v18  ;;  %v6024_v7 = vld [vmem:[#allocation10 + $0x424] sm:$0xf]  ;;  %v5104_v56 = vor.u32 %v6060_v40, %v5101_v36 }
 0x11c   : > { %v1136_v27 = vxor.u32 %v1120_v9, %v1104_v29  ;;  %2975 = vmatpush.bf16.msrb.mxu0 %v5008_v12  ;;  %v4957_v25 = vld [vmem:[#allocation10 + $0x430] sm:$0xf0]  ;;  %v6144_v18 = vld [vmem:[#allocation10 + $0x7e4] sm:$0xf]  ;;  %v7113_v9 = vpack.c.bf16 %v1232_v59, %v7096_v55  ;;  %v4675_v40 = vld [vmem:[#allocation10 + $0x1e8] sm:$0xf] }
 0x11d   : > { %v1113_v20 = vshrl.u32 %v1097_v33, 13  ;;  %v1144_v30 = vmul.u32 3266489909, %v1128_v4  ;;  %v1121_v28 = vshrl.u32 %v1105_v34, 13  ;;  %v5309_v29 = vld [vmem:[#allocation10 + $0x6f0] sm:$0xf0]  ;;  %v4960_v41 = vor.u32 %v6024_v7, %v4957_v25 }
 0x11e   : > { %v1152_v45 = vmul.u32 3266489909, %v1136_v27  ;;  %v5437_v58 = vld [vmem:[#allocation10 + $0x7f0] sm:$0xf0]  ;;  %v6056_v48 = vld [vmem:[#allocation10 + $0x524] sm:$0xf]  ;;  %v5312_v5 = vor.u32 %v6112_v44, %v5309_v29 }
 0x11f   : > { %v1129_v61 = vxor.u32 %v1113_v20, %v1097_v33  ;;  %2989 = vmatpush.bf16.msrb.mxu1 %v5136_v0  ;;  %v1160_v31 = vshrl.u32 %v1144_v30, 16  ;;  %v1137_v38 = vxor.u32 %v1121_v28, %v1105_v34  ;;  %5475 = vmatmul.msk.bf16.vlgmr.msra.gmra.mxu0 %vm6805_vm4, %v6809_v17  ;;  %v5085_v24 = vld [vmem:[#allocation10 + $0x530] sm:$0xf0]  ;;  %v6108_v4 = vld [vmem:[#allocation10 + $0x6c4] sm:$0xf]  ;;  %v7116_v28 = vpack.c.bf16 %v1233_v46, %v7098_v19 }
 0x120   : > { %v1168_v10 = vshrl.u32 %v1152_v45, 16  ;;  %2976 = vmatpush.bf16.msrb.mxu0 %v4992_v26  ;;  %v5293_v34 = vld [vmem:[#allocation10 + $0x6d0] sm:$0xf0]  ;;  %v6020_v27 = vld [vmem:[#allocation10 + $0x404] sm:$0xf]  ;;  %v5088_v63 = vor.u32 %v6056_v48, %v5085_v24 }
 0x121   : > { %v1145_v23 = vmul.u32 3266489909, %v1129_v61  ;;  %v1176_v39 = vxor.u32 %v1160_v31, %v1144_v30  ;;  %v1153_v43 = vmul.u32 3266489909, %v1137_v38  ;;  %v4941_v20 = vld [vmem:[#allocation10 + $0x410] sm:$0xf0]  ;;  %v5296_v19 = vor.u32 %v6108_v4, %v5293_v34 }
 0x122   : > { %5478 = vmatmul.msk.bf16.vlgmr.msra.gmra.mxu1 %vm6815_vm5, %v6823_v21  ;;  %v1184_v42 = vxor.u32 %v1168_v10, %v1152_v45  ;;  %v6052_v30 = vld [vmem:[#allocation10 + $0x504] sm:$0xf]  ;;  %v5069_v45 = vld [vmem:[#allocation10 + $0x510] sm:$0xf0]  ;;  %v4547_v61 = vld [vmem:[#allocation10 + $0xe8] sm:$0xf]  ;;  %v4944_v31 = vor.u32 %v6020_v27, %v4941_v20 }
 0x123   : > { %v1161_v32 = vshrl.u32 %v1145_v23, 16  ;;  %2990 = vmatpush.bf16.msrb.mxu1 %v5120_v35  ;;  %v1192_v12 = vshrl.u32 %v1176_v39, 9  ;;  %v1169_v15 = vshrl.u32 %v1153_v43, 16  ;;  %v6140_v57 = vld [vmem:[#allocation10 + $0x7c4] sm:$0xf]  ;;  %v5440_v35 = vor.u32 %v6144_v18, %v5437_v58 }
 0x124   : > { %v1200_v33 = vshrl.u32 %v1184_v42, 9  ;;  %2977 = vmatpush.bf16.msrb.mxu0 %v4976_v52  ;;  %v5923_v38 = vld [vmem:[#allocation10 + $0xf4] sm:$0xf0]  ;;  %v5421_v36 = vld [vmem:[#allocation10 + $0x7d0] sm:$0xf0]  ;;  %v5072_v39 = vor.u32 %v6052_v30, %v5069_v45 }
 0x125   : > { %v1177_v0 = vxor.u32 %v1161_v32, %v1145_v23  ;;  %vm1208_vm2 = vcmp.lt.s32.totalorder %v1192_v12, 5872025  ;;  %v1185_v8 = vxor.u32 %v1169_v15, %v1153_v43  ;;  %v4548_v59 = vor.u32 %v5923_v38, %v4547_v61  ;;  %v5955_v10 = vld [vmem:[#allocation10 + $0x1f4] sm:$0xf0]  ;;  %v6104_v44 = vld [vmem:[#allocation10 + $0x6a4] sm:$0xf] }
 0x126   : > { %vm1216_vm3 = vcmp.lt.s32.totalorder %v1200_v33, 5872025  ;;  %v5277_v52 = vld [vmem:[#allocation10 + $0x6b0] sm:$0xf0]  ;;  %v4676_v43 = vor.u32 %v5955_v10, %v4675_v40  ;;  %v4531_v7 = vld [vmem:[#allocation10 + $0xc8] sm:$0xf]  ;;  %v5424_v46 = vor.u32 %v6140_v57, %v5421_v36 }
 0x127   : > { %v1193_v26 = vshrl.u32 %v1177_v0, 9  ;;  %2991 = vmatpush.bf16.msrb.mxu1 %v5104_v56  ;;  %vm7118_vm6 = vmpackc.low %vm1216_vm3, %vm1208_vm2  ;;  %v1201_v22 = vshrl.u32 %v1185_v8, 9  ;;  %v5919_v25 = vld [vmem:[#allocation10 + $0xd4] sm:$0xf0]  ;;  %v4659_v42 = vld [vmem:[#allocation10 + $0x1c8] sm:$0xf]  ;;  %v5280_v29 = vor.u32 %v6104_v44, %v5277_v52 }
 0x128   : > { %5469 = vmatmul.msk.bf16.vlgmr.msrb.gmra.mxu2 %vm7118_vm6, %v7113_v9  ;;  %2978 = vmatpush.bf16.msrb.mxu0 %v4960_v41  ;;  %v5951_v32 = vld [vmem:[#allocation10 + $0x1d4] sm:$0xf0]  ;;  %v6136_v56 = vld [vmem:[#allocation10 + $0x7a4] sm:$0xf]  ;;  %v5405_v12 = vld [vmem:[#allocation10 + $0x7b0] sm:$0xf0]  ;;  %v4532_v58 = vor.u32 %v5919_v25, %v4531_v7 }
 0x129   : > { %vm1209_vm7 = vcmp.lt.s32.totalorder %v1193_v26, 5872025  ;;  %vm1217_vm8 = vcmp.lt.s32.totalorder %v1201_v22, 5872025  ;;  %3000 = vmatpush.bf16.msrb.mxu2 %v5312_v5  ;;  %v6100_v15 = vld [vmem:[#allocation10 + $0x684] sm:$0xf]  ;;  %v4660_v48 = vor.u32 %v5951_v32, %v4659_v42  ;;  %v5408_v0 = vor.u32 %v6136_v56, %v5405_v12 }
 0x12a   : > { %vm7125_vm9 = vmpackc.low %vm1217_vm8, %vm1209_vm7  ;;  %v5261_v18 = vld [vmem:[#allocation10 + $0x690] sm:$0xf0]  ;;  %v4515_v24 = vld [vmem:[#allocation10 + $0xa8] sm:$0xf] }
 0x12b   : > { %2992 = vmatpush.bf16.msrb.mxu1 %v5088_v63  ;;  %5472 = vmatmul.msk.bf16.vlgmr.msrb.gmra.mxu3 %vm7125_vm9, %v7116_v28  ;;  %v5915_v33 = vld [vmem:[#allocation10 + $0xb4] sm:$0xf0]  ;;  %v4643_v4 = vld [vmem:[#allocation10 + $0x1a8] sm:$0xf]  ;;  %v5264_v41 = vor.u32 %v6100_v15, %v5261_v18  ;;  %v6132_v8 = vld [vmem:[#allocation10 + $0x784] sm:$0xf] }
 0x12c   : > { %3014 = vmatpush.bf16.msrb.mxu3 %v5440_v35  ;;  %2979 = vmatpush.bf16.msrb.mxu0 %v4944_v31  ;;  %v5947_v34 = vld [vmem:[#allocation10 + $0x1b4] sm:$0xf0]  ;;  %v5389_v5 = vld [vmem:[#allocation10 + $0x790] sm:$0xf0]  ;;  %v6096_v27 = vld [vmem:[#allocation10 + $0x664] sm:$0xf]  ;;  %v4516_v26 = vor.u32 %v5915_v33, %v4515_v24 }
 0x12d   : > { %3001 = vmatpush.bf16.msrb.mxu2 %v5296_v19  ;;  %v5245_v20 = vld [vmem:[#allocation10 + $0x670] sm:$0xf0]  ;;  %v4644_v63 = vor.u32 %v5947_v34, %v4643_v4  ;;  %v4499_v30 = vld [vmem:[#allocation10 + $0x88] sm:$0xf]  ;;  %v5911_v22 = vld [vmem:[#allocation10 + $0x94] sm:$0xf0]  ;;  %v5392_v57 = vor.u32 %v6132_v8, %v5389_v5 }
 0x12e   : > { %v4627_v45 = vld [vmem:[#allocation10 + $0x188] sm:$0xf]  ;;  %v5943_v61 = vld [vmem:[#allocation10 + $0x194] sm:$0xf0]  ;;  %v5248_v35 = vor.u32 %v6096_v27, %v5245_v20  ;;  %v6128_v31 = vld [vmem:[#allocation10 + $0x764] sm:$0xf]  ;;  %v4500_v36 = vor.u32 %v5911_v22, %v4499_v30 }
 0x12f   : > { %2993 = vmatpush.bf16.msrb.mxu1 %v5072_v39  ;;  %5487 = vmatmul.msk.bf16.vlgmr.msrb.gmra.mxu0 %vm7075_vm14, %v7067_v37  ;;  %v5373_v38 = vld [vmem:[#allocation10 + $0x770] sm:$0xf0]  ;;  %v6092_v40 = vld [vmem:[#allocation10 + $0x644] sm:$0xf]  ;;  %v4483_v10 = vld [vmem:[#allocation10 + $0x68] sm:$0xf] }
 0x130   : > { %3028 = vmatpush.bf16.msra.mxu0 %v4548_v59  ;;  %3015 = vmatpush.bf16.msrb.mxu3 %v5424_v46  ;;  %v5229_v19 = vld [vmem:[#allocation10 + $0x650] sm:$0xf0]  ;;  %v4628_v59 = vor.u32 %v5943_v61, %v4627_v45  ;;  %v5907_v44 = vld [vmem:[#allocation10 + $0x74] sm:$0xf0]  ;;  %v5376_v52 = vor.u32 %v6128_v31, %v5373_v38  ;;  %v4611_v39 = vld [vmem:[#allocation10 + $0x168] sm:$0xf] }
 0x131   : > { %3002 = vmatpush.bf16.msrb.mxu2 %v5280_v29  ;;  %v5232_v7 = vor.u32 %v6092_v40, %v5229_v19  ;;  %v6124_v25 = vld [vmem:[#allocation10 + $0x744] sm:$0xf]  ;;  %v5357_v46 = vld [vmem:[#allocation10 + $0x750] sm:$0xf0]  ;;  %v4484_v29 = vor.u32 %v5907_v44, %v4483_v10  ;;  %v4467_v12 = vld [vmem:[#allocation10 + $0x48] sm:$0xf] }
 0x132   : > { %5490 = vmatmul.msk.bf16.vlgmr.msrb.gmra.mxu1 %vm7085_vm1, %v7072_v54  ;;  %v6088_v42 = vld [vmem:[#allocation10 + $0x624] sm:$0xf]  ;;  %v5213_v32 = vld [vmem:[#allocation10 + $0x630] sm:$0xf0]  ;;  %v5903_v15 = vld [vmem:[#allocation10 + $0x54] sm:$0xf0]  ;;  %v5360_v18 = vor.u32 %v6124_v25, %v5357_v46 }
 0x133   : > { %3042 = vmatpush.bf16.msra.mxu1 %v4676_v43  ;;  %v5939_v43 = vld [vmem:[#allocation10 + $0x174] sm:$0xf0]  ;;  %v5216_v24 = vor.u32 %v6088_v42, %v5213_v32  ;;  %v6120_v33 = vld [vmem:[#allocation10 + $0x724] sm:$0xf]  ;;  %v5197_v34 = vld [vmem:[#allocation10 + $0x610] sm:$0xf0]  ;;  %v4468_v8 = vor.u32 %v5903_v15, %v4467_v12 }
 0x134   : > { %3029 = vmatpush.bf16.msra.mxu0 %v4532_v58  ;;  %3016 = vmatpush.bf16.msrb.mxu3 %v5408_v0  ;;  %v4612_v56 = vor.u32 %v5939_v43, %v4611_v39  ;;  %v4595_v58 = vld [vmem:[#allocation10 + $0x148] sm:$0xf]  ;;  %v5341_v0 = vld [vmem:[#allocation10 + $0x730] sm:$0xf0]  ;;  %v6084_v4 = vld [vmem:[#allocation10 + $0x604] sm:$0xf] }
 0x135   : > { %3003 = vmatpush.bf16.msrb.mxu2 %v5264_v41  ;;  %v4803_v41 = vld [vmem:[#allocation10 + $0x2e8] sm:$0xf]  ;;  %v5987_v5 = vld [vmem:[#allocation10 + $0x2f4] sm:$0xf0]  ;;  %v6116_v45 = vld [vmem:[#allocation10 + $0x704] sm:$0xf] }
 0x136   : > { %v4451_v20 = vld [vmem:[#allocation10 + $0x28] sm:$0xf]  ;;  %v5931_v22 = vld [vmem:[#allocation10 + $0x134] sm:$0xf0]  ;;  %v5325_v61 = vld [vmem:[#allocation10 + $0x710] sm:$0xf0] }
 0x137   : > { %3043 = vmatpush.bf16.msra.mxu1 %v4660_v48  ;;  %v5935_v48 = vld [vmem:[#allocation10 + $0x154] sm:$0xf0]  ;;  %v4579_v30 = vld [vmem:[#allocation10 + $0x128] sm:$0xf]  ;;  %v6158_v23 = vld [vmem:[#allocation12 + $0x54] sm:$0xf] }
 0x138   : > { %3030 = vmatpush.bf16.msra.mxu0 %v4516_v26  ;;  %3017 = vmatpush.bf16.msrb.mxu3 %v5392_v57  ;;  %v4596_v27 = vor.u32 %v5935_v48, %v4595_v58  ;;  %v5899_v26 = vld [vmem:[#allocation10 + $0x34] sm:$0xf0]  ;;  %v5200_v57 = vor.u32 %v6084_v4, %v5197_v34  ;;  %v4931_v31 = vld [vmem:[#allocation10 + $0x3e8] sm:$0xf] }
 0x139   : > { %5481 = vmatmul.msk.bf16.vlgmr.msra.gmra.mxu2 %vm6871_vm10, %v6882_v60  ;;  %v6019_v38 = vld [vmem:[#allocation10 + $0x3f4] sm:$0xf0]  ;;  %v4787_v40 = vld [vmem:[#allocation10 + $0x2c8] sm:$0xf]  ;;  %v4452_v19 = vor.u32 %v5899_v26, %v4451_v20 }
 0x13a   : > { %3004 = vmatpush.bf16.msrb.mxu2 %v5248_v35  ;;  %v4804_v35 = vor.u32 %v5987_v5, %v4803_v41  ;;  %v4435_v10 = vld [vmem:[#allocation10 + $0x8] sm:$0xf]  ;;  %v5895_v44 = vld [vmem:[#allocation10 + $0x14] sm:$0xf0]  ;;  %v4932_v25 = vor.u32 %v6019_v38, %v4931_v31 }
 0x13b   : > { %3044 = vmatpush.bf16.msra.mxu1 %v4644_v63  ;;  %5484 = vmatmul.msk.bf16.vlgmr.msra.gmra.mxu3 %vm6888_vm11, %v6900_v16  ;;  %v5344_v63 = vor.u32 %v6120_v33, %v5341_v0  ;;  %v4563_v39 = vld [vmem:[#allocation10 + $0x108] sm:$0xf]  ;;  %v5927_v43 = vld [vmem:[#allocation10 + $0x114] sm:$0xf0]  ;;  %v4436_v15 = vor.u32 %v5895_v44, %v4435_v10 }
 0x13c   : > { %3031 = vmatpush.bf16.msra.mxu0 %v4500_v36  ;;  %3018 = vmatpush.bf16.msrb.mxu3 %v5376_v52  ;;  %v5983_v36 = vld [vmem:[#allocation10 + $0x2d4] sm:$0xf0]  ;;  %v5328_v52 = vor.u32 %v6116_v45, %v5325_v61  ;;  %v5187_v42 = vld [vmem:[#allocation10 + $0x5e8] sm:$0xf]  ;;  %v4564_v48 = vor.u32 %v5927_v43, %v4563_v39 }
 0x13d   : > { %v6051_v46 = vld [vmem:[#allocation10 + $0x4f4] sm:$0xf0]  ;;  %v5043_v0 = vld [vmem:[#allocation10 + $0x4c8] sm:$0xf] }
 0x13e   : > { %3005 = vmatpush.bf16.msrb.mxu2 %v5232_v7  ;;  %v5059_v7 = vld [vmem:[#allocation10 + $0x4e8] sm:$0xf]  ;;  %v6083_v32 = vld [vmem:[#allocation10 + $0x5f4] sm:$0xf0] }
 0x13f   : > { %3045 = vmatpush.bf16.msra.mxu1 %v4628_v59  ;;  %v4580_v59 = vor.u32 %v5931_v22, %v4579_v30  ;;  %v6015_v12 = vld [vmem:[#allocation10 + $0x3d4] sm:$0xf0]  ;;  %v5188_v33 = vor.u32 %v6083_v32, %v5187_v42  ;;  %v5171_v41 = vld [vmem:[#allocation10 + $0x5c8] sm:$0xf] }
 0x140   : > { %3032 = vmatpush.bf16.msra.mxu0 %v4484_v29  ;;  %3019 = vmatpush.bf16.msrb.mxu3 %v5360_v18  ;;  %v4788_v29 = vor.u32 %v5983_v36, %v4787_v40  ;;  %v4771_v18 = vld [vmem:[#allocation10 + $0x2a8] sm:$0xf]  ;;  %v5979_v58 = vld [vmem:[#allocation10 + $0x2b4] sm:$0xf0] }
 0x141   : > { %v6047_v34 = vld [vmem:[#allocation10 + $0x4d4] sm:$0xf0]  ;;  %v4772_v5 = vor.u32 %v5979_v58, %v4771_v18  ;;  %v4755_v26 = vld [vmem:[#allocation10 + $0x288] sm:$0xf] }
 0x142   : > { %3006 = vmatpush.bf16.msrb.mxu2 %v5216_v24  ;;  %v5060_v24 = vor.u32 %v6051_v46, %v5059_v7  ;;  %v6011_v20 = vld [vmem:[#allocation10 + $0x3b4] sm:$0xf0]  ;;  %v5044_v30 = vor.u32 %v6047_v34, %v5043_v0  ;;  %v4883_v40 = vld [vmem:[#allocation10 + $0x388] sm:$0xf] }
 0x143   : > { %3046 = vmatpush.bf16.msra.mxu1 %v4612_v56  ;;  %v4915_v56 = vld [vmem:[#allocation10 + $0x3c8] sm:$0xf]  ;;  %v6043_v61 = vld [vmem:[#allocation10 + $0x4b4] sm:$0xf0] }
 0x144   : > { %3033 = vmatpush.bf16.msra.mxu0 %v4468_v8  ;;  %3020 = vmatpush.bf16.msrb.mxu3 %v5344_v63  ;;  %v4916_v4 = vor.u32 %v6015_v12, %v4915_v56  ;;  %v6079_v8 = vld [vmem:[#allocation10 + $0x5d4] sm:$0xf0]  ;;  %v4739_v36 = vld [vmem:[#allocation10 + $0x268] sm:$0xf] }
 0x145   : > { %v5975_v63 = vld [vmem:[#allocation10 + $0x294] sm:$0xf0]  ;;  %v5172_v22 = vor.u32 %v6079_v8, %v5171_v41  ;;  %v5139_v7 = vld [vmem:[#allocation10 + $0x588] sm:$0xf] }
 0x146   : > { %3007 = vmatpush.bf16.msrb.mxu2 %v5200_v57  ;;  %v5027_v57 = vld [vmem:[#allocation10 + $0x4a8] sm:$0xf]  ;;  %v6075_v31 = vld [vmem:[#allocation10 + $0x5b4] sm:$0xf0]  ;;  %v4756_v38 = vor.u32 %v5975_v63, %v4755_v26 }
 0x147   : > { %3047 = vmatpush.bf16.msra.mxu1 %v4596_v27  ;;  %v4899_v27 = vld [vmem:[#allocation10 + $0x3a8] sm:$0xf]  ;;  %v5028_v10 = vor.u32 %v6043_v61, %v5027_v57  ;;  %v6039_v43 = vld [vmem:[#allocation10 + $0x494] sm:$0xf0] }
 0x148   : > { %3034 = vmatpush.bf16.msra.mxu0 %v4452_v19  ;;  %3021 = vmatpush.bf16.msrb.mxu3 %v5328_v52  ;;  %v4900_v45 = vor.u32 %v6011_v20, %v4899_v27  ;;  %v6007_v19 = vld [vmem:[#allocation10 + $0x394] sm:$0xf0]  ;;  %v5011_v52 = vld [vmem:[#allocation10 + $0x488] sm:$0xf] }
 0x149   : > { %5493 = vmatmul.msk.bf16.vlgmr.msrb.gmra.mxu2 %vm7118_vm6, %v7113_v9  ;;  %v4884_v39 = vor.u32 %v6007_v19, %v4883_v40  ;;  %v4867_v42 = vld [vmem:[#allocation10 + $0x368] sm:$0xf]  ;;  %v6003_v32 = vld [vmem:[#allocation10 + $0x374] sm:$0xf0]  ;;  %v5012_v12 = vor.u32 %v6039_v43, %v5011_v52 }
 0x14a   : > { %3056 = vmatpush.bf16.msra.mxu2 %v4804_v35  ;;  %v5155_v35 = vld [vmem:[#allocation10 + $0x5a8] sm:$0xf]  ;;  %v5967_v56 = vld [vmem:[#allocation10 + $0x254] sm:$0xf0]  ;;  %v4868_v58 = vor.u32 %v6003_v32, %v4867_v42 }
 0x14b   : > { %3048 = vmatpush.bf16.msra.mxu1 %v4580_v59  ;;  %5496 = vmatmul.msk.bf16.vlgmr.msrb.gmra.mxu3 %vm7125_vm9, %v7116_v28  ;;  %v5971_v59 = vld [vmem:[#allocation10 + $0x274] sm:$0xf0]  ;;  %v5156_v44 = vor.u32 %v6075_v31, %v5155_v35  ;;  %v4995_v18 = vld [vmem:[#allocation10 + $0x468] sm:$0xf] }
 0x14c   : > { %3070 = vmatpush.bf16.msra.mxu3 %v4932_v25  ;;  %3035 = vmatpush.bf16.msra.mxu0 %v4436_v15  ;;  %v6071_v25 = vld [vmem:[#allocation10 + $0x594] sm:$0xf0]  ;;  %v4740_v46 = vor.u32 %v5971_v59, %v4739_v36  ;;  %v4707_v41 = vld [vmem:[#allocation10 + $0x228] sm:$0xf] }
 0x14d   : > { %v5140_v15 = vor.u32 %v6071_v25, %v5139_v7  ;;  %v5999_v34 = vld [vmem:[#allocation10 + $0x354] sm:$0xf0]  ;;  %v4979_v20 = vld [vmem:[#allocation10 + $0x448] sm:$0xf] }
 0x14e   : > { %3057 = vmatpush.bf16.msra.mxu2 %v4788_v29  ;;  %v4723_v29 = vld [vmem:[#allocation10 + $0x248] sm:$0xf]  ;;  %v5963_v8 = vld [vmem:[#allocation10 + $0x234] sm:$0xf0] }
 0x14f   : > { %3049 = vmatpush.bf16.msra.mxu1 %v4564_v48  ;;  %5499 = vmatmul.msk.bf16.vlgmr.msra.gmra.mxu0 %vm6805_vm4, %v6809_v17  ;;  %v6035_v48 = vld [vmem:[#allocation10 + $0x474] sm:$0xf0]  ;;  %v4724_v0 = vor.u32 %v5967_v56, %v4723_v29  ;;  %v4708_v57 = vor.u32 %v5963_v8, %v4707_v41  ;;  %v4691_v35 = vld [vmem:[#allocation10 + $0x208] sm:$0xf]  ;;  %v4549_v41 = vld [vmem:[#allocation10 + $0xf8] sm:$0xf0] }
 0x150   : > { %3084 = vmatpush.bf16.msrb.mxu0 %v5060_v24  ;;  %3071 = vmatpush.bf16.msra.mxu3 %v4916_v4  ;;  %v5123_v24 = vld [vmem:[#allocation10 + $0x568] sm:$0xf]  ;;  %v6031_v63 = vld [vmem:[#allocation10 + $0x454] sm:$0xf0] }
 0x151   : > { %v4851_v4 = vld [vmem:[#allocation10 + $0x348] sm:$0xf]  ;;  %v5995_v61 = vld [vmem:[#allocation10 + $0x334] sm:$0xf0]  ;;  %v4980_v19 = vor.u32 %v6031_v63, %v4979_v20  ;;  %v4677_v20 = vld [vmem:[#allocation10 + $0x1f8] sm:$0xf0] }
 0x152   : > { %3058 = vmatpush.bf16.msra.mxu2 %v4772_v5  ;;  %5502 = vmatmul.msk.bf16.vlgmr.msra.gmra.mxu1 %vm6815_vm5, %v6823_v21  ;;  %v4996_v5 = vor.u32 %v6035_v48, %v4995_v18  ;;  %v4852_v26 = vor.u32 %v5999_v34, %v4851_v4  ;;  %v5959_v31 = vld [vmem:[#allocation10 + $0x214] sm:$0xf0]  ;;  %v4963_v59 = vld [vmem:[#allocation10 + $0x428] sm:$0xf]  ;;  %v5921_v34 = vld [vmem:[#allocation10 + $0xec] sm:$0xf] }
 0x153   : > { %3098 = vmatpush.bf16.msrb.mxu1 %v5188_v33  ;;  %v6067_v33 = vld [vmem:[#allocation10 + $0x574] sm:$0xf0]  ;;  %v5091_v52 = vld [vmem:[#allocation10 + $0x528] sm:$0xf]  ;;  %v4692_v43 = vor.u32 %v5959_v31, %v4691_v35  ;;  %v5917_v31 = vld [vmem:[#allocation10 + $0xcc] sm:$0xf] }
 0x154   : > { %3085 = vmatpush.bf16.msrb.mxu0 %v5044_v30  ;;  %3072 = vmatpush.bf16.msra.mxu3 %v4900_v45  ;;  %v5124_v27 = vor.u32 %v6067_v33, %v5123_v24  ;;  %v5107_v30 = vld [vmem:[#allocation10 + $0x548] sm:$0xf]  ;;  %v6115_v40 = vld [vmem:[#allocation10 + $0x6f4] sm:$0xf0] }
 0x155   : > { %v4835_v45 = vld [vmem:[#allocation10 + $0x328] sm:$0xf]  ;;  %v5991_v25 = vld [vmem:[#allocation10 + $0x314] sm:$0xf0] }
 0x156   : > { %3059 = vmatpush.bf16.msra.mxu2 %v4756_v38  ;;  %v5315_v38 = vld [vmem:[#allocation10 + $0x6e8] sm:$0xf]  ;;  %v6147_v32 = vld [vmem:[#allocation10 + $0x7f4] sm:$0xf0] }
 0x157   : > { %3099 = vmatpush.bf16.msrb.mxu1 %v5172_v22  ;;  %v6063_v22 = vld [vmem:[#allocation10 + $0x554] sm:$0xf0]  ;;  %v4819_v7 = vld [vmem:[#allocation10 + $0x308] sm:$0xf] }
 0x158   : > { %3086 = vmatpush.bf16.msrb.mxu0 %v5028_v10  ;;  %3073 = vmatpush.bf16.msra.mxu3 %v4884_v39  ;;  %v5108_v36 = vor.u32 %v6063_v22, %v5107_v30  ;;  %v4836_v10 = vor.u32 %v5995_v61, %v4835_v45  ;;  %v6059_v39 = vld [vmem:[#allocation10 + $0x534] sm:$0xf0]  ;;  %v5443_v42 = vld [vmem:[#allocation10 + $0x7e8] sm:$0xf]  ;;  %v4820_v18 = vor.u32 %v5991_v25, %v4819_v7  ;;  %v5913_v25 = vld [vmem:[#allocation10 + $0xac] sm:$0xf] }
 0x159   : > { %v5299_v29 = vld [vmem:[#allocation10 + $0x6c8] sm:$0xf]  ;;  %v6111_v56 = vld [vmem:[#allocation10 + $0x6d4] sm:$0xf0] }
 0x15a   : > { %3060 = vmatpush.bf16.msra.mxu2 %v4740_v46  ;;  %v5316_v46 = vor.u32 %v6115_v40, %v5315_v38  ;;  %v4947_v48 = vld [vmem:[#allocation10 + $0x408] sm:$0xf]  ;;  %v6023_v24 = vld [vmem:[#allocation10 + $0x414] sm:$0xf0]  ;;  %v5300_v8 = vor.u32 %v6111_v56, %v5299_v29  ;;  %v4533_v38 = vld [vmem:[#allocation10 + $0xd8] sm:$0xf0] }
 0x15b   : > { %3100 = vmatpush.bf16.msrb.mxu1 %v5156_v44  ;;  %v6027_v44 = vld [vmem:[#allocation10 + $0x434] sm:$0xf0]  ;;  %v5075_v33 = vld [vmem:[#allocation10 + $0x508] sm:$0xf]  ;;  %v4948_v30 = vor.u32 %v6023_v24, %v4947_v48  ;;  %v5945_v29 = vld [vmem:[#allocation10 + $0x1ac] sm:$0xf] }
 0x15c   : > { %3087 = vmatpush.bf16.msrb.mxu0 %v5012_v12  ;;  %3074 = vmatpush.bf16.msra.mxu3 %v4868_v58  ;;  %v4964_v12 = vor.u32 %v6027_v44, %v4963_v59  ;;  %v5427_v58 = vld [vmem:[#allocation10 + $0x7c8] sm:$0xf]  ;;  %v6055_v4 = vld [vmem:[#allocation10 + $0x514] sm:$0xf0]  ;;  %v4661_v59 = vld [vmem:[#allocation10 + $0x1d8] sm:$0xf0] }
 0x15d   : > { %v6107_v63 = vld [vmem:[#allocation10 + $0x6b4] sm:$0xf0]  ;;  %v5076_v22 = vor.u32 %v6055_v4, %v5075_v33  ;;  %v5411_v61 = vld [vmem:[#allocation10 + $0x7a8] sm:$0xf]  ;;  %v4645_v56 = vld [vmem:[#allocation10 + $0x1b8] sm:$0xf0] }
 0x15e   : > { %3061 = vmatpush.bf16.msra.mxu2 %v4724_v0  ;;  %v5444_v0 = vor.u32 %v6147_v32, %v5443_v42  ;;  %v6103_v44 = vld [vmem:[#allocation10 + $0x694] sm:$0xf0]  ;;  %v5379_v48 = vld [vmem:[#allocation10 + $0x768] sm:$0xf]  ;;  %v4648_v24 = vor.u32 %v5945_v29, %v4645_v56  ;;  %v5909_v33 = vld [vmem:[#allocation10 + $0x8c] sm:$0xf] }
 0x15f   : > { %3101 = vmatpush.bf16.msrb.mxu1 %v5140_v15  ;;  %v5092_v15 = vor.u32 %v6059_v39, %v5091_v52  ;;  %v4536_v52 = vor.u32 %v5917_v31, %v4533_v38  ;;  %v6135_v32 = vld [vmem:[#allocation10 + $0x794] sm:$0xf0]  ;;  %v4613_v31 = vld [vmem:[#allocation10 + $0x178] sm:$0xf0]  ;;  %v5219_v38 = vld [vmem:[#allocation10 + $0x628] sm:$0xf] }
 0x160   : > { %3088 = vmatpush.bf16.msrb.mxu0 %v4996_v5  ;;  %3075 = vmatpush.bf16.msra.mxu3 %v4852_v26  ;;  %v6143_v5 = vld [vmem:[#allocation10 + $0x7d4] sm:$0xf0]  ;;  %v5283_v26 = vld [vmem:[#allocation10 + $0x6a8] sm:$0xf]  ;;  %v4805_v29 = vld [vmem:[#allocation10 + $0x2f8] sm:$0xf0] }
 0x161   : > { %v5428_v45 = vor.u32 %v6143_v5, %v5427_v58  ;;  %v5284_v40 = vor.u32 %v6107_v63, %v5283_v26  ;;  %v5235_v5 = vld [vmem:[#allocation10 + $0x648] sm:$0xf] }
 0x162   : > { %3062 = vmatpush.bf16.msra.mxu2 %v4708_v57  ;;  %v4552_v57 = vor.u32 %v5921_v34, %v4549_v41  ;;  %v6131_v34 = vld [vmem:[#allocation10 + $0x774] sm:$0xf0]  ;;  %v5941_v41 = vld [vmem:[#allocation10 + $0x18c] sm:$0xf]  ;;  %v5363_v63 = vld [vmem:[#allocation10 + $0x748] sm:$0xf] }
 0x163   : > { %3102 = vmatpush.bf16.msrb.mxu1 %v5124_v27  ;;  %v5953_v27 = vld [vmem:[#allocation10 + $0x1ec] sm:$0xf]  ;;  %v5380_v26 = vor.u32 %v6131_v34, %v5379_v48  ;;  %v4933_v34 = vld [vmem:[#allocation10 + $0x3f8] sm:$0xf0] }
 0x164   : > { %3089 = vmatpush.bf16.msrb.mxu0 %v4980_v19  ;;  %3076 = vmatpush.bf16.msra.mxu3 %v4836_v10  ;;  %v4680_v35 = vor.u32 %v5953_v27, %v4677_v20  ;;  %v6139_v19 = vld [vmem:[#allocation10 + $0x7b4] sm:$0xf0]  ;;  %v5267_v10 = vld [vmem:[#allocation10 + $0x688] sm:$0xf] }
 0x165   : > { %v5412_v39 = vor.u32 %v6139_v19, %v5411_v61  ;;  %v5268_v42 = vor.u32 %v6103_v44, %v5267_v10  ;;  %v6095_v27 = vld [vmem:[#allocation10 + $0x654] sm:$0xf0]  ;;  %v5901_v44 = vld [vmem:[#allocation10 + $0x4c] sm:$0xf] }
 0x166   : > { %3063 = vmatpush.bf16.msra.mxu2 %v4692_v43  ;;  %v5395_v43 = vld [vmem:[#allocation10 + $0x788] sm:$0xf]  ;;  %v6127_v61 = vld [vmem:[#allocation10 + $0x754] sm:$0xf0] }
 0x167   : > { %3103 = vmatpush.bf16.msrb.mxu1 %v5108_v36  ;;  %v5949_v36 = vld [vmem:[#allocation10 + $0x1cc] sm:$0xf]  ;;  %v5396_v58 = vor.u32 %v6135_v32, %v5395_v43  ;;  %v6123_v43 = vld [vmem:[#allocation10 + $0x734] sm:$0xf0] }
 0x168   : > { %3090 = vmatpush.bf16.msrb.mxu0 %v4964_v12  ;;  %3077 = vmatpush.bf16.msra.mxu3 %v4820_v18  ;;  %v4664_v7 = vor.u32 %v5949_v36, %v4661_v59  ;;  %v5251_v12 = vld [vmem:[#allocation10 + $0x668] sm:$0xf]  ;;  %v5364_v36 = vor.u32 %v6127_v61, %v5363_v63  ;;  %v5985_v32 = vld [vmem:[#allocation10 + $0x2ec] sm:$0xf] }
 0x169   : > { %5505 = vmatmul.msk.bf16.vlgmr.msra.gmra.mxu2 %vm6871_vm10, %v6882_v60  ;;  %v5347_v59 = vld [vmem:[#allocation10 + $0x728] sm:$0xf]  ;;  %v6013_v63 = vld [vmem:[#allocation10 + $0x3cc] sm:$0xf] }
 0x16a   : > { %3112 = vmatpush.bf16.msrb.mxu2 %v5316_v46  ;;  %v4517_v46 = vld [vmem:[#allocation10 + $0xb8] sm:$0xf0] }
 0x16b   : > { %3104 = vmatpush.bf16.msrb.mxu1 %v5092_v15  ;;  %5508 = vmatmul.msk.bf16.vlgmr.msra.gmra.mxu3 %vm6888_vm11, %v6900_v16  ;;  %v6099_v15 = vld [vmem:[#allocation10 + $0x674] sm:$0xf0]  ;;  %v4520_v18 = vor.u32 %v5913_v25, %v4517_v46  ;;  %v4597_v25 = vld [vmem:[#allocation10 + $0x158] sm:$0xf0]  ;;  %v5203_v46 = vld [vmem:[#allocation10 + $0x608] sm:$0xf] }
 0x16c   : > { %3126 = vmatpush.bf16.msrb.mxu3 %v5444_v0  ;;  %3091 = vmatpush.bf16.msrb.mxu0 %v4948_v30  ;;  %v4501_v0 = vld [vmem:[#allocation10 + $0x98] sm:$0xf0]  ;;  %v5252_v4 = vor.u32 %v6099_v15, %v5251_v12  ;;  %v5348_v12 = vor.u32 %v6123_v43, %v5347_v59 }
 0x16d   : > { %v4504_v20 = vor.u32 %v5909_v33, %v4501_v0  ;;  %v6119_v33 = vld [vmem:[#allocation10 + $0x714] sm:$0xf0]  ;;  %v6017_v0 = vld [vmem:[#allocation10 + $0x3ec] sm:$0xf]  ;;  %v4773_v59 = vld [vmem:[#allocation10 + $0x2b8] sm:$0xf0] }
 0x16e   : > { %3113 = vmatpush.bf16.msrb.mxu2 %v5300_v8  ;;  %v4629_v8 = vld [vmem:[#allocation10 + $0x198] sm:$0xf0] }
 0x16f   : > { %3105 = vmatpush.bf16.msrb.mxu1 %v5076_v22  ;;  %5511 = vmatmul.msk.bf16.vlgmr.msrb.gmra.mxu0 %vm7075_vm14, %v7067_v37  ;;  %v4632_v30 = vor.u32 %v5941_v41, %v4629_v8  ;;  %v5905_v22 = vld [vmem:[#allocation10 + $0x6c] sm:$0xf]  ;;  %v4581_v8 = vld [vmem:[#allocation10 + $0x138] sm:$0xf0] }
 0x170   : > { %3140 = vmatpush.bf16.msra.mxu0 %v4552_v57  ;;  %3127 = vmatpush.bf16.msrb.mxu3 %v5428_v45  ;;  %v4485_v57 = vld [vmem:[#allocation10 + $0x78] sm:$0xf0]  ;;  %v5236_v45 = vor.u32 %v6095_v27, %v5235_v5  ;;  %v5929_v41 = vld [vmem:[#allocation10 + $0x12c] sm:$0xf] }
 0x171   : > { %v4488_v19 = vor.u32 %v5905_v22, %v4485_v57  ;;  %v5981_v5 = vld [vmem:[#allocation10 + $0x2cc] sm:$0xf]  ;;  %v4789_v27 = vld [vmem:[#allocation10 + $0x2d8] sm:$0xf0]  ;;  %v4936_v57 = vor.u32 %v6017_v0, %v4933_v34  ;;  %v4584_v61 = vor.u32 %v5929_v41, %v4581_v8 }
 0x172   : > { %3114 = vmatpush.bf16.msrb.mxu2 %v5284_v40  ;;  %5514 = vmatmul.msk.bf16.vlgmr.msrb.gmra.mxu1 %vm7085_vm1, %v7072_v54  ;;  %v6091_v40 = vld [vmem:[#allocation10 + $0x634] sm:$0xf0]  ;;  %v4437_v22 = vld [vmem:[#allocation10 + $0x18] sm:$0xf0]  ;;  %v6041_v0 = vld [vmem:[#allocation10 + $0x4ac] sm:$0xf] }
 0x173   : > { %3154 = vmatpush.bf16.msra.mxu1 %v4680_v35  ;;  %v5937_v35 = vld [vmem:[#allocation10 + $0x16c] sm:$0xf]  ;;  %v4885_v8 = vld [vmem:[#allocation10 + $0x398] sm:$0xf0] }
 0x174   : > { %3141 = vmatpush.bf16.msra.mxu0 %v4536_v52  ;;  %3128 = vmatpush.bf16.msrb.mxu3 %v5412_v39  ;;  %v4616_v10 = vor.u32 %v5937_v35, %v4613_v31  ;;  %v4469_v52 = vld [vmem:[#allocation10 + $0x58] sm:$0xf0]  ;;  %v5220_v39 = vor.u32 %v6091_v40, %v5219_v38  ;;  %v6049_v35 = vld [vmem:[#allocation10 + $0x4ec] sm:$0xf]  ;;  %v4792_v38 = vor.u32 %v5981_v5, %v4789_v27 }
 0x175   : > { %v4472_v56 = vor.u32 %v5901_v44, %v4469_v52  ;;  %v5061_v31 = vld [vmem:[#allocation10 + $0x4f8] sm:$0xf0]  ;;  %v5977_v40 = vld [vmem:[#allocation10 + $0x2ac] sm:$0xf] }
 0x176   : > { %3115 = vmatpush.bf16.msrb.mxu2 %v5268_v42  ;;  %v6087_v42 = vld [vmem:[#allocation10 + $0x614] sm:$0xf0]  ;;  %v6081_v44 = vld [vmem:[#allocation10 + $0x5ec] sm:$0xf]  ;;  %v5189_v52 = vld [vmem:[#allocation10 + $0x5f8] sm:$0xf0] }
 0x177   : > { %3155 = vmatpush.bf16.msra.mxu1 %v4664_v7  ;;  %v5933_v7 = vld [vmem:[#allocation10 + $0x14c] sm:$0xf]  ;;  %v5204_v48 = vor.u32 %v6087_v42, %v5203_v46  ;;  %v5045_v46 = vld [vmem:[#allocation10 + $0x4d8] sm:$0xf0]  ;;  %v4776_v42 = vor.u32 %v5977_v40, %v4773_v59 }
 0x178   : > { %3142 = vmatpush.bf16.msra.mxu0 %v4520_v18  ;;  %3129 = vmatpush.bf16.msrb.mxu3 %v5396_v58  ;;  %v4600_v15 = vor.u32 %v5933_v7, %v4597_v25  ;;  %v5897_v18 = vld [vmem:[#allocation10 + $0x2c] sm:$0xf]  ;;  %v4453_v58 = vld [vmem:[#allocation10 + $0x38] sm:$0xf0] }
 0x179   : > { %v6045_v25 = vld [vmem:[#allocation10 + $0x4cc] sm:$0xf]  ;;  %v4725_v40 = vld [vmem:[#allocation10 + $0x258] sm:$0xf0] }
 0x17a   : > { %3116 = vmatpush.bf16.msrb.mxu2 %v5252_v4  ;;  %v4808_v4 = vor.u32 %v5985_v32, %v4805_v29  ;;  %v6009_v32 = vld [vmem:[#allocation10 + $0x3ac] sm:$0xf]  ;;  %v4901_v29 = vld [vmem:[#allocation10 + $0x3b8] sm:$0xf0] }
 0x17b   : > { %3156 = vmatpush.bf16.msra.mxu1 %v4648_v24  ;;  %v5331_v24 = vld [vmem:[#allocation10 + $0x708] sm:$0xf]  ;;  %v6005_v41 = vld [vmem:[#allocation10 + $0x38c] sm:$0xf] }
 0x17c   : > { %3143 = vmatpush.bf16.msra.mxu0 %v4504_v20  ;;  %3130 = vmatpush.bf16.msrb.mxu3 %v5380_v26  ;;  %v4456_v20 = vor.u32 %v5897_v18, %v4453_v58  ;;  %v5332_v26 = vor.u32 %v6119_v33, %v5331_v24  ;;  %v6077_v18 = vld [vmem:[#allocation10 + $0x5cc] sm:$0xf]  ;;  %v5173_v58 = vld [vmem:[#allocation10 + $0x5d8] sm:$0xf0]  ;;  %v7174_v24 = vpop.f32.mrf.mxu0  ;;  %v4904_v33 = vor.u32 %v6009_v32, %v4901_v29 }
 0x17d   : > { %v5969_v5 = vld [vmem:[#allocation10 + $0x26c] sm:$0xf]  ;;  %v5176_v27 = vor.u32 %v6077_v18, %v5173_v58  ;;  %v5125_v32 = vld [vmem:[#allocation10 + $0x578] sm:$0xf0] }
 0x17e   : > { %3117 = vmatpush.bf16.msrb.mxu2 %v5236_v45  ;;  %v4917_v45 = vld [vmem:[#allocation10 + $0x3d8] sm:$0xf0]  ;;  %v6033_v59 = vld [vmem:[#allocation10 + $0x46c] sm:$0xf] }
 0x17f   : > { %3157 = vmatpush.bf16.msra.mxu1 %v4632_v30  ;;  %v5893_v30 = vld [vmem:[#allocation10 + $0xc] sm:$0xf]  ;;  %v4920_v43 = vor.u32 %v6013_v63, %v4917_v45  ;;  %v5157_v63 = vld [vmem:[#allocation10 + $0x5b8] sm:$0xf0] }
 0x180   : > { %3144 = vmatpush.bf16.msra.mxu0 %v4488_v19  ;;  %3131 = vmatpush.bf16.msrb.mxu3 %v5364_v36  ;;  %v5925_v19 = vld [vmem:[#allocation10 + $0x10c] sm:$0xf]  ;;  %v4565_v36 = vld [vmem:[#allocation10 + $0x118] sm:$0xf0] }
 0x181   : > { %v4568_v7 = vor.u32 %v5925_v19, %v4565_v36  ;;  %v5013_v45 = vld [vmem:[#allocation10 + $0x498] sm:$0xf0]  ;;  %v6069_v19 = vld [vmem:[#allocation10 + $0x58c] sm:$0xf] }
 0x182   : > { %3118 = vmatpush.bf16.msrb.mxu2 %v5220_v39  ;;  %v5064_v39 = vor.u32 %v6049_v35, %v5061_v31  ;;  %v6001_v35 = vld [vmem:[#allocation10 + $0x36c] sm:$0xf]  ;;  %v4869_v31 = vld [vmem:[#allocation10 + $0x378] sm:$0xf0] }
 0x183   : > { %3158 = vmatpush.bf16.msra.mxu1 %v4616_v10  ;;  %v4440_v10 = vor.u32 %v5893_v30, %v4437_v22  ;;  %v4888_v22 = vor.u32 %v6005_v41, %v4885_v8  ;;  %v5141_v36 = vld [vmem:[#allocation10 + $0x598] sm:$0xf0]  ;;  %v6061_v41 = vld [vmem:[#allocation10 + $0x54c] sm:$0xf] }
 0x184   : > { %3145 = vmatpush.bf16.msra.mxu0 %v4472_v56  ;;  %3132 = vmatpush.bf16.msrb.mxu3 %v5348_v12  ;;  %v5973_v56 = vld [vmem:[#allocation10 + $0x28c] sm:$0xf]  ;;  %v5192_v12 = vor.u32 %v6081_v44, %v5189_v52  ;;  %v4981_v18 = vld [vmem:[#allocation10 + $0x458] sm:$0xf0] }
 0x185   : > { %v5997_v52 = vld [vmem:[#allocation10 + $0x34c] sm:$0xf]  ;;  %v5109_v8 = vld [vmem:[#allocation10 + $0x558] sm:$0xf0] }
 0x186   : > { %3119 = vmatpush.bf16.msrb.mxu2 %v5204_v48  ;;  %v5048_v48 = vor.u32 %v6045_v25, %v5045_v46  ;;  %v7184_v25 = vpop.f32.mrf.mxu0  ;;  %v4709_v46 = vld [vmem:[#allocation10 + $0x238] sm:$0xf0] }
 0x187   : > { %3159 = vmatpush.bf16.msra.mxu1 %v4600_v15  ;;  %v4757_v15 = vld [vmem:[#allocation10 + $0x298] sm:$0xf0] }
 0x188   : > { %3146 = vmatpush.bf16.msra.mxu0 %v4456_v20  ;;  %3133 = vmatpush.bf16.msrb.mxu3 %v5332_v26  ;;  %v4760_v34 = vor.u32 %v5973_v56, %v4757_v15  ;;  %v4741_v20 = vld [vmem:[#allocation10 + $0x278] sm:$0xf0]  ;;  %v6073_v26 = vld [vmem:[#allocation10 + $0x5ac] sm:$0xf]  ;;  %v7189_v56 = vld [vmem:[%s7397_s5] sm:$0xf] }
 0x189   : > { %5517 = vmatmul.msk.bf16.vlgmr.msrb.gmra.mxu2 %vm7118_vm6, %v7113_v9  ;;  %v5160_v11 = vor.u32 %v6073_v26, %v5157_v63  ;;  %v6029_v15 = vld [vmem:[#allocation10 + $0x44c] sm:$0xf] }
 0x18a   : > { %3168 = vmatpush.bf16.msra.mxu2 %v4808_v4  ;;  %v5029_v4 = vld [vmem:[#allocation10 + $0x4b8] sm:$0xf0]  ;;  %v4984_v26 = vor.u32 %v6029_v15, %v4981_v18  ;;  %v7209_v18 = vpop.f32.mrf.mxu3 }
 0x18b   : > { %3160 = vmatpush.bf16.msra.mxu1 %v4584_v61  ;;  %5520 = vmatmul.msk.bf16.vlgmr.msrb.gmra.mxu3 %vm7125_vm9, %v7116_v28  ;;  %v5032_v30 = vor.u32 %v6041_v0, %v5029_v4  ;;  %v4744_v61 = vor.u32 %v5969_v5, %v4741_v20  ;;  %v5957_v0 = vld [vmem:[#allocation10 + $0x20c] sm:$0xf]  ;;  %v1516_v5 = vperm.slane %v7189_v56, 0  ;;  %v5317_v20 = vld [vmem:[#allocation10 + $0x6f8] sm:$0xf0] }
 0x18c   : > { %3182 = vmatpush.bf16.msra.mxu3 %v4936_v57  ;;  %3147 = vmatpush.bf16.msra.mxu0 %v4440_v10  ;;  %v6037_v57 = vld [vmem:[#allocation10 + $0x48c] sm:$0xf]  ;;  %v4997_v10 = vld [vmem:[#allocation10 + $0x478] sm:$0xf0] }
 0x18d   : > { %v5016_v53 = vor.u32 %v6037_v57, %v5013_v45  ;;  %v5000_v29 = vor.u32 %v6033_v59, %v4997_v10  ;;  %v6025_v57 = vld [vmem:[#allocation10 + $0x42c] sm:$0xf]  ;;  %v4965_v45 = vld [vmem:[#allocation10 + $0x438] sm:$0xf0] }
 0x18e   : > { %3169 = vmatpush.bf16.msra.mxu2 %v4792_v38  ;;  %v5965_v38 = vld [vmem:[#allocation10 + $0x24c] sm:$0xf]  ;;  %v5093_v10 = vld [vmem:[#allocation10 + $0x538] sm:$0xf0] }
 0x18f   : > { %3161 = vmatpush.bf16.msra.mxu1 %v4568_v7  ;;  %5523 = vmatmul.msk.bf16.vlgmr.msra.gmra.mxu0 %vm6805_vm4, %v6809_v17  ;;  %v7182_v17 = vpop.f32.mrf.mxu1  ;;  %v4728_v44 = vor.u32 %v5965_v38, %v4725_v40  ;;  %v5144_v7 = vor.u32 %v6069_v19, %v5141_v36  ;;  %v5112_v38 = vor.u32 %v6061_v41, %v5109_v8  ;;  %v7198_v40 = vmul.u32 512, %v6709_v2  ;;  %v2841_v19 = vpop.f32.mrf.mxu2  ;;  %v6057_v59 = vld [vmem:[#allocation10 + $0x52c] sm:$0xf]  ;;  %v4949_v15 = vld [vmem:[#allocation10 + $0x418] sm:$0xf0] }
 0x190   : > { %3196 = vmatpush.bf16.msrb.mxu0 %v5064_v39  ;;  %3183 = vmatpush.bf16.msra.mxu3 %v4920_v43  ;;  %v4853_v39 = vld [vmem:[#allocation10 + $0x358] sm:$0xf0]  ;;  %v5961_v43 = vld [vmem:[#allocation10 + $0x22c] sm:$0xf] }
 0x191   : > { %v4712_v58 = vor.u32 %v5961_v43, %v4709_v46  ;;  %v2814_v46 = vadd.f32 %v7174_v24, %v1516_v5  ;;  %v6053_v8 = vld [vmem:[#allocation10 + $0x50c] sm:$0xf]  ;;  %v5077_v24 = vld [vmem:[#allocation10 + $0x518] sm:$0xf0] }
 0x192   : > { %3170 = vmatpush.bf16.msra.mxu2 %v4776_v42  ;;  %5526 = vmatmul.msk.bf16.vlgmr.msra.gmra.mxu1 %vm6815_vm5, %v6823_v21  ;;  %v4872_v21 = vor.u32 %v6001_v35, %v4869_v31  ;;  %v6065_v42 = vld [vmem:[#allocation10 + $0x56c] sm:$0xf]  ;;  %v4821_v35 = vld [vmem:[#allocation10 + $0x318] sm:$0xf0] }
 0x193   : > { %3210 = vmatpush.bf16.msrb.mxu1 %v5192_v12  ;;  %v4856_v12 = vor.u32 %v5997_v52, %v4853_v39  ;;  %v5128_v4 = vor.u32 %v6065_v42, %v5125_v32  ;;  %v6145_v31 = vld [vmem:[#allocation10 + $0x7ec] sm:$0xf]  ;;  %v5301_v52 = vld [vmem:[#allocation10 + $0x6d8] sm:$0xf0]  ;;  %v4968_v39 = vor.u32 %v6025_v57, %v4965_v45  ;;  %v2828_v45 = vadd.f32 %v7182_v17, %v2814_v46 }
 0x194   : > { %3197 = vmatpush.bf16.msrb.mxu0 %v5048_v48  ;;  %3184 = vmatpush.bf16.msra.mxu3 %v4904_v33  ;;  %v5993_v48 = vld [vmem:[#allocation10 + $0x32c] sm:$0xf]  ;;  %v4837_v33 = vld [vmem:[#allocation10 + $0x338] sm:$0xf0]  ;;  %v5080_v17 = vor.u32 %v6053_v8, %v5077_v24 }
 0x195   : > { %v6141_v32 = vld [vmem:[#allocation10 + $0x7cc] sm:$0xf]  ;;  %v2842_v46 = vadd.f32 %v2841_v19, %v2828_v45  ;;  %v5397_v19 = vld [vmem:[#allocation10 + $0x798] sm:$0xf0] }
 0x196   : > { %3171 = vmatpush.bf16.msra.mxu2 %v4760_v34  ;;  %v4693_v34 = vld [vmem:[#allocation10 + $0x218] sm:$0xf0]  ;;  %v6129_v45 = vld [vmem:[#allocation10 + $0x76c] sm:$0xf] }
 0x197   : > { %3211 = vmatpush.bf16.msrb.mxu1 %v5176_v27  ;;  %v6113_v27 = vld [vmem:[#allocation10 + $0x6ec] sm:$0xf]  ;;  %v7192_v63 = vpop.f32.mrf.mxu1 }
 0x198   : > { %3198 = vmatpush.bf16.msrb.mxu0 %v5032_v30  ;;  %3185 = vmatpush.bf16.msra.mxu3 %v4888_v22  ;;  %v4840_v30 = vor.u32 %v5993_v48, %v4837_v33  ;;  %v5989_v22 = vld [vmem:[#allocation10 + $0x30c] sm:$0xf]  ;;  %v5320_v36 = vor.u32 %v6113_v27, %v5317_v20  ;;  %v5096_v33 = vor.u32 %v6057_v59, %v5093_v10  ;;  %v5285_v20 = vld [vmem:[#allocation10 + $0x6b8] sm:$0xf0]  ;;  %v5595_v10 = vld [vmem:[#allocation12 + $0x60] sm:$0xf] }
 0x199   : > { %v4824_v42 = vor.u32 %v5989_v22, %v4821_v35  ;;  %v6105_v48 = vld [vmem:[#allocation10 + $0x6ac] sm:$0xf]  ;;  %v6179_v22 = vld [vmem:[#allocation12 + $0xf4] sm:$0xf0] }
 0x19a   : > { %3172 = vmatpush.bf16.msra.mxu2 %v4744_v61  ;;  %v4696_v61 = vor.u32 %v5957_v0, %v4693_v34  ;;  %v5603_v0 = vld [vmem:[#allocation12 + $0x70] sm:$0xf]  ;;  %v6137_v35 = vld [vmem:[#allocation10 + $0x7ac] sm:$0xf]  ;;  %v5288_v51 = vor.u32 %v6105_v48, %v5285_v20  ;;  %v2857_v20 = vpop.f32.mrf.mxu3 }
 0x19b   : > { %3212 = vmatpush.bf16.msrb.mxu1 %v5160_v11  ;;  %v7195_v11 = vmul.u32 512, %v6707_v1 }
 0x19c   : > { %3199 = vmatpush.bf16.msrb.mxu0 %v5016_v53  ;;  %3186 = vmatpush.bf16.msra.mxu3 %v4872_v21  ;;  %v5445_v53 = vld [vmem:[#allocation10 + $0x7f8] sm:$0xf0]  ;;  %v7200_v21 = vpop.f32.mrf.mxu0 }
 0x19d   : > { %v3270_v43 = vadd.s32 %v7195_v11, %v6711_v3 }
 0x19e   : > { %3173 = vmatpush.bf16.msra.mxu2 %v4728_v44  ;;  %v6109_v44 = vld [vmem:[#allocation10 + $0x6cc] sm:$0xf] }
 0x19f   : > { %3213 = vmatpush.bf16.msrb.mxu1 %v5144_v7  ;;  %v3274_v7 = vadd.s32 %v7198_v40, %v6711_v3  ;;  %v3278_v34 = vmul.u32 2654435761, %v3270_v43  ;;  %v5304_v41 = vor.u32 %v6109_v44, %v5301_v52  ;;  %v6161_v44 = vld [vmem:[#allocation12 + $0x64] sm:$0xf0] }
 0x1a0   : > { %3200 = vmatpush.bf16.msrb.mxu0 %v5000_v29  ;;  %3187 = vmatpush.bf16.msra.mxu3 %v4856_v12  ;;  %v5429_v29 = vld [vmem:[#allocation10 + $0x7d8] sm:$0xf0]  ;;  %v6021_v12 = vld [vmem:[#allocation10 + $0x40c] sm:$0xf] }
 0x1a1   : > { %v3282_v27 = vmul.u32 2654435761, %v3274_v7  ;;  %v3286_v57 = vadd.s32 %v3278_v34, %v6730_v13  ;;  %v5432_v59 = vor.u32 %v6141_v32, %v5429_v29  ;;  %v2843_v32 = vpop.f32.mrf.mxu2  ;;  %v6097_v34 = vld [vmem:[#allocation10 + $0x66c] sm:$0xf] }
 0x1a2   : > { %3174 = vmatpush.bf16.msra.mxu2 %v4712_v58  ;;  %v5448_v58 = vor.u32 %v6145_v31, %v5445_v53  ;;  %v5413_v31 = vld [vmem:[#allocation10 + $0x7b8] sm:$0xf0]  ;;  %v2816_v53 = vadd.f32 %v7184_v25, %v1516_v5  ;;  %v5659_v25 = vld [vmem:[#allocation12 + $0xe0] sm:$0xf]  ;;  %v6177_v5 = vld [vmem:[#allocation12 + $0xe4] sm:$0xf0] }
 0x1a3   : > { %3214 = vmatpush.bf16.msrb.mxu1 %v5128_v4  ;;  %v6163_v4 = vld [vmem:[#allocation12 + $0x74] sm:$0xf0]  ;;  %v3294_v52 = vadd.s32 1013904242, %v3286_v57  ;;  %v5660_v8 = vor.u32 %v6177_v5, %v5659_v25 }
 0x1a4   : > { %3201 = vmatpush.bf16.msrb.mxu0 %v4984_v26  ;;  %3188 = vmatpush.bf16.msra.mxu3 %v4840_v30  ;;  %v4952_v26 = vor.u32 %v6021_v12, %v4949_v15  ;;  %v5667_v30 = vld [vmem:[#allocation12 + $0xf0] sm:$0xf]  ;;  %v7225_v29 = vpop.f32.mrf.mxu0  ;;  %v6133_v12 = vld [vmem:[#allocation10 + $0x78c] sm:$0xf]  ;;  %v5596_v15 = vor.u32 %v6161_v44, %v5595_v10  ;;  %v2830_v48 = vadd.f32 %v7192_v63, %v2816_v53 }
 0x1a5   : > { %v5668_v43 = vor.u32 %v6179_v22, %v5667_v30  ;;  %v5651_v63 = vld [vmem:[#allocation12 + $0xd0] sm:$0xf]  ;;  %v5400_v57 = vor.u32 %v6133_v12, %v5397_v19  ;;  %v3271_v53 = vadd.s32 %v7195_v11, %v6720_v6 }
 0x1a6   : > { %3175 = vmatpush.bf16.msra.mxu2 %v4696_v61  ;;  %v7216_v61 = vpop.f32.mrf.mxu1  ;;  %v2844_v22 = vadd.f32 %v2843_v32, %v2830_v48 }
 0x1a7   : > { %3215 = vmatpush.bf16.msrb.mxu1 %v5112_v38  ;;  %v5604_v38 = vor.u32 %v6163_v4, %v5603_v0  ;;  %v5587_v0 = vld [vmem:[#allocation12 + $0x50] sm:$0xf] }
 0x1a8   : > { %3202 = vmatpush.bf16.msrb.mxu0 %v4968_v39  ;;  %3189 = vmatpush.bf16.msra.mxu3 %v4824_v42  ;;  %v5269_v39 = vld [vmem:[#allocation10 + $0x698] sm:$0xf0]  ;;  %v3302_v42 = vshrl.u32 %v3294_v52, 16 }
 0x1a9   : > { %5529 = vmatmul.msk.bf16.vlgmr.msra.gmra.mxu2 %vm6871_vm10, %v6882_v60  ;;  %v6101_v60 = vld [vmem:[#allocation10 + $0x68c] sm:$0xf] }
 0x1aa   : > { %3224 = vmatpush.bf16.msrb.mxu2 %v5320_v36  ;;  %v3290_v36 = vadd.s32 %v3282_v27, %v6730_v13  ;;  %v5272_v4 = vor.u32 %v6101_v60, %v5269_v39  ;;  %v2856_v27 = vadd.f32 %v7209_v18, %v2842_v46  ;;  %v3279_v39 = vmul.u32 2654435761, %v3271_v53 }
 0x1ab   : > { %3216 = vmatpush.bf16.msrb.mxu1 %v5096_v33  ;;  %5532 = vmatmul.msk.bf16.vlgmr.msra.gmra.mxu3 %vm6888_vm11, %v6900_v16  ;;  %v5416_v33 = vor.u32 %v6137_v35, %v5413_v31  ;;  %v3310_v16 = vxor.u32 %v3302_v42, %v3294_v52  ;;  %v5381_v35 = vld [vmem:[#allocation10 + $0x778] sm:$0xf0]  ;;  %v5588_v31 = vor.u32 %v6159_v62, %v5587_v0  ;;  %v6089_v62 = vld [vmem:[#allocation10 + $0x62c] sm:$0xf] }
 0x1ac   : > { %3238 = vmatpush.bf16.msrb.mxu3 %v5448_v58  ;;  %v3298_v7 = vadd.s32 1013904242, %v3290_v36  ;;  %3203 = vmatpush.bf16.msrb.mxu0 %v4952_v26  ;;  %v6175_v26 = vld [vmem:[#allocation12 + $0xd4] sm:$0xf0]  ;;  %v2870_v18 = vadd.f32 %v7200_v21, %v2856_v27  ;;  %v5579_v36 = vld [vmem:[#allocation12 + $0x40] sm:$0xf]  ;;  %v2858_v42 = vadd.f32 %v2857_v20, %v2844_v22  ;;  %v5384_v12 = vor.u32 %v6129_v45, %v5381_v35 }
 0x1ad   : > { %v3318_v30 = vmul.u32 2246822507, %v3310_v16  ;;  %v5652_v44 = vor.u32 %v6175_v26, %v5651_v63  ;;  %v6173_v21 = vld [vmem:[#allocation12 + $0xc4] sm:$0xf0]  ;;  %v5580_v46 = vor.u32 %v6157_v14, %v5579_v36  ;;  %v5365_v0 = vld [vmem:[#allocation10 + $0x758] sm:$0xf0]  ;;  %v3287_v20 = vadd.s32 %v3279_v39, %v6730_v13 }
 0x1ae   : > { %3225 = vmatpush.bf16.msrb.mxu2 %v5304_v41  ;;  %v3306_v58 = vshrl.u32 %v3298_v7, 16  ;;  %v5253_v41 = vld [vmem:[#allocation10 + $0x678] sm:$0xf0]  ;;  %v2884_v32 = vadd.f32 %v7216_v61, %v2870_v18  ;;  %v6171_v27 = vld [vmem:[#allocation12 + $0xb4] sm:$0xf0] }
 0x1af   : > { %3217 = vmatpush.bf16.msrb.mxu1 %v5080_v17  ;;  %5535 = vmatmul.msk.bf16.vlgmr.msrb.gmra.mxu0 %vm7075_vm14, %v7067_v37  ;;  %v3326_v37 = vshrl.u32 %v3318_v30, 13  ;;  %v2885_v17 = vpop.f32.mrf.mxu1  ;;  %v5256_v10 = vor.u32 %v6097_v34, %v5253_v41  ;;  %v2872_v34 = vadd.f32 %v7225_v29, %v2858_v42  ;;  %v5221_v61 = vld [vmem:[#allocation10 + $0x638] sm:$0xf0]  ;;  %v6121_v63 = vld [vmem:[#allocation10 + $0x72c] sm:$0xf] }
 0x1b0   : > { %3792 = vmatpush.bf16.msra.mxu0 %v5604_v38  ;;  %3239 = vmatpush.bf16.msrb.mxu3 %v5432_v59  ;;  %v3314_v24 = vxor.u32 %v3306_v58, %v3298_v7  ;;  %v3275_v59 = vadd.s32 %v7198_v40, %v6720_v6  ;;  %v6125_v7 = vld [vmem:[#allocation10 + $0x74c] sm:$0xf]  ;;  %v6155_v58 = vld [vmem:[#allocation12 + $0x34] sm:$0xf0]  ;;  %v6153_v45 = vld [vmem:[#allocation12 + $0x24] sm:$0xf0]  ;;  %v5224_v29 = vor.u32 %v6089_v62, %v5221_v61 }
 0x1b1   : > { %v7240_v60 = vxor.u32 %v3326_v37, %v3318_v30  ;;  %v5368_v22 = vor.u32 %v6125_v7, %v5365_v0  ;;  %v6085_v18 = vld [vmem:[#allocation10 + $0x60c] sm:$0xf]  ;;  %v5205_v36 = vld [vmem:[#allocation10 + $0x618] sm:$0xf0]  ;;  %v2886_v37 = vadd.f32 %v2885_v17, %v2872_v34  ;;  %v6151_v7 = vld [vmem:[#allocation12 + $0x14] sm:$0xf0] }
 0x1b2   : > { %3226 = vmatpush.bf16.msrb.mxu2 %v5288_v51  ;;  %5538 = vmatmul.msk.bf16.vlgmr.msrb.gmra.mxu1 %vm7085_vm1, %v7072_v54  ;;  %v3322_v38 = vmul.u32 2246822507, %v3314_v24  ;;  %v5237_v54 = vld [vmem:[#allocation10 + $0x658] sm:$0xf0]  ;;  %v5643_v51 = vld [vmem:[#allocation12 + $0xc0] sm:$0xf]  ;;  %v5208_v17 = vor.u32 %v6085_v18, %v5205_v36 }
 0x1b3   : > { %3806 = vmatpush.bf16.msra.mxu1 %v5668_v43  ;;  %v2897_v43 = vpop.f32.mrf.mxu2  ;;  %v3283_v5 = vmul.u32 2654435761, %v3275_v59  ;;  %v3342_v48 = vmul.u32 3266489909, %v7240_v60  ;;  %v5240_v19 = vor.u32 %v6093_v49, %v5237_v54  ;;  %v5644_v16 = vor.u32 %v6173_v21, %v5643_v51  ;;  %v5635_v24 = vld [vmem:[#allocation12 + $0xb0] sm:$0xf] }
 0x1b4   : > { %3793 = vmatpush.bf16.msra.mxu0 %v5596_v15  ;;  %3240 = vmatpush.bf16.msrb.mxu3 %v5416_v33  ;;  %v3330_v52 = vshrl.u32 %v3322_v38, 13  ;;  %v5571_v15 = vld [vmem:[#allocation12 + $0x30] sm:$0xf]  ;;  %v7244_v33 = vpop.f32.mrf.mxu0  ;;  %v2898_v41 = vadd.f32 %v2897_v43, %v2884_v32  ;;  %v5636_v14 = vor.u32 %v6171_v27, %v5635_v24  ;;  %v5627_v59 = vld [vmem:[#allocation12 + $0xa0] sm:$0xf]  ;;  %v1517_v54 = vperm.slane %v7189_v56, 1 }
 0x1b5   : > { %v5572_v26 = vor.u32 %v6155_v58, %v5571_v15  ;;  %v3291_v30 = vadd.s32 %v3283_v5, %v6730_v13  ;;  %v3350_v35 = vshrl.u32 %v3342_v48, 16  ;;  %v3295_v49 = vadd.s32 1013904242, %v3287_v20  ;;  %v5555_v43 = vld [vmem:[#allocation12 + $0x10] sm:$0xf] }
 0x1b6   : > { %3227 = vmatpush.bf16.msrb.mxu2 %v5272_v4  ;;  %v3338_v25 = vxor.u32 %v3330_v52, %v3322_v38  ;;  %v5349_v38 = vld [vmem:[#allocation10 + $0x738] sm:$0xf0]  ;;  %v6117_v5 = vld [vmem:[#allocation10 + $0x70c] sm:$0xf]  ;;  %v5556_v34 = vor.u32 %v6151_v7, %v5555_v43  ;;  %v2926_v27 = vadd.f32 %v7244_v33, %v1517_v54  ;;  %v6178_v18 = vld [vmem:[#allocation12 + $0xf4] sm:$0xf] }
 0x1b7   : > { %3807 = vmatpush.bf16.msra.mxu1 %v5660_v8  ;;  %v2911_v8 = vpop.f32.mrf.mxu3  ;;  %v3299_v21 = vadd.s32 1013904242, %v3291_v30  ;;  %v5352_v39 = vor.u32 %v6121_v63, %v5349_v38  ;;  %v5333_v42 = vld [vmem:[#allocation10 + $0x718] sm:$0xf0]  ;;  %v3303_v0 = vshrl.u32 %v3295_v49, 16 }
 0x1b8   : > { %3794 = vmatpush.bf16.msra.mxu0 %v5588_v31  ;;  %3241 = vmatpush.bf16.msrb.mxu3 %v5400_v57  ;;  %v3346_v4 = vmul.u32 3266489909, %v3338_v25  ;;  %v5563_v57 = vld [vmem:[#allocation12 + $0x20] sm:$0xf]  ;;  %v7249_v53 = vadd.f32 %v2911_v8, %v2898_v41  ;;  %v6149_v8 = vld [vmem:[#allocation12 + $0x4] sm:$0xf0] }
 0x1b9   : > { %v5564_v51 = vor.u32 %v6153_v45, %v5563_v57  ;;  %v3307_v41 = vshrl.u32 %v3299_v21, 16  ;;  %v5605_v30 = vld [vmem:[#allocation12 + $0x78] sm:$0xf0]  ;;  %v5611_v57 = vld [vmem:[#allocation12 + $0x80] sm:$0xf] }
 0x1ba   : > { %3228 = vmatpush.bf16.msrb.mxu2 %v5256_v10  ;;  %v3354_v31 = vshrl.u32 %v3346_v4, 16  ;;  %v6169_v10 = vld [vmem:[#allocation12 + $0xa4] sm:$0xf0]  ;;  %v3252_v15 = vmul.f32 0.2, %v7249_v53 }
 0x1bb   : > { %3808 = vmatpush.bf16.msra.mxu1 %v5652_v44  ;;  %v2939_v44 = vpop.f32.mrf.mxu1  ;;  %v2899_v52 = vpop.f32.mrf.mxu2  ;;  %v5628_v32 = vor.u32 %v6169_v10, %v5627_v59  ;;  %v6165_v45 = vld [vmem:[#allocation12 + $0x84] sm:$0xf0]  ;;  %v5669_v36 = vld [vmem:[#allocation12 + $0xf8] sm:$0xf0]  ;;  %v5661_v7 = vld [vmem:[#allocation12 + $0xe8] sm:$0xf0] }
 0x1bc   : > { %3795 = vmatpush.bf16.msra.mxu0 %v5580_v46  ;;  %3242 = vmatpush.bf16.msrb.mxu3 %v5384_v12  ;;  %v2900_v60 = vadd.f32 %v2899_v52, %v2886_v37  ;;  %v3358_v46 = vxor.u32 %v3350_v35, %v3342_v48  ;;  %v3362_v25 = vxor.u32 %v3354_v31, %v3346_v4  ;;  %v5619_v12 = vld [vmem:[#allocation12 + $0x90] sm:$0xf]  ;;  %v5547_v4 = vld [vmem:[#allocation12] sm:$0xf] }
 0x1bd   : > { %v5336_v48 = vor.u32 %v6117_v5, %v5333_v42  ;;  %v3311_v35 = vxor.u32 %v3303_v0, %v3295_v49  ;;  %v5548_v38 = vor.u32 %v6149_v8, %v5547_v4  ;;  %v2940_v59 = vadd.f32 %v2939_v44, %v2926_v27  ;;  %v6176_v44 = vld [vmem:[#allocation12 + $0xe4] sm:$0xf]  ;;  %v5683_v37 = vld [vmem:[#allocation12 + $0x110] sm:$0xf] }
 0x1be   : > { %3229 = vmatpush.bf16.msrb.mxu2 %v5240_v19  ;;  %v6167_v19 = vld [vmem:[#allocation12 + $0x94] sm:$0xf0]  ;;  %v3366_v61 = vshrl.u32 %v3358_v46, 9  ;;  %v3370_v24 = vshrl.u32 %v3362_v25, 9  ;;  %v5612_v52 = vor.u32 %v6165_v45, %v5611_v57  ;;  %v5672_v55 = vor.u32 %v6178_v18, %v5669_v36  ;;  %v5573_v57 = vld [vmem:[#allocation12 + $0x38] sm:$0xf0] }
 0x1bf   : > { %3809 = vmatpush.bf16.msra.mxu1 %v5644_v16  ;;  %v2913_v58 = vpop.f32.mrf.mxu3  ;;  %v2927_v16 = vpop.f32.mrf.mxu0  ;;  %v5620_v63 = vor.u32 %v6167_v19, %v5619_v12  ;;  %v6174_v19 = vld [vmem:[#allocation12 + $0xd4] sm:$0xf] }
 0x1c0   : > { %3796 = vmatpush.bf16.msra.mxu0 %v5572_v26  ;;  %3243 = vmatpush.bf16.msrb.mxu3 %v5368_v22  ;;  %v2914_v62 = vadd.f32 %v2913_v58, %v2900_v60  ;;  %v6162_v26 = vld [vmem:[#allocation12 + $0x74] sm:$0xf]  ;;  %v3260_v22 = vmax.f32 %v7249_v53, %v3252_v15  ;;  %vm7260_vm4 = vcmp.lt.s32.totalorder %v3366_v61, 5872025  ;;  %vm7264_vm5 = vcmp.lt.s32.totalorder %v3370_v24, 5872025 }
 0x1c1   : > { %v5608_v33 = vor.u32 %v6162_v26, %v5605_v30  ;;  %vm5801_vm10 = vmpackc.low %vm7264_vm5, %vm7260_vm4 }
 0x1c2   : > { %3230 = vmatpush.bf16.msrb.mxu2 %v5224_v29  ;;  %v3256_v20 = vmul.f32 0.2, %v2914_v62  ;;  %v3382_v60 = vmul.f32 1.4285715, %v3260_v22  ;;  %v6154_v22 = vld [vmem:[#allocation12 + $0x34] sm:$0xf] }
 0x1c3   : > { %3810 = vmatpush.bf16.msra.mxu1 %v5636_v14  ;;  %v2953_v29 = vpop.f32.mrf.mxu2  ;;  %v3315_v14 = vxor.u32 %v3307_v41, %v3299_v21  ;;  %v2941_v49 = vpop.f32.mrf.mxu1  ;;  %v5597_v21 = vld [vmem:[#allocation12 + $0x68] sm:$0xf0] }
 0x1c4   : > { %3797 = vmatpush.bf16.msra.mxu0 %v5564_v51  ;;  %3244 = vmatpush.bf16.msrb.mxu3 %v5352_v39  ;;  %v3264_v31 = vmax.f32 %v2914_v62, %v3256_v20  ;;  %v6160_v51 = vld [vmem:[#allocation12 + $0x64] sm:$0xf]  ;;  %v2954_v43 = vadd.f32 %v2953_v29, %v2940_v59  ;;  %v5581_v41 = vld [vmem:[#allocation12 + $0x48] sm:$0xf0]  ;;  %v5576_v59 = vor.u32 %v6154_v22, %v5573_v57  ;;  %v6189_v22 = vld [vmem:[#allocation12 + $0x144] sm:$0xf0] }
 0x1c5   : > { %v3323_v46 = vmul.u32 2246822507, %v3315_v14  ;;  %v5600_v5 = vor.u32 %v6160_v51, %v5597_v21  ;;  %v6172_v20 = vld [vmem:[#allocation12 + $0xc4] sm:$0xf]  ;;  %v6170_v14 = vld [vmem:[#allocation12 + $0xb4] sm:$0xf] }
 0x1c6   : > { %3231 = vmatpush.bf16.msrb.mxu2 %v5208_v17  ;;  %v3386_v10 = vmul.f32 1.4285715, %v3264_v31  ;;  %v2928_v17 = vadd.f32 %v2927_v16, %v1517_v54  ;;  %v5653_v54 = vld [vmem:[#allocation12 + $0xd8] sm:$0xf0]  ;;  %v5565_v51 = vld [vmem:[#allocation12 + $0x28] sm:$0xf0] }
 0x1c7   : > { %3811 = vmatpush.bf16.msra.mxu1 %v5628_v32  ;;  %v2967_v39 = vpop.f32.mrf.mxu3  ;;  %v2981_v42 = vpop.f32.mrf.mxu0  ;;  %v5664_v32 = vor.u32 %v6176_v44, %v5661_v7  ;;  %v3331_v0 = vshrl.u32 %v3323_v46, 13  ;;  %v5656_v8 = vor.u32 %v6174_v19, %v5653_v54  ;;  %v6195_v21 = vld [vmem:[#allocation12 + $0x174] sm:$0xf0]  ;;  %v6168_v7 = vld [vmem:[#allocation12 + $0xa4] sm:$0xf] }
 0x1c8   : > { %3798 = vmatpush.bf16.msra.mxu0 %v5556_v34  ;;  %3245 = vmatpush.bf16.msrb.mxu3 %v5336_v48  ;;  %v7275_v25 = vpack.c.bf16 %v3386_v10, %v3382_v60  ;;  %v2968_v15 = vadd.f32 %v2967_v39, %v2954_v43  ;;  %v2942_v62 = vadd.f32 %v2941_v49, %v2928_v17  ;;  %v6156_v34 = vld [vmem:[#allocation12 + $0x44] sm:$0xf]  ;;  %v5731_v10 = vld [vmem:[#allocation12 + $0x170] sm:$0xf] }
 0x1c9   : > { %5541 = vmatmul.msk.bf16.vlgmr.msrb.gmra.mxu2 %vm7118_vm6, %v7113_v9  ;;  %v3319_v9 = vmul.u32 2246822507, %v3311_v35  ;;  %v3339_v26 = vxor.u32 %v3331_v0, %v3323_v46  ;;  %v5584_v30 = vor.u32 %v6156_v34, %v5581_v41  ;;  %v5629_v46 = vld [vmem:[#allocation12 + $0xa8] sm:$0xf0] }
 0x1ca   : > { %v2982_v24 = vadd.f32 %v2981_v42, %v2968_v15  ;;  %v5723_v15 = vld [vmem:[#allocation12 + $0x160] sm:$0xf] }
 0x1cb   : > { %3812 = vmatpush.bf16.msra.mxu1 %v5620_v63  ;;  %5544 = vmatmul.msk.bf16.vlgmr.msrb.gmra.mxu3 %vm7125_vm9, %v7116_v28  ;;  %v5589_v28 = vld [vmem:[#allocation12 + $0x58] sm:$0xf0]  ;;  %v3327_v12 = vshrl.u32 %v3319_v9, 13  ;;  %v2955_v58 = vpop.f32.mrf.mxu2  ;;  %v2995_v27 = vpop.f32.mrf.mxu1  ;;  %v5645_v63 = vld [vmem:[#allocation12 + $0xc8] sm:$0xf0] }
 0x1cc   : > { %3799 = vmatpush.bf16.msra.mxu0 %v5548_v38  ;;  %v5592_v16 = vor.u32 %v6158_v23, %v5589_v28  ;;  %v2956_v48 = vadd.f32 %v2955_v58, %v2942_v62  ;;  %v5648_v35 = vor.u32 %v6172_v20, %v5645_v63  ;;  %v2996_v29 = vadd.f32 %v2995_v27, %v2982_v24  ;;  %v6150_v23 = vld [vmem:[#allocation12 + $0x14] sm:$0xf]  ;;  %v5557_v28 = vld [vmem:[#allocation12 + $0x18] sm:$0xf0]  ;;  %v6193_v58 = vld [vmem:[#allocation12 + $0x164] sm:$0xf0] }
 0x1cd   : > { %v3335_v61 = vxor.u32 %v3327_v12, %v3319_v9  ;;  %v3347_v36 = vmul.u32 3266489909, %v3339_v26  ;;  %v5732_v9 = vor.u32 %v6195_v21, %v5731_v10  ;;  %v5632_v12 = vor.u32 %v6168_v7, %v5629_v46  ;;  %v6166_v62 = vld [vmem:[#allocation12 + $0x94] sm:$0xf]  ;;  %v6148_v24 = vld [vmem:[#allocation12 + $0x4] sm:$0xf] }
 0x1ce   : > { %v5724_v34 = vor.u32 %v6193_v58, %v5723_v15  ;;  %v5549_v27 = vld [vmem:[#allocation12 + $0x8] sm:$0xf0]  ;;  %v6187_v10 = vld [vmem:[#allocation12 + $0x134] sm:$0xf0]  ;;  %v3272_v7 = vadd.s32 %v7195_v11, %v6737_v50  ;;  %v3276_v46 = vadd.s32 %v7198_v40, %v6737_v50  ;;  %v6194_v58 = vld [vmem:[#allocation12 + $0x174] sm:$0xf] }
 0x1cf   : > { %3813 = vmatpush.bf16.msra.mxu1 %v5612_v52  ;;  %5803 = vmatmul.msk.bf16.vlgmr.msra.gmra.mxu0 %vm5801_vm10, %v7275_v25  ;;  %v2969_v4 = vpop.f32.mrf.mxu3  ;;  %v3343_v31 = vmul.u32 3266489909, %v3335_v61  ;;  %v2983_v38 = vpop.f32.mrf.mxu0  ;;  %v6152_v52 = vld [vmem:[#allocation12 + $0x24] sm:$0xf]  ;;  %v3355_v44 = vshrl.u32 %v3347_v36, 16 }
 0x1d0   : > { %3848 = vmatpush.bf16.msrb.mxu0 %v5608_v33  ;;  %v2970_v45 = vadd.f32 %v2969_v4, %v2956_v48  ;;  %v5637_v33 = vld [vmem:[#allocation12 + $0xb8] sm:$0xf0]  ;;  %v5568_v17 = vor.u32 %v6152_v52, %v5565_v51  ;;  %3820 = vmatpush.bf16.msra.mxu2 %v5732_v9  ;;  %v5560_v48 = vor.u32 %v6150_v23, %v5557_v28  ;;  %v5715_v4 = vld [vmem:[#allocation12 + $0x150] sm:$0xf]  ;;  %v6185_v9 = vld [vmem:[#allocation12 + $0x124] sm:$0xf0] }
 0x1d1   : > { %v3351_v43 = vshrl.u32 %v3343_v31, 16  ;;  %v3363_v0 = vxor.u32 %v3355_v44, %v3347_v36  ;;  %v3280_v53 = vmul.u32 2654435761, %v3272_v7  ;;  %v6184_v52 = vld [vmem:[#allocation12 + $0x124] sm:$0xf] }
 0x1d2   : > { %v2984_v60 = vadd.f32 %v2983_v38, %v2970_v45  ;;  %v5552_v38 = vor.u32 %v6148_v24, %v5549_v27  ;;  %v6190_v27 = vld [vmem:[#allocation12 + $0x154] sm:$0xf]  ;;  %v5693_v51 = vld [vmem:[#allocation12 + $0x128] sm:$0xf0] }
 0x1d3   : > { %3862 = vmatpush.bf16.msrb.mxu1 %v5672_v55  ;;  %v3009_v18 = vpop.f32.mrf.mxu2  ;;  %v5640_v55 = vor.u32 %v6170_v14, %v5637_v33  ;;  %v3359_v54 = vxor.u32 %v3351_v43, %v3343_v31  ;;  %v6164_v31 = vld [vmem:[#allocation12 + $0x84] sm:$0xf]  ;;  %v3288_v23 = vadd.s32 %v3280_v53, %v6730_v13 }
 0x1d4   : > { %3849 = vmatpush.bf16.msrb.mxu0 %v5600_v5  ;;  %v3010_v49 = vadd.f32 %v3009_v18, %v2996_v29  ;;  %v2997_v5 = vpop.f32.mrf.mxu1  ;;  %3821 = vmatpush.bf16.msra.mxu2 %v5724_v34  ;;  %v5613_v29 = vld [vmem:[#allocation12 + $0x88] sm:$0xf0] }
 0x1d5   : > { %v3367_v45 = vshrl.u32 %v3359_v54, 9  ;;  %v5616_v33 = vor.u32 %v6164_v31, %v5613_v29  ;;  %v3296_v50 = vadd.s32 1013904242, %v3288_v23  ;;  %v5725_v34 = vld [vmem:[#allocation12 + $0x168] sm:$0xf0] }
 0x1d7   : > { %3863 = vmatpush.bf16.msrb.mxu1 %v5664_v32  ;;  %v3023_v39 = vpop.f32.mrf.mxu3  ;;  %v2998_v32 = vadd.f32 %v2997_v5, %v2984_v60  ;;  %vm7285_vm11 = vcmp.lt.s32.totalorder %v3367_v45, 5872025  ;;  %v6183_v5 = vld [vmem:[#allocation12 + $0x114] sm:$0xf0]  ;;  %v5709_v45 = vld [vmem:[#allocation12 + $0x148] sm:$0xf0] }
 0x1d8   : > { %3850 = vmatpush.bf16.msrb.mxu0 %v5592_v16  ;;  %v3024_v42 = vadd.f32 %v3023_v39, %v3010_v49  ;;  %v5621_v16 = vld [vmem:[#allocation12 + $0x98] sm:$0xf0] }
 0x1d9   : > { %v5624_v26 = vor.u32 %v6166_v62, %v5621_v16  ;;  %v6192_v16 = vld [vmem:[#allocation12 + $0x164] sm:$0xf] }
 0x1da   : > { %v3253_v61 = vmul.f32 0.2, %v3024_v42 }
 0x1db   : > { %3864 = vmatpush.bf16.msrb.mxu1 %v5656_v8  ;;  %v3011_v19 = vpop.f32.mrf.mxu2  ;;  %v6191_v8 = vld [vmem:[#allocation12 + $0x154] sm:$0xf0] }
 0x1dc   : > { %3851 = vmatpush.bf16.msrb.mxu0 %v5584_v30  ;;  %v3012_v41 = vadd.f32 %v3011_v19, %v2998_v32  ;;  %v5716_v20 = vor.u32 %v6191_v8, %v5715_v4  ;;  %v5707_v30 = vld [vmem:[#allocation12 + $0x140] sm:$0xf]  ;;  %v3261_v18 = vmax.f32 %v3024_v42, %v3253_v61  ;;  %v3037_v42 = vpop.f32.mrf.mxu0  ;;  %v5733_v19 = vld [vmem:[#allocation12 + $0x178] sm:$0xf0]  ;;  %v3051_v62 = vpop.f32.mrf.mxu1  ;;  %v3304_v4 = vshrl.u32 %v3296_v50, 16 }
 0x1dd   : > { %v5708_v14 = vor.u32 %v6189_v22, %v5707_v30  ;;  %v5675_v32 = vld [vmem:[#allocation12 + $0x100] sm:$0xf]  ;;  %v5736_v54 = vor.u32 %v6194_v58, %v5733_v19  ;;  %v6180_v19 = vld [vmem:[#allocation12 + $0x104] sm:$0xf] }
 0x1de   : > { %3822 = vmatpush.bf16.msra.mxu2 %v5716_v20  ;;  %v3383_v21 = vmul.f32 1.4285715, %v3261_v18  ;;  %v5717_v20 = vld [vmem:[#allocation12 + $0x158] sm:$0xf0]  ;;  %v3312_v30 = vxor.u32 %v3304_v4, %v3296_v50  ;;  %v5795_v50 = vld [vmem:[#allocation12 + $0x1f0] sm:$0xf] }
 0x1df   : > { %3865 = vmatpush.bf16.msrb.mxu1 %v5648_v35  ;;  %v3025_v63 = vpop.f32.mrf.mxu3  ;;  %v3371_v35 = vshrl.u32 %v3363_v0, 9 }
 0x1e0   : > { %3852 = vmatpush.bf16.msrb.mxu0 %v5576_v59  ;;  %v3026_v57 = vadd.f32 %v3025_v63, %v3012_v41  ;;  %v5699_v59 = vld [vmem:[#allocation12 + $0x130] sm:$0xf]  ;;  %v5728_v41 = vor.u32 %v6192_v16, %v5725_v34  ;;  %v5720_v63 = vor.u32 %v6190_v27, %v5717_v20  ;;  %v6211_v16 = vld [vmem:[#allocation12 + $0x1f4] sm:$0xf0]  ;;  %v5787_v20 = vld [vmem:[#allocation12 + $0x1e0] sm:$0xf] }
 0x1e1   : > { %vm7289_vm12 = vcmp.lt.s32.totalorder %v3371_v35, 5872025  ;;  %v5700_v39 = vor.u32 %v6187_v10, %v5699_v59  ;;  %v5701_v59 = vld [vmem:[#allocation12 + $0x138] sm:$0xf0] }
 0x1e2   : > { %v3257_v36 = vmul.f32 0.2, %v3026_v57  ;;  %3823 = vmatpush.bf16.msra.mxu2 %v5708_v14  ;;  %vm5804_vm13 = vmpackc.low %vm7289_vm12, %vm7285_vm11 }
 0x1e3   : > { %3866 = vmatpush.bf16.msrb.mxu1 %v5640_v55  ;;  %v5691_v55 = vld [vmem:[#allocation12 + $0x120] sm:$0xf] }
 0x1e4   : > { %3853 = vmatpush.bf16.msrb.mxu0 %v5568_v17  ;;  %v3265_v49 = vmax.f32 %v3026_v57, %v3257_v36  ;;  %v5692_v44 = vor.u32 %v6185_v9, %v5691_v55  ;;  %v3284_v17 = vmul.u32 2654435761, %v3276_v46  ;;  %v3039_v61 = vpop.f32.mrf.mxu0  ;;  %v3053_v29 = vpop.f32.mrf.mxu1  ;;  %v5696_v55 = vor.u32 %v6184_v52, %v5693_v51  ;;  %v5763_v51 = vld [vmem:[#allocation12 + $0x1b0] sm:$0xf] }
 0x1e6   : > { %v3387_v60 = vmul.f32 1.4285715, %v3265_v49  ;;  %3824 = vmatpush.bf16.msra.mxu2 %v5700_v39  ;;  %v3292_v28 = vadd.s32 %v3284_v17, %v6730_v13 }
 0x1e7   : > { %3867 = vmatpush.bf16.msrb.mxu1 %v5632_v12  ;;  %v6181_v12 = vld [vmem:[#allocation12 + $0x104] sm:$0xf0] }
 0x1e8   : > { %3854 = vmatpush.bf16.msrb.mxu0 %v5560_v48  ;;  %v5805_v43 = vpack.c.bf16 %v3387_v60, %v3383_v21  ;;  %v5676_v15 = vor.u32 %v6181_v12, %v5675_v32  ;;  %v3300_v0 = vadd.s32 1013904242, %v3292_v28  ;;  %v1518_v48 = vperm.slane %v7189_v56, 2  ;;  %v6188_v56 = vld [vmem:[#allocation12 + $0x144] sm:$0xf] }
 0x1e9   : > { %v5712_v35 = vor.u32 %v6188_v56, %v5709_v45  ;;  %v5779_v45 = vld [vmem:[#allocation12 + $0x1d0] sm:$0xf] }
 0x1ea   : > { %5806 = vmatmul.msk.bf16.vlgmr.msra.gmra.mxu1 %vm5804_vm13, %v5805_v43  ;;  %3825 = vmatpush.bf16.msra.mxu2 %v5692_v44  ;;  %v3308_v8 = vshrl.u32 %v3300_v0, 16  ;;  %v3040_v10 = vadd.f32 %v3039_v61, %v1518_v48 }
 0x1eb   : > { %3868 = vmatpush.bf16.msrb.mxu1 %v5624_v26  ;;  %v3038_v26 = vadd.f32 %v3037_v42, %v1518_v48  ;;  %v5796_v48 = vor.u32 %v6211_v16, %v5795_v50 }
 0x1ec   : > { %3855 = vmatpush.bf16.msrb.mxu0 %v5552_v38  ;;  %v3065_v24 = vpop.f32.mrf.mxu2  ;;  %v3316_v22 = vxor.u32 %v3308_v8, %v3300_v0  ;;  %v3320_v38 = vmul.u32 2246822507, %v3312_v30  ;;  %v3093_v14 = vpop.f32.mrf.mxu0 }
 0x1ed   : > { %v3052_v31 = vadd.f32 %v3051_v62, %v3038_v26  ;;  %3834 = vmatpush.bf16.msra.mxu3 %v5796_v48 }
 0x1ee   : > { %v3079_v57 = vpop.f32.mrf.mxu3  ;;  %v3324_v18 = vmul.u32 2246822507, %v3316_v22  ;;  %v3328_v60 = vshrl.u32 %v3320_v38, 13 }
 0x1ef   : > { %3869 = vmatpush.bf16.msrb.mxu1 %v5616_v33  ;;  %5815 = vmatmul.msk.bf16.vlgmr.msrb.gmra.mxu0 %vm5801_vm10, %v7275_v25  ;;  %v5684_v25 = vor.u32 %v6183_v5, %v5683_v37  ;;  %v3066_v36 = vadd.f32 %v3065_v24, %v3052_v31  ;;  %v6186_v33 = vld [vmem:[#allocation12 + $0x134] sm:$0xf]  ;;  %v3107_v46 = vpop.f32.mrf.mxu1  ;;  %vm4041_vm10 = vcmask 7168  }
 0x1f0   : > { %v5704_v49 = vor.u32 %v6186_v33, %v5701_v59  ;;  %v3332_v39 = vshrl.u32 %v3324_v18, 13  ;;  %v3336_v53 = vxor.u32 %v3328_v60, %v3320_v38  ;;  %v6182_v5 = vld [vmem:[#allocation12 + $0x114] sm:$0xf] }
 0x1f1   : > { %3826 = vmatpush.bf16.msra.mxu2 %v5684_v25  ;;  %v3080_v9 = vadd.f32 %v3079_v57, %v3066_v36  ;;  %v5685_v25 = vld [vmem:[#allocation12 + $0x118] sm:$0xf0]  ;;  %v6205_v36 = vld [vmem:[#allocation12 + $0x1c4] sm:$0xf0] }
 0x1f2   : > { %v3340_v17 = vxor.u32 %v3332_v39, %v3324_v18  ;;  %v5688_v42 = vor.u32 %v6182_v5, %v5685_v25  ;;  %v3344_v12 = vmul.u32 3266489909, %v3336_v53  ;;  %v5771_v18 = vld [vmem:[#allocation12 + $0x1c0] sm:$0xf]  ;;  %v3277_v5 = vadd.s32 %v7198_v40, %v6740_v47  ;;  %v5757_v39 = vld [vmem:[#allocation12 + $0x1a8] sm:$0xf0] }
 0x1f3   : > { %v3094_v7 = vadd.f32 %v3093_v14, %v3080_v9  ;;  %v5772_v52 = vor.u32 %v6205_v36, %v5771_v18 }
 0x1f4   : > { %v3067_v21 = vpop.f32.mrf.mxu2  ;;  %v3095_v28 = vpop.f32.mrf.mxu0  ;;  %v3352_v4 = vshrl.u32 %v3344_v12, 16 }
 0x1f5   : > { %3827 = vmatpush.bf16.msra.mxu2 %v5676_v15  ;;  %v3108_v23 = vadd.f32 %v3107_v46, %v3094_v7  ;;  %v3348_v15 = vmul.u32 3266489909, %v3340_v17  ;;  %v5755_v7 = vld [vmem:[#allocation12 + $0x1a0] sm:$0xf]  ;;  %v6201_v46 = vld [vmem:[#allocation12 + $0x1a4] sm:$0xf0] }
 0x1f6   : > { %v3081_v44 = vpop.f32.mrf.mxu3  ;;  %v3360_v30 = vxor.u32 %v3352_v4, %v3344_v12  ;;  %v5756_v17 = vor.u32 %v6201_v46, %v5755_v7  ;;  %v6198_v7 = vld [vmem:[#allocation12 + $0x194] sm:$0xf]  ;;  %v5749_v46 = vld [vmem:[#allocation12 + $0x198] sm:$0xf0] }
 0x1f7   : > { %v3356_v8 = vshrl.u32 %v3348_v15, 16  ;;  %v3109_v61 = vpop.f32.mrf.mxu1 }
 0x1f8   : > { %v3368_v33 = vshrl.u32 %v3360_v30, 9 }
 0x1f9   : > { %3876 = vmatpush.bf16.msrb.mxu2 %v5736_v54  ;;  %v5677_v54 = vld [vmem:[#allocation12 + $0x108] sm:$0xf0]  ;;  %v3364_v22 = vxor.u32 %v3356_v8, %v3348_v15  ;;  %v6307_v8 = vld [vmem:[%s7397_s5] sm:$0xf] }
 0x1fa   : > { %5818 = vmatmul.msk.bf16.vlgmr.msrb.gmra.mxu1 %vm5804_vm13, %v5805_v43  ;;  %v3054_v43 = vadd.f32 %v3053_v29, %v3040_v10  ;;  %v5680_v62 = vor.u32 %v6180_v19, %v5677_v54  ;;  %vm7320_vm14 = vcmp.lt.s32.totalorder %v3368_v33, 5872025  ;;  %v5739_v19 = vld [vmem:[#allocation12 + $0x180] sm:$0xf]  ;;  %v6197_v54 = vld [vmem:[#allocation12 + $0x184] sm:$0xf0] }
 0x1fb   : > { %v3372_v59 = vshrl.u32 %v3364_v22, 9  ;;  %v5740_v50 = vor.u32 %v6197_v54, %v5739_v19  ;;  %v6196_v54 = vld [vmem:[#allocation12 + $0x184] sm:$0xf] }
 0x1fc   : > { %v3068_v37 = vadd.f32 %v3067_v21, %v3054_v43  ;;  %v6203_v21 = vld [vmem:[#allocation12 + $0x1b4] sm:$0xf0] }
 0x1fd   : > { %3877 = vmatpush.bf16.msrb.mxu2 %v5728_v41  ;;  %vm7324_vm15 = vcmp.lt.s32.totalorder %v3372_v59, 5872025 }
 0x1fe   : > { %v3082_v58 = vadd.f32 %v3081_v44, %v3068_v37  ;;  %v5764_v44 = vor.u32 %v6203_v21, %v5763_v51  ;;  %vm5807_vm0 = vmpackc.low %vm7324_vm15, %vm7320_vm14  ;;  %v3273_v37 = vadd.s32 %v7195_v11, %v6740_v47  ;;  %v5797_v11 = vld [vmem:[#allocation12 + $0x1f8] sm:$0xf0] }
 0x200   : > { %v3096_v34 = vadd.f32 %v3095_v28, %v3082_v58  ;;  %v3281_v25 = vmul.u32 2654435761, %v3273_v37  ;;  %v6199_v28 = vld [vmem:[#allocation12 + $0x194] sm:$0xf0] }
 0x201   : > { %3878 = vmatpush.bf16.msrb.mxu2 %v5720_v63  ;;  %v6209_v63 = vld [vmem:[#allocation12 + $0x1e4] sm:$0xf0] }
 0x202   : > { %v3110_v27 = vadd.f32 %v3109_v61, %v3096_v34  ;;  %v5788_v57 = vor.u32 %v6209_v63, %v5787_v20  ;;  %v3289_v12 = vadd.s32 %v3281_v25, %v6730_v13  ;;  %v6208_v34 = vld [vmem:[#allocation12 + $0x1e4] sm:$0xf]  ;;  %v1519_v61 = vperm.slane %v6307_v8, 3  ;;  %v6206_v63 = vld [vmem:[#allocation12 + $0x1d4] sm:$0xf] }
 0x204   : > { %3835 = vmatpush.bf16.msra.mxu3 %v5788_v57  ;;  %v3297_v16 = vadd.s32 1013904242, %v3289_v12 }
 0x205   : > { %3879 = vmatpush.bf16.msrb.mxu2 %v5712_v35  ;;  %v6207_v35 = vld [vmem:[#allocation12 + $0x1d4] sm:$0xf0] }
 0x206   : > { %v5780_v29 = vor.u32 %v6207_v35, %v5779_v45  ;;  %v3305_v4 = vshrl.u32 %v3297_v16, 16  ;;  %v6204_v35 = vld [vmem:[#allocation12 + $0x1c4] sm:$0xf] }
 0x208   : > { %3836 = vmatpush.bf16.msra.mxu3 %v5780_v29  ;;  %v3313_v22 = vxor.u32 %v3305_v4, %v3297_v16 }
 0x209   : > { %3880 = vmatpush.bf16.msrb.mxu2 %v5704_v49 }
 0x20c   : > { %v3121_v32 = vpop.f32.mrf.mxu2  ;;  %3837 = vmatpush.bf16.msra.mxu3 %v5772_v52  ;;  %v3149_v15 = vpop.f32.mrf.mxu0 }
 0x20d   : > { %3881 = vmatpush.bf16.msrb.mxu2 %v5696_v55  ;;  %v3122_v0 = vadd.f32 %v3121_v32, %v3108_v23  ;;  %v5747_v23 = vld [vmem:[#allocation12 + $0x190] sm:$0xf]  ;;  %v3150_v57 = vadd.f32 %v3149_v15, %v1519_v61 }
 0x20e   : > { %v3135_v41 = vpop.f32.mrf.mxu3  ;;  %v5748_v32 = vor.u32 %v6199_v28, %v5747_v23  ;;  %v5752_v28 = vor.u32 %v6198_v7, %v5749_v46 }
 0x20f   : > { %v3136_v24 = vadd.f32 %v3135_v41, %v3122_v0  ;;  %v6210_v0 = vld [vmem:[#allocation12 + $0x1f4] sm:$0xf]  ;;  %v3163_v40 = vpop.f32.mrf.mxu1  ;;  %v5789_v41 = vld [vmem:[#allocation12 + $0x1e8] sm:$0xf0] }
 0x210   : > { %3838 = vmatpush.bf16.msra.mxu3 %v5764_v44  ;;  %v5792_v48 = vor.u32 %v6208_v34, %v5789_v41  ;;  %v3164_v18 = vadd.f32 %v3163_v40, %v3150_v57 }
 0x211   : > { %3882 = vmatpush.bf16.msrb.mxu2 %v5688_v42  ;;  %v3254_v31 = vmul.f32 0.2, %v3136_v24  ;;  %v3285_v42 = vmul.u32 2654435761, %v3277_v5 }
 0x213   : > { %v3262_v10 = vmax.f32 %v3136_v24, %v3254_v31  ;;  %v3293_v58 = vadd.s32 %v3285_v42, %v6730_v13  ;;  %v5773_v31 = vld [vmem:[#allocation12 + $0x1c8] sm:$0xf0] }
 0x214   : > { %v3123_v26 = vpop.f32.mrf.mxu2  ;;  %3839 = vmatpush.bf16.msra.mxu3 %v5756_v17  ;;  %v5776_v29 = vor.u32 %v6204_v35, %v5773_v31 }
 0x215   : > { %3883 = vmatpush.bf16.msrb.mxu2 %v5680_v62  ;;  %v3124_v56 = vadd.f32 %v3123_v26, %v3110_v27  ;;  %v3384_v9 = vmul.f32 1.4285715, %v3262_v10  ;;  %v5800_v62 = vor.u32 %v6210_v0, %v5797_v11  ;;  %v3301_v47 = vadd.s32 1013904242, %v3293_v58  ;;  %v3151_v27 = vpop.f32.mrf.mxu0  ;;  %v5781_v26 = vld [vmem:[#allocation12 + $0x1d8] sm:$0xf0] }
 0x216   : > { %v3137_v38 = vpop.f32.mrf.mxu3  ;;  %v5784_v30 = vor.u32 %v6206_v63, %v5781_v26  ;;  %v6202_v10 = vld [vmem:[#allocation12 + $0x1b4] sm:$0xf]  ;;  %v3152_v52 = vadd.f32 %v3151_v27, %v1519_v61 }
 0x217   : > { %v3138_v14 = vadd.f32 %v3137_v38, %v3124_v56  ;;  %v3309_v24 = vshrl.u32 %v3301_v47, 16  ;;  %v3321_v38 = vmul.u32 2246822507, %v3313_v22  ;;  %v3165_v36 = vpop.f32.mrf.mxu1 }
 0x218   : > { %3840 = vmatpush.bf16.msra.mxu3 %v5748_v32 }
 0x219   : > { %v3258_v49 = vmul.f32 0.2, %v3138_v14  ;;  %v3317_v56 = vxor.u32 %v3309_v24, %v3301_v47  ;;  %v3329_v51 = vshrl.u32 %v3321_v38, 13 }
 0x21b   : > { %v3266_v60 = vmax.f32 %v3138_v14, %v3258_v49  ;;  %v3325_v14 = vmul.u32 2246822507, %v3317_v56  ;;  %v5765_v49 = vld [vmem:[#allocation12 + $0x1b8] sm:$0xf0]  ;;  %v3337_v37 = vxor.u32 %v3329_v51, %v3321_v38  ;;  %v3912_v38 = vmul.u32 256, %v6707_v1 }
 0x21c   : > { %3841 = vmatpush.bf16.msra.mxu3 %v5740_v50  ;;  %v5768_v21 = vor.u32 %v6202_v10, %v5765_v49  ;;  %v5741_v50 = vld [vmem:[#allocation12 + $0x188] sm:$0xf0] }
 0x21d   : > { %v3388_v43 = vmul.f32 1.4285715, %v3266_v60  ;;  %v6200_v60 = vld [vmem:[#allocation12 + $0x1a4] sm:$0xf]  ;;  %v3345_v32 = vmul.u32 3266489909, %v3337_v37  ;;  %v5744_v11 = vor.u32 %v6196_v54, %v5741_v50 }
 0x21f   : > { %v5808_v53 = vpack.c.bf16 %v3388_v43, %v3384_v9  ;;  %v3333_v9 = vshrl.u32 %v3325_v14, 13  ;;  %v5760_v43 = vor.u32 %v6200_v60, %v5757_v39  ;;  %v3353_v40 = vshrl.u32 %v3345_v32, 16 }
 0x220   : > { %3890 = vmatpush.bf16.msrb.mxu3 %v5800_v62 }
 0x221   : > { %5809 = vmatmul.msk.bf16.vlgmr.msra.gmra.mxu2 %vm5807_vm0, %v5808_v53  ;;  %v3341_v42 = vxor.u32 %v3333_v9, %v3325_v14  ;;  %v3361_v61 = vxor.u32 %v3353_v40, %v3345_v32 }
 0x223   : > { %v3349_v19 = vmul.u32 3266489909, %v3341_v42 }
 0x224   : > { %3891 = vmatpush.bf16.msrb.mxu3 %v5792_v48 }
 0x225   : > { %v3357_v34 = vshrl.u32 %v3349_v19, 16 }
 0x227   : > { %v3365_v24 = vxor.u32 %v3357_v34, %v3349_v19 }
 0x228   : > { %3892 = vmatpush.bf16.msrb.mxu3 %v5784_v30  ;;  %v3369_v30 = vshrl.u32 %v3361_v61, 9 }
 0x229   : > { %v3373_v22 = vshrl.u32 %v3365_v24, 9 }
 0x22a   : > { %vm3377_vm1 = vcmp.lt.s32.totalorder %v3369_v30, 5872025 }
 0x22b   : > { %vm3381_vm2 = vcmp.lt.s32.totalorder %v3373_v22, 5872025 }
 0x22c   : > { %v3177_v20 = vpop.f32.mrf.mxu2  ;;  %3893 = vmatpush.bf16.msrb.mxu3 %v5776_v29  ;;  %v3205_v59 = vpop.f32.mrf.mxu0  ;;  %vm5810_vm3 = vmpackc.low %vm3381_vm2, %vm3377_vm1 }
 0x22d   : > { %v3178_v33 = vadd.f32 %v3177_v20, %v3164_v18  ;;  %v3914_v18 = vadd.s32 %v3912_v38, %v6711_v3 }
 0x22e   : > { %v3191_v45 = vpop.f32.mrf.mxu3 }
 0x22f   : > { %v3192_v44 = vadd.f32 %v3191_v45, %v3178_v33  ;;  %v3219_v25 = vpop.f32.mrf.mxu1  ;;  %v3918_v14 = vmul.u32 2654435761, %v3914_v18  ;;  %v3913_v33 = vmul.u32 256, %v6709_v2 }
 0x230   : > { %3894 = vmatpush.bf16.msrb.mxu3 %v5768_v21 }
 0x231   : > { %5821 = vmatmul.msk.bf16.vlgmr.msrb.gmra.mxu2 %vm5807_vm0, %v5808_v53  ;;  %v3166_v53 = vadd.f32 %v3165_v36, %v3152_v52  ;;  %v3206_v5 = vadd.f32 %v3205_v59, %v3192_v44  ;;  %v3915_v36 = vadd.s32 %v3912_v38, %v6720_v6  ;;  %v3922_v10 = vadd.s32 %v3918_v14, %v6730_v13  ;;  %v3978_v38 = vld [vmem:[%s7400_s8] sm:$0x3] }
 0x232   : > { %v3916_v49 = vadd.s32 %v3913_v33, %v6711_v3  ;;  %v3917_v51 = vadd.s32 %v3913_v33, %v6720_v6  ;;  %v3466_v6 = vld [vmem:[%s7399_s7] sm:$0x3] }
 0x233   : > { %v3220_v12 = vadd.f32 %v3219_v25, %v3206_v5  ;;  %v3919_v59 = vmul.u32 2654435761, %v3915_v36  ;;  %v3926_v21 = vadd.s32 3668340011, %v3922_v10 }
 0x234   : > { %v3179_v55 = vpop.f32.mrf.mxu2  ;;  %3895 = vmatpush.bf16.msrb.mxu3 %v5760_v43  ;;  %v3207_v15 = vpop.f32.mrf.mxu0  ;;  %v3920_v60 = vmul.u32 2654435761, %v3916_v49  ;;  %v3921_v1 = vmul.u32 2654435761, %v3917_v51  ;;  %v3979_v49 = vunpack.c.l.bf16 %v3978_v38 }
 0x235   : > { %v3180_v23 = vadd.f32 %v3179_v55, %v3166_v53  ;;  %v3923_v52 = vadd.s32 %v3919_v59, %v6730_v13  ;;  %v3930_v55 = vshrl.u32 %v3926_v21, 16 }
 0x236   : > { %v3193_v17 = vpop.f32.mrf.mxu3  ;;  %v3924_v9 = vadd.s32 %v3920_v60, %v6730_v13  ;;  %v3925_v2 = vadd.s32 %v3921_v1, %v6730_v13 }
 0x237   : > { %v3194_v0 = vadd.f32 %v3193_v17, %v3180_v23  ;;  %v3221_v41 = vpop.f32.mrf.mxu1  ;;  %v3927_v39 = vadd.s32 3668340011, %v3923_v52  ;;  %v3934_v46 = vxor.u32 %v3930_v55, %v3926_v21 }
 0x238   : > { %3896 = vmatpush.bf16.msrb.mxu3 %v5752_v28  ;;  %v3928_v53 = vadd.s32 3668340011, %v3924_v9  ;;  %v3929_v37 = vadd.s32 3668340011, %v3925_v2 }
 0x239   : > { %v3208_v16 = vadd.f32 %v3207_v15, %v3194_v0  ;;  %v3931_v44 = vshrl.u32 %v3927_v39, 16  ;;  %v3938_v5 = vmul.u32 2246822507, %v3934_v46  ;;  %v3468_v15 = vperm.slane %v3466_v6, 0 }
 0x23a   : > { %v3932_v25 = vshrl.u32 %v3928_v53, 16  ;;  %v3933_v23 = vshrl.u32 %v3929_v37, 16  ;;  %v3982_v46 = vperm.slane %v3979_v49, 2 }
 0x23b   : > { %v3222_v4 = vadd.f32 %v3221_v41, %v3208_v16  ;;  %v3935_v3 = vxor.u32 %v3931_v44, %v3927_v39  ;;  %v3942_v32 = vshrl.u32 %v3938_v5, 13 }
 0x23c   : > { %3897 = vmatpush.bf16.msrb.mxu3 %v5744_v11  ;;  %v3937_v19 = vxor.u32 %v3933_v23, %v3929_v37 }
 0x23d   : > { %v3939_v42 = vmul.u32 2246822507, %v3935_v3  ;;  %v3946_v0 = vxor.u32 %v3942_v32, %v3938_v5  ;;  %v3986_v32 = vperm.slane %v3982_v46, 0 }
 0x23f   : > { %v3943_v13 = vshrl.u32 %v3939_v42, 13  ;;  %v3950_v41 = vmul.u32 3266489909, %v3946_v0 }
 0x241   : > { %v3947_v16 = vxor.u32 %v3943_v13, %v3939_v42 }
 0x243   : > { %v3951_v61 = vmul.u32 3266489909, %v3947_v16 }
 0x24c   : > { %v3233_v58 = vpop.f32.mrf.mxu2  ;;  %v3801_v43 = vpop.f32.mrf.mxu0 }
 0x24d   : > { %v3234_v62 = vadd.f32 %v3233_v58, %v3220_v12  ;;  %v3936_v12 = vxor.u32 %v3932_v25, %v3928_v53 }
 0x24e   : > { %v3247_v47 = vpop.f32.mrf.mxu3 }
 0x24f   : > { %v3248_v48 = vadd.f32 %v3247_v47, %v3234_v62  ;;  %v3940_v11 = vmul.u32 2246822507, %v3936_v12  ;;  %v3802_v62 = vadd.f32 %v3801_v43, %v3468_v15  ;;  %v3941_v47 = vmul.u32 2246822507, %v3937_v19 }
 0x251   : > { %v3255_v20 = vmul.f32 0.2, %v3248_v48  ;;  %v3945_v24 = vshrl.u32 %v3941_v47, 13 }
 0x253   : > { %v3263_v57 = vmax.f32 %v3248_v48, %v3255_v20  ;;  %v3944_v48 = vshrl.u32 %v3940_v11, 13 }
 0x254   : > { %v3235_v8 = vpop.f32.mrf.mxu2  ;;  %v3803_v28 = vpop.f32.mrf.mxu0 }
 0x255   : > { %v3236_v27 = vadd.f32 %v3235_v8, %v3222_v4  ;;  %v3385_v35 = vmul.f32 1.4285715, %v3263_v57  ;;  %v3469_v4 = vperm.slane %v3466_v6, 1  ;;  %v3948_v30 = vxor.u32 %v3944_v48, %v3940_v11 }
 0x256   : > { %v3249_v63 = vpop.f32.mrf.mxu3  ;;  %v3804_v22 = vadd.f32 %v3803_v28, %v3468_v15 }
 0x257   : > { %v3250_v26 = vadd.f32 %v3249_v63, %v3236_v27  ;;  %v3952_v36 = vmul.u32 3266489909, %v3948_v30 }
 0x259   : > { %v3259_v56 = vmul.f32 0.2, %v3250_v26  ;;  %v3956_v55 = vshrl.u32 %v3952_v36, 16 }
 0x25b   : > { %v3267_v45 = vmax.f32 %v3250_v26, %v3259_v56  ;;  %v3954_v26 = vshrl.u32 %v3950_v41, 16  ;;  %v3960_v6 = vxor.u32 %v3956_v55, %v3952_v36 }
 0x25d   : > { %v3389_v31 = vmul.f32 1.4285715, %v3267_v45  ;;  %v3955_v45 = vshrl.u32 %v3951_v61, 16  ;;  %v3958_v18 = vxor.u32 %v3954_v26, %v3950_v41 }
 0x25f   : > { %v5811_v29 = vpack.c.bf16 %v3389_v31, %v3385_v35  ;;  %v3949_v35 = vxor.u32 %v3945_v24, %v3941_v47  ;;  %v3959_v10 = vxor.u32 %v3955_v45, %v3951_v61  ;;  %v3962_v1 = vshrl.u32 %v3958_v18, 9 }
 0x261   : > { %5812 = vmatmul.msk.bf16.vlgmr.msra.gmra.mxu3 %vm5810_vm3, %v5811_v29  ;;  %v3953_v52 = vmul.u32 3266489909, %v3949_v35  ;;  %v3963_v2 = vshrl.u32 %v3959_v10, 9  ;;  %vm7367_vm6 = vcmp.lt.s32.totalorder %v3962_v1, 5872025 }
 0x263   : > { %v3957_v53 = vshrl.u32 %v3953_v52, 16  ;;  %vm3967_vm7 = vcmp.lt.s32.totalorder %v3963_v2, 5872025 }
 0x265   : > { %v3961_v12 = vxor.u32 %v3957_v53, %v3953_v52 }
 0x267   : > { %v3815_v7 = vpop.f32.mrf.mxu1  ;;  %v3965_v47 = vshrl.u32 %v3961_v12, 9 }
 0x268   : > { %v3816_v40 = vadd.f32 %v3815_v7, %v3802_v62  ;;  %v3981_v7 = vperm.slane %v3979_v49, 0 }
 0x269   : > { %vm3969_vm9 = vcmp.lt.s32.totalorder %v3965_v47, 5872025 }
 0x26a   : > { %v3985_v28 = vperm.slane %v3981_v7, 0 }
 0x26c   : > { %v3857_v34 = vpop.f32.mrf.mxu0 }
 0x26d   : > { %v3858_v57 = vadd.f32 %v3857_v34, %v3469_v4 }
 0x26f   : > { %v3817_v58 = vpop.f32.mrf.mxu1 }
 0x270   : > { %v3818_v31 = vadd.f32 %v3817_v58, %v3804_v22 }
 0x271   : > { %5824 = vmatmul.msk.bf16.vlgmr.msrb.gmra.mxu3 %vm5810_vm3, %v5811_v29 }
 0x274   : > { %v3859_v59 = vpop.f32.mrf.mxu0 }
 0x275   : > { %v3860_v9 = vadd.f32 %v3859_v59, %v3469_v4 }
 0x277   : > { %v3871_v20 = vpop.f32.mrf.mxu1 }
 0x278   : > { %v3872_v14 = vadd.f32 %v3871_v20, %v3858_v57 }
 0x27f   : > { %v3873_v44 = vpop.f32.mrf.mxu1 }
 0x280   : > { %v3874_v42 = vadd.f32 %v3873_v44, %v3860_v9 }
 0x2a4   : > { %v3829_v17 = vpop.f32.mrf.mxu2 }
 0x2a5   : > { %v3830_v8 = vadd.f32 %v3829_v17, %v3816_v40 }
 0x2ac   : > { %v3831_v54 = vpop.f32.mrf.mxu2 }
 0x2ad   : > { %v3832_v33 = vadd.f32 %v3831_v54, %v3818_v31 }
 0x2b4   : > { %v3885_v56 = vpop.f32.mrf.mxu2 }
 0x2b5   : > { %v3886_v51 = vadd.f32 %v3885_v56, %v3872_v14 }
 0x2bc   : > { %v3887_v5 = vpop.f32.mrf.mxu2 }
 0x2bd   : > { %v3888_v15 = vadd.f32 %v3887_v5, %v3874_v42 }
 0x2e4   : > { %v3843_v50 = vpop.f32.mrf.mxu3 }
 0x2e5   : > { %v3844_v27 = vadd.f32 %v3843_v50, %v3830_v8  ;;  %v3964_v50 = vshrl.u32 %v3960_v6, 9 }
 0x2e7   : > { %v3904_v29 = vmul.f32 0.2, %v3844_v27  ;;  %vm3968_vm8 = vcmp.lt.s32.totalorder %v3964_v50, 5872025 }
 0x2e9   : > { %v3908_v21 = vmax.f32 %v3844_v27, %v3904_v29 }
 0x2eb   : > { %v3970_v17 = vmul.f32 1.4285715, %v3908_v21 }
 0x2ec   : > { %v3845_v63 = vpop.f32.mrf.mxu3 }
 0x2ed   : > { %v3846_v60 = vadd.f32 %v3845_v63, %v3832_v33  ;;  %v3974_v19 = vsel %vm7367_vm6, %v3970_v17, 0.0  ;;  %v6298_v63 = vld [vmem:[#allocation4] ss:$0 sm:$0xff] }
 0x2ee   : > { %v3987_v62 = vmul.f32 %v3985_v28, %v3974_v19 }
 0x2ef   : > { %v3906_v3 = vmul.f32 0.2, %v3846_v60 }
 0x2f1   : > { %v3910_v58 = vmax.f32 %v3846_v60, %v3906_v3 }
 0x2f3   : > { %v3972_v40 = vmul.f32 1.4285715, %v3910_v58 }
 0x2f4   : > { %v3899_v39 = vpop.f32.mrf.mxu3 }
 0x2f5   : > { %v3900_v43 = vadd.f32 %v3899_v39, %v3886_v51  ;;  %v3976_v8 = vsel %vm3968_vm8, %v3972_v40, 0.0 }
 0x2f6   : > { %v3989_v24 = vmul.f32 %v3985_v28, %v3976_v8 }
 0x2f7   : > { %v3905_v37 = vmul.f32 0.2, %v3900_v43 }
 0x2f9   : > { %v3909_v23 = vmax.f32 %v3900_v43, %v3905_v37 }
 0x2fb   : > { %v3971_v13 = vmul.f32 1.4285715, %v3909_v23 }
 0x2fc   : > { %v3901_v54 = vpop.f32.mrf.mxu3 }
 0x2fd   : > { %v3902_v0 = vadd.f32 %v3901_v54, %v3888_v15  ;;  %v3975_v11 = vsel %vm3967_vm7, %v3971_v13, 0.0 }
 0x2fe   : > { %v3988_v16 = vmul.f32 %v3986_v32, %v3975_v11 }
 0x2ff   : > { %v3907_v34 = vmul.f32 0.2, %v3902_v0 }
 0x300   : > { %v3991_v41 = vadd.f32 %v3988_v16, %v3987_v62 }
 0x301   : > { %v3911_v48 = vmax.f32 %v3902_v0, %v3907_v34 }
 0x302   : > { %3992 = vadd.xlane.f32.xlu0 %v3991_v41 }
 0x303   : > { %v3973_v4 = vmul.f32 1.4285715, %v3911_v48 }
 0x305   : > { %v3977_v61 = vsel %vm3969_vm9, %v3973_v4, 0.0 }
 0x306   : > { %v3990_v27 = vmul.f32 %v3986_v32, %v3977_v61 }
 0x308   : > { %v3994_v20 = vadd.f32 %v3990_v27, %v3989_v24 }
 0x30a   : > { %3995 = vadd.xlane.f32.xlu0 %v3994_v20 }
 0x375   : > { %v3993_v26 = vpop.xlane.xlu0 %3992 }
 0x376   : > { %v4001_v30 = vadd.f32 %v6298_v63, %v3993_v26 }
 0x378   : > { %v4003_v22 = vsub.f32 0.0, %v4001_v30 }
 0x37a   : > { %v4005_v57 = vmul.f32 1.442695, %v4003_v22 }
 0x37c   : > { %6299 = vpow2.f32 %v4005_v57 }
 0x37d   : > { %v3996_v56 = vpop.xlane.xlu0 %3995 }
 0x37e   : > { %v4002_v45 = vadd.f32 %v6298_v63, %v3996_v56 }
 0x380   : > { %v4004_v35 = vsub.f32 0.0, %v4002_v45 }
 0x382   : > { %v6300_v31 = vpop.eup %6299  ;;  %v4007_v29 = vmul.f32 1.442695, %v4004_v35 }
 0x383   : > { %v4009_v38 = vadd.f32 1.0, %v6300_v31 }
 0x384   : > { %6301 = vpow2.f32 %v4007_v29 }
 0x385   : > { %6303 = vrcp.f32 %v4009_v38  ;;  %v4022_v10 = vand.u32 2147483648, %v4009_v38  ;;  %v4020_v52 = vand.u32 2147483647, %v4009_v38  ;;  %vm4016_vm5 = vweird.f32 %v4009_v38 }
 0x387   : > { %v4023_v60 = vor.u32 1.1754944e-38, %v4022_v10  ;;  %vm4021_vm12 = vcmp.eq.f32.partialorder %v4020_v52, 8.507059e+37 }
 0x38a   : > { %v6302_v18 = vpop.eup %6301 }
 0x38b   : > { %v6304_v36 = vpop.eup %6303  ;;  %v4010_v14 = vadd.f32 1.0, %v6302_v18 }
 0x38c   : > { %v4012_v33 = vmul.f32 %v6304_v36, %v4009_v38  ;;  %vm4017_vm4 = vweird.f32 %v6304_v36 }
 0x38d   : > { %6305 = vrcp.f32 %v4010_v14  ;;  %vm4018_vm11 = vmor %vm4016_vm5, %vm4017_vm4  ;;  %v4037_v43 = vand.u32 2147483648, %v4010_v14  ;;  %v4035_v2 = vand.u32 2147483647, %v4010_v14  ;;  %vm4031_vm14 = vweird.f32 %v4010_v14 }
 0x38e   : > { %v4013_v59 = vsub.f32 1.0, %v4012_v33 }
 0x38f   : > { %v4038_v46 = vor.u32 1.1754944e-38, %v4037_v43  ;;  %vm4036_vm0 = vcmp.eq.f32.partialorder %v4035_v2, 8.507059e+37 }
 0x390   : > { %v4014_v49 = vmul.f32 %v6304_v36, %v4013_v59 }
 0x392   : > { %v4015_v51 = vadd.f32 %v6304_v36, %v4014_v49 }
 0x393   : > { %v6306_v21 = vpop.eup %6305 }
 0x394   : > { %v4019_v39 = vsel %vm4018_vm11, %v6304_v36, %v4015_v51  ;;  %v4027_v1 = vmul.f32 %v6306_v21, %v4010_v14  ;;  %vm4032_vm13 = vweird.f32 %v6306_v21 }
 0x395   : > { %v4024_v55 = vsel %vm4021_vm12, %v4023_v60, %v4019_v39  ;;  %vm4033_vm15 = vmor %vm4031_vm14, %vm4032_vm13 }
 0x396   : > { %4042 = vst.msk [vmem:[%s423_s0] sm:$0xff] %vm4041_vm10, %v4024_v55  ;;  %v4028_v9 = vsub.f32 1.0, %v4027_v1 }
 0x398   : > { %v4029_v44 = vmul.f32 %v6306_v21, %v4028_v9 }
 0x39a   : > { %v4030_v7 = vadd.f32 %v6306_v21, %v4029_v44 }
 0x39c   : > { %v4034_v53 = vsel %vm4033_vm15, %v6306_v21, %v4030_v7 }
 0x39d   : > { %v4039_v17 = vsel %vm4036_vm0, %v4038_v46, %v4034_v53 }
 0x39e   : > { %4043 = vst.msk [vmem:[%s423_s0 + $0x8] sm:$0xff] %vm4041_vm10, %v4039_v17 }
 0x39f PF: > { %s7455_s29 = smov %s6649_s17  ;;  %p25_p4 = scmp.ge.s32.totalorder %s6640_s14, 4  }
 0x3a0   : > { %s7456_s17 = smov %s6492_s18  ;;  %s7457_s18 = smov %s6496_s19 }
 0x3a1   : > { %s7458_s19 = smov %s7455_s29  ;;  %s7459_s20 = smov %s6640_s14 }
 0x3a2   :  { %27 = sbr.rel (!%p25_p4) target bundleno = 8 (0x8), region = 112 }
 0x3a7   :  { %4066 = vsyncpa [#allocation6], 1 }
 0x3a8   :  { %4068 = vsyncpa [#allocation6 + $0x1], 1 }
 0x3a9   :  { %4069 = vsyncpa [#allocation8], 1 }
 0x3aa   :  { %4070 = vsyncpa [#allocation11], 1 }

</bundles_post_ra>
